<compile_context>
chip_gen: v7x
topology: tpu7x:2x2x1
jax: 0.10.0
libtpu: 0.0.40
codegen_flags: <defaults>
</compile_context>

<pallas_src>
import math

import numpy as np
import jax
import jax.numpy as jnp
from jax.experimental import pallas as pl
from jax.experimental.pallas import tpu as pltpu


def _time_embedding_kernel(t_ref, consts_ref, w1_ref, w2_ref, out_ref):
    # t_ref:      (TB, 1)  f32   timesteps for this batch tile
    # consts_ref: (4,  N)  f32   rows: freqs_cat|0-pad, phase|0-pad, b1, b2
    # w1_ref:     (N,  N)  bf16  lin1 weight (transposed), rows N/4..N are zero
    # w2_ref:     (N,  N)  bf16  lin2 weight (transposed)
    # out_ref:    (TB, N)
    t = t_ref[...]                            # (TB, 1)
    freqs = consts_ref[0:1, :]                # (1, N) lane-dense (zero tail)
    phase = consts_ref[1:2, :]                # (1, N) [0.., pi/2.., 0-pad]
    b1 = consts_ref[2:3, :]                   # (1, N)
    b2 = consts_ref[3:4, :]                   # (1, N)

    # emb = [sin(t*f), cos(t*f), 0...]; cos(x) = sin(x + pi/2).  Lanes >= N/4 give
    # sin(0) = 0 and multiply zero rows of w1, so one full-lane sin is exact.
    emb = jnp.sin(t * freqs + phase)          # (TB, N) f32, single EUP pass, no XLU

    # lin1 (bf16 MXU inputs, f32 accumulate) + Swish in f32.
    h = jnp.dot(emb.astype(jnp.bfloat16), w1_ref[...],
                preferred_element_type=jnp.float32) + b1
    h = h * jax.nn.sigmoid(h)

    # lin2
    out = jnp.dot(h.astype(jnp.bfloat16), w2_ref[...],
                  preferred_element_type=jnp.float32) + b2
    out_ref[...] = out.astype(out_ref.dtype)


def prepare_time_embedding_params(w1, b1, w2, b2, n_channels):
    """One-time (per model) param prep: pack small constants, pad/cast weights.

    w1: (n_channels//4, n_channels) = torch lin1.weight.T
    w2: (n_channels,    n_channels) = torch lin2.weight.T
    Returns (consts (4,N) f32, w1 padded to (N,N) bf16, w2 (N,N) bf16).
    """
    if n_channels < 16 or n_channels % 8 != 0:
        # half_dim - 1 == 0 at n_channels == 8 -> division by zero in the spec.
        raise ValueError("n_channels must be a multiple of 8 and >= 16")

    half_dim = n_channels // 8
    n4 = n_channels // 4
    emb_scale = math.log(10000.0) / (half_dim - 1)
    freqs = np.exp(np.arange(half_dim, dtype=np.float64) * -emb_scale).astype(np.float32)

    consts = np.zeros((4, n_channels), dtype=np.float32)
    consts[0, :n4] = np.concatenate([freqs, freqs])                # freqs_cat, zero tail
    consts[1, half_dim:n4] = np.float32(np.pi / 2.0)               # phase (cos half)
    consts[2, :] = np.asarray(b1, dtype=np.float32)
    consts[3, :] = np.asarray(b2, dtype=np.float32)

    # Zero-pad w1 rows to (N, N): lin1 becomes a lane-aligned K=N MXU push and the
    # kernel never has to extract a sub-128-lane window out of consts/emb.
    w1_pad = np.zeros((n_channels, n_channels), dtype=np.float32)
    w1_pad[:n4, :] = np.asarray(w1, dtype=np.float32)

    consts = jnp.asarray(consts)
    w1_bf16 = jnp.asarray(w1_pad, dtype=jnp.bfloat16)
    w2_bf16 = jnp.asarray(w2, dtype=jnp.bfloat16)

    # VMEM residency guard: Pallas double-buffers every input by default, so the
    # resident weight footprint is 2x.  Budget against the 32 MiB default scoped
    # VMEM (v6e/v7x; 16 MiB on v5e, 64 MiB physical on v7x) with headroom for the
    # t/out tiles.  At n_channels = 128 this is ~200 KiB.
    resident_bytes = 2 * (w1_bf16.size * 2 + w2_bf16.size * 2 + consts.size * 4)
    if resident_bytes > 24 * 1024 * 1024:
        # TODO(synk): if n_channels scales up, tile lin2 over output columns, put
        # pipeline_mode=pl.Buffered(1) on the resident specs, and raise
        # vmem_limit_bytes in pltpu.CompilerParams instead of failing here.
        raise ValueError("weights too large for untiled VMEM residency; tile lin2 over N")

    return consts, w1_bf16, w2_bf16


def prepare_timesteps(t, *, multiple=8):
    """Hoist the (B,) -> (Bp, 1) f32 reshape/pad out of the per-step path.

    Call once outside the sampling loop (or fold into the caller's jit).  Padded
    rows compute sin of t=0 (finite) and are sliced off by the caller.
    """
    B = t.shape[0]
    bp = ((B + multiple - 1) // multiple) * multiple
    t2d = jnp.asarray(t, jnp.float32).reshape(B, 1)
    if bp != B:
        t2d = jnp.pad(t2d, ((0, bp - B), (0, 0)))
    return t2d, B


def time_embedding(t2d, consts, w1_bf16, w2_bf16, *, tb=None, out_dtype=jnp.float32):
    """t2d: (Bp, 1) f32 (from prepare_timesteps) -> (Bp, n_channels) in out_dtype.

    Overhead-bound at small n_channels, so the default is one full-batch tile
    (grid=(1,)): per-step pipeline overhead (~0.35 us) and extra t/out DMA setup
    would dominate otherwise.  Pass tb only if Bp*n f32 no longer fits VMEM; on
    v7x use tb = Bp//2 so dimension_semantics=("parallel",) can use both TCs.
    """
    bp = t2d.shape[0]
    n = consts.shape[1]
    if tb is None or tb >= bp:
        tb = bp                                   # collapse the grid
    if bp % tb != 0 or (tb != bp and tb % 8 != 0):
        raise ValueError("tb must divide Bp and be a multiple of 8")
    steps = bp // tb

    flops = 2 * bp * (n * n + n * n)              # lin1 (padded to NxN) + lin2
    transcendentals = bp * (n + n)                # sin + sigmoid
    bytes_accessed = (t2d.size * 4 + consts.size * 4
                      + w1_bf16.size * 2 + w2_bf16.size * 2
                      + bp * n * jnp.dtype(out_dtype).itemsize)

    return pl.pallas_call(
        _time_embedding_kernel,
        out_shape=jax.ShapeDtypeStruct((bp, n), out_dtype),
        grid_spec=pltpu.PrefetchScalarGridSpec(
            num_scalar_prefetch=0,
            grid=(steps,),
            in_specs=[
                pl.BlockSpec((tb, 1), lambda i: (i, 0)),   # t tile
                pl.BlockSpec((4, n), lambda i: (0, 0)),    # packed consts (resident)
                pl.BlockSpec((n, n), lambda i: (0, 0)),    # w1 padded (resident)
                pl.BlockSpec((n, n), lambda i: (0, 0)),    # w2 (resident)
            ],
            out_specs=pl.BlockSpec((tb, n), lambda i: (i, 0)),
        ),
        compiler_params=pltpu.CompilerParams(
            dimension_semantics=("arbitrary",) if steps == 1 else ("parallel",)),
        cost_estimate=pl.CostEstimate(flops=flops,
                                      transcendentals=transcendentals,
                                      bytes_accessed=bytes_accessed),
    )(t2d, consts, w1_bf16, w2_bf16)


def _reference(t, w1, b1, w2, b2, n_channels, *, matmul_dtype=jnp.float32):
    """Pure-JAX reference matching the PyTorch forward (matmul dtype selectable)."""
    half_dim = n_channels // 8
    emb_scale = math.log(10000.0) / (half_dim - 1)
    freqs = jnp.exp(jnp.arange(half_dim, dtype=jnp.float32) * -emb_scale)
    emb = t[:, None] * freqs[None, :]
    emb = jnp.concatenate([jnp.sin(emb), jnp.cos(emb)], axis=1)
    h = jnp.dot(emb.astype(matmul_dtype), w1.astype(matmul_dtype),
                preferred_element_type=jnp.float32) + b1
    h = h * jax.nn.sigmoid(h)
    return jnp.dot(h.astype(matmul_dtype), w2.astype(matmul_dtype),
                   preferred_element_type=jnp.float32) + b2


if __name__ == "__main__":
    n_channels = 128            # n_channels // 4 = 32, half_dim = 16
    batch = 256                 # batched timesteps

    key = jax.random.PRNGKey(0)
    k_t, k_w1, k_b1, k_w2, k_b2 = jax.random.split(key, 5)

    # Deterministic synthetic parameters (shapes from nn.Linear in __init__), stored transposed.
    in1 = n_channels // 4
    w1 = (jax.random.normal(k_w1, (in1, n_channels), jnp.float32)
          / jnp.sqrt(jnp.float32(in1)))                       # lin1.weight^T
    b1 = jax.random.normal(k_b1, (n_channels,), jnp.float32) * 0.01
    w2 = (jax.random.normal(k_w2, (n_channels, n_channels), jnp.float32)
          / jnp.sqrt(jnp.float32(n_channels)))                # lin2.weight^T
    b2 = jax.random.normal(k_b2, (n_channels,), jnp.float32) * 0.01

    t = jax.random.uniform(k_t, (batch,), jnp.float32, minval=0.0, maxval=1000.0)

    # One-time prep (outside the sampling loop), then the per-step call.
    consts, w1_bf16, w2_bf16 = prepare_time_embedding_params(w1, b1, w2, b2, n_channels)
    t2d, B = prepare_timesteps(t)
    out = time_embedding(t2d, consts, w1_bf16, w2_bf16)       # single grid step
    out = jax.block_until_ready(out)[:B]
    assert out.shape == (batch, n_channels)

    # Tight check against a bf16-matmul reference (same precision as the kernel)...
    ref_bf16 = _reference(t, w1, b1, w2, b2, n_channels, matmul_dtype=jnp.bfloat16)
    assert jnp.allclose(out, ref_bf16, atol=2e-2, rtol=2e-2), "mismatch vs bf16 reference"
    # ...and a looser sanity check against the full-f32 reference.
    ref_f32 = _reference(t, w1, b1, w2, b2, n_channels, matmul_dtype=jnp.float32)
    assert jnp.allclose(out, ref_f32, atol=7e-2, rtol=7e-2), "mismatch vs f32 reference"

    print("KERNEL_OK")
</pallas_src>

<mosaic_0001>
module attributes {stable_mosaic.version = 11 : i64} {
  func.func @_time_embedding_kernel(%arg0: i32, %arg1: memref<256x1xf32, #tpu.memory_space<vmem>>, %arg2: memref<4x128xf32, #tpu.memory_space<vmem>>, %arg3: memref<128x128xbf16, #tpu.memory_space<vmem>>, %arg4: memref<128x128xbf16, #tpu.memory_space<vmem>>, %arg5: memref<256x128xf32, #tpu.memory_space<vmem>>) attributes {dimension_semantics = [#tpu.dimension_semantics<arbitrary>], iteration_bounds = array<i64: 1>, scalar_prefetch = 0 : i64, scratch_operands = 0 : i64, tpu.core_type = #tpu.core_type<tc>, window_params = [{transform_indices = @transform_0, window_bounds = array<i64: 256, 1>}, {pipeline_mode = #tpu.pipeline_mode<synchronous>, transform_indices = @transform_1, window_bounds = array<i64: 4, 128>}, {pipeline_mode = #tpu.pipeline_mode<synchronous>, transform_indices = @transform_2, window_bounds = array<i64: 128, 128>}, {pipeline_mode = #tpu.pipeline_mode<synchronous>, transform_indices = @transform_3, window_bounds = array<i64: 128, 128>}, {transform_indices = @transform_4, window_bounds = array<i64: 256, 128>}]} {
    %c0 = arith.constant 0 : index
    %c0_0 = arith.constant 0 : index
    %0 = vector.load %arg1[%c0, %c0_0] : memref<256x1xf32, #tpu.memory_space<vmem>>, vector<256x1xf32>
    %c0_1 = arith.constant 0 : index
    %c0_2 = arith.constant 0 : index
    %1 = vector.load %arg2[%c0_1, %c0_2] : memref<4x128xf32, #tpu.memory_space<vmem>>, vector<1x128xf32>
    %c1 = arith.constant 1 : index
    %c0_3 = arith.constant 0 : index
    %2 = vector.load %arg2[%c1, %c0_3] : memref<4x128xf32, #tpu.memory_space<vmem>>, vector<1x128xf32>
    %c2 = arith.constant 2 : index
    %c0_4 = arith.constant 0 : index
    %3 = vector.load %arg2[%c2, %c0_4] : memref<4x128xf32, #tpu.memory_space<vmem>>, vector<1x128xf32>
    %c3 = arith.constant 3 : index
    %c0_5 = arith.constant 0 : index
    %4 = vector.load %arg2[%c3, %c0_5] : memref<4x128xf32, #tpu.memory_space<vmem>>, vector<1x128xf32>
    %5 = vector.broadcast %0 : vector<256x1xf32> to vector<256x128xf32>
    %6 = vector.broadcast %1 : vector<1x128xf32> to vector<256x128xf32>
    %7 = arith.mulf %5, %6 : vector<256x128xf32>
    %8 = vector.broadcast %2 : vector<1x128xf32> to vector<256x128xf32>
    %9 = arith.addf %7, %8 : vector<256x128xf32>
    %10 = math.sin %9 : vector<256x128xf32>
    %11 = arith.truncf %10 : vector<256x128xf32> to vector<256x128xbf16>
    %c0_6 = arith.constant 0 : index
    %c0_7 = arith.constant 0 : index
    %12 = vector.load %arg3[%c0_6, %c0_7] : memref<128x128xbf16, #tpu.memory_space<vmem>>, vector<128x128xbf16>
    %cst = arith.constant dense<0.000000e+00> : vector<256x128xf32>
    %13 = tpu.matmul %11, %12, %cst {dimension_numbers = #tpu.dot_dimension_numbers<[1], [0], [0], [1], [0, 0, 1, 1], [], []>} : vector<256x128xbf16>, vector<128x128xbf16>, vector<256x128xf32> -> vector<256x128xf32>
    %14 = vector.broadcast %3 : vector<1x128xf32> to vector<256x128xf32>
    %15 = arith.addf %13, %14 : vector<256x128xf32>
    %16 = arith.negf %15 : vector<256x128xf32>
    %17 = math.exp %16 : vector<256x128xf32>
    %cst_8 = arith.constant 1.000000e+00 : f32
    %18 = vector.broadcast %cst_8 : f32 to vector<256x128xf32>
    %19 = arith.addf %18, %17 : vector<256x128xf32>
    %20 = arith.divf %18, %19 : vector<256x128xf32>
    %21 = arith.mulf %15, %20 : vector<256x128xf32>
    %22 = arith.truncf %21 : vector<256x128xf32> to vector<256x128xbf16>
    %c0_9 = arith.constant 0 : index
    %c0_10 = arith.constant 0 : index
    %23 = vector.load %arg4[%c0_9, %c0_10] : memref<128x128xbf16, #tpu.memory_space<vmem>>, vector<128x128xbf16>
    %cst_11 = arith.constant dense<0.000000e+00> : vector<256x128xf32>
    %24 = tpu.matmul %22, %23, %cst_11 {dimension_numbers = #tpu.dot_dimension_numbers<[1], [0], [0], [1], [0, 0, 1, 1], [], []>} : vector<256x128xbf16>, vector<128x128xbf16>, vector<256x128xf32> -> vector<256x128xf32>
    %25 = vector.broadcast %4 : vector<1x128xf32> to vector<256x128xf32>
    %26 = arith.addf %24, %25 : vector<256x128xf32>
    %c0_12 = arith.constant 0 : index
    %c0_13 = arith.constant 0 : index
    %27 = vector.load %arg5[%c0_12, %c0_13] : memref<256x128xf32, #tpu.memory_space<vmem>>, vector<256x128xf32>
    tpu.vector_store %arg5[%c0_12, %c0_13], %26 {strides = array<i32>} : memref<256x128xf32, #tpu.memory_space<vmem>>, vector<256x128xf32>,
    return
  }
  func.func @transform_0(%arg0: i32) -> (i32, i32) {
    %c0_i32 = arith.constant 0 : i32
    %c0_i32_0 = arith.constant 0 : i32
    return %arg0, %c0_i32 : i32, i32
  }
  func.func @transform_1(%arg0: i32) -> (i32, i32) {
    %c0_i32 = arith.constant 0 : i32
    %c0_i32_0 = arith.constant 0 : i32
    %c0_i32_1 = arith.constant 0 : i32
    return %c0_i32, %c0_i32_0 : i32, i32
  }
  func.func @transform_2(%arg0: i32) -> (i32, i32) {
    %c0_i32 = arith.constant 0 : i32
    %c0_i32_0 = arith.constant 0 : i32
    %c0_i32_1 = arith.constant 0 : i32
    return %c0_i32, %c0_i32_0 : i32, i32
  }
  func.func @transform_3(%arg0: i32) -> (i32, i32) {
    %c0_i32 = arith.constant 0 : i32
    %c0_i32_0 = arith.constant 0 : i32
    %c0_i32_1 = arith.constant 0 : i32
    return %c0_i32, %c0_i32_0 : i32, i32
  }
  func.func @transform_4(%arg0: i32) -> (i32, i32) {
    %c0_i32 = arith.constant 0 : i32
    %c0_i32_0 = arith.constant 0 : i32
    return %arg0, %c0_i32 : i32, i32
  }
}

</mosaic_0001>

<bundles_post_ra>
// kernel: tpu_custom_call.1
= control target key start
LH: loop header
LB: loop body
LE: loop exit
PB: predicated region body
PF: predicated region fallthrough
CT: control target
= control target key end

     0   :  { %v5143_v2 = vmov 0   ;;  %s8485_s0 = inlined_call_operand.vmem [shape: f32[256,1], index: 0, kind: input, shape index: {}]   ;;  %s8486_s1 = inlined_call_operand.vmem [shape: f32[4,128], index: 1, kind: input, shape index: {}]   ;;  %s8487_s2 = inlined_call_operand.vmem [shape: bf16[128,128], index: 2, kind: input, shape index: {}]   ;;  %s8488_s3 = inlined_call_operand.vmem [shape: bf16[128,128], index: 3, kind: input, shape index: {}]   ;;  %s8489_s4 = inlined_call_operand.hbm [shape: f32[256,128], index: 4, kind: output, shape index: {}]  }
   0x1   :  { %v21_v0 = vld [vmem:[%s8485_s0 + $0x10] sm:$0xff]  ;;  %v19_v1 = vld [vmem:[%s8485_s0] sm:$0xff]  ;;  %4840 = vset.pattern.permute.xlu1 %v5143_v2  ;;  %4839 = vset.pattern.permute.xlu0 %v5143_v2  ;;  %v22_v3 = vld [vmem:[%s8485_s0 + $0x18] sm:$0xff] }
   0x2   :  { %67 = vperm.xlu1 %4840, %v21_v0   ;;  %57 = vperm.xlu0 %4839, %v19_v1   ;;  %v20_v4 = vld [vmem:[%s8485_s0 + $0x8] sm:$0xff]  ;;  %v23_v6 = vld [vmem:[%s8485_s0 + $0x20] sm:$0xff]  ;;  %v26_v7 = vld [vmem:[%s8485_s0 + $0x38] sm:$0xff] }
   0x3   :  { %v24_v5 = vld [vmem:[%s8485_s0 + $0x28] sm:$0xff]  ;;  %v25_v8 = vld [vmem:[%s8485_s0 + $0x30] sm:$0xff]  ;;  %v27_v10 = vld [vmem:[%s8485_s0 + $0x40] sm:$0xff] }
   0x4   :  { %v28_v9 = vld [vmem:[%s8485_s0 + $0x48] sm:$0xff]  ;;  %v30_v11 = vld [vmem:[%s8485_s0 + $0x58] sm:$0xff]  ;;  %v29_v12 = vld [vmem:[%s8485_s0 + $0x50] sm:$0xff] }
   0x6   :  { %72 = vperm.xlu1 %4840, %v22_v3   ;;  %62 = vperm.xlu0 %4839, %v20_v4  }
   0xa   :  { %82 = vperm.xlu1 %4840, %v24_v5   ;;  %77 = vperm.xlu0 %4839, %v23_v6  }
   0xe   :  { %92 = vperm.xlu1 %4840, %v26_v7   ;;  %87 = vperm.xlu0 %4839, %v25_v8  }
  0x12   :  { %102 = vperm.xlu1 %4840, %v28_v9   ;;  %97 = vperm.xlu0 %4839, %v27_v10  }
  0x16   :  { %112 = vperm.xlu1 %4840, %v30_v11   ;;  %107 = vperm.xlu0 %4839, %v29_v12  }
  0x17   :  { %9 = vsyncpa [#allocation3], 0  ;;  %v32_v13 = vld [vmem:[%s8485_s0 + $0x68] sm:$0xff]  ;;  %v31_v14 = vld [vmem:[%s8485_s0 + $0x60] sm:$0xff]  ;;  %v8502_v61 = vmov 683565275  }
  0x18   :  { %v34_v15 = vld [vmem:[%s8485_s0 + $0x78] sm:$0xff]  ;;  %v33_v16 = vld [vmem:[%s8485_s0 + $0x70] sm:$0xff]  ;;  %v36_v17 = vld [vmem:[%s8485_s0 + $0x88] sm:$0xff]  ;;  %v8496_v63 = vmov 2475754826  }
  0x19   :  { %v35_v18 = vld [vmem:[%s8485_s0 + $0x80] sm:$0xff]  ;;  %v38_v19 = vld [vmem:[%s8485_s0 + $0x98] sm:$0xff]  ;;  %v37_v20 = vld [vmem:[%s8485_s0 + $0x90] sm:$0xff]  ;;  %v8498_v1 = vmov 2131351028  }
  0x1a   :  { %122 = vperm.xlu1 %4840, %v32_v13   ;;  %117 = vperm.xlu0 %4839, %v31_v14   ;;  %v40_v21 = vld [vmem:[%s8485_s0 + $0xa8] sm:$0xff]  ;;  %v39_v22 = vld [vmem:[%s8485_s0 + $0xa0] sm:$0xff]  ;;  %v42_v23 = vld [vmem:[%s8485_s0 + $0xb8] sm:$0xff]  ;;  %v8500_v3 = vmov 2102212464  }
  0x1b   :  { %v41_v24 = vld [vmem:[%s8485_s0 + $0xb0] sm:$0xff]  ;;  %v44_v25 = vld [vmem:[%s8485_s0 + $0xc8] sm:$0xff]  ;;  %v43_v26 = vld [vmem:[%s8485_s0 + $0xc0] sm:$0xff]  ;;  %v8521_v8 = vmov 920167782  }
  0x1c   :  { %v46_v27 = vld [vmem:[%s8485_s0 + $0xd8] sm:$0xff]  ;;  %v45_v28 = vld [vmem:[%s8485_s0 + $0xd0] sm:$0xff]  ;;  %v48_v29 = vld [vmem:[%s8485_s0 + $0xe8] sm:$0xff]  ;;  %v8513_v12 = vmov 1326507024  }
  0x1d   :  { %v47_v30 = vld [vmem:[%s8485_s0 + $0xe0] sm:$0xff]  ;;  %v50_v31 = vld [vmem:[%s8485_s0 + $0xf8] sm:$0xff]  ;;  %v49_v32 = vld [vmem:[%s8485_s0 + $0xf0] sm:$0xff] }
  0x1e   :  { %132 = vperm.xlu1 %4840, %v34_v15   ;;  %127 = vperm.xlu0 %4839, %v33_v16   ;;  %v5277_v33 = vld [vmem:[%s8486_s1] ss:$0 sm:$0xff]  ;;  %v5282_v34 = vld [vmem:[%s8486_s1 + $0x1] ss:$0 sm:$0xff] }
  0x22   :  { %142 = vperm.xlu1 %4840, %v36_v17   ;;  %137 = vperm.xlu0 %4839, %v35_v18  }
  0x26   :  { %152 = vperm.xlu1 %4840, %v38_v19   ;;  %147 = vperm.xlu0 %4839, %v37_v20  }
  0x2a   :  { %162 = vperm.xlu1 %4840, %v40_v21   ;;  %157 = vperm.xlu0 %4839, %v39_v22  }
  0x2e   :  { %172 = vperm.xlu1 %4840, %v42_v23   ;;  %167 = vperm.xlu0 %4839, %v41_v24  }
  0x32   :  { %182 = vperm.xlu1 %4840, %v44_v25   ;;  %177 = vperm.xlu0 %4839, %v43_v26  }
  0x36   :  { %192 = vperm.xlu1 %4840, %v46_v27   ;;  %187 = vperm.xlu0 %4839, %v45_v28  }
  0x3a   :  { %202 = vperm.xlu1 %4840, %v48_v29   ;;  %197 = vperm.xlu0 %4839, %v47_v30  }
  0x3e   :  { %212 = vperm.xlu1 %4840, %v50_v31   ;;  %207 = vperm.xlu0 %4839, %v49_v32  }
  0x81   :  { %v68_v35 = vpop.permute.xlu1 %67 }
  0x82   :  { %v221_v36 = vmul.f32 %v5277_v33, %v68_v35 }
  0x84   :  { %v5286_v37 = vadd.f32 %v5282_v34, %v221_v36 }
  0x85   :  { %v73_v38 = vpop.permute.xlu1 %72 }
  0x86   :  { %8653 = vst [vmem:[#allocation5_spill] sm:$0xff] %v5286_v37  ;;  %v498_v39 = vand.u32 2139095040, %v5286_v37  ;;  %v222_v40 = vmul.f32 %v5277_v33, %v73_v38  ;;  %v8494_v42 = vand.u32 2147483647, %v5286_v37 }
  0x88   :  { %v499_v41 = vshrl.u32 %v498_v39, 23  ;;  %v5292_v43 = vadd.f32 %v5282_v34, %v222_v40  ;;  %v502_v48 = vand.u32 8388607, %v8494_v42 }
  0x89   :  { %v83_v46 = vpop.permute.xlu1 %82 }
  0x8a   :  { %8654 = vst [vmem:[#allocation6_spill] sm:$0xff] %v5292_v43  ;;  %v4387_v44 = vadd.s32 4294967169, %v499_v41  ;;  %v602_v45 = vand.u32 2139095040, %v5292_v43  ;;  %v8493_v50 = vand.u32 2147483647, %v5292_v43  ;;  %v224_v51 = vmul.f32 %v5277_v33, %v83_v46 }
  0x8b   :  { %v503_v55 = vor.u32 8388608, %v502_v48 }
  0x8c   :  { %v505_v47 = vadd.s32 1, %v4387_v44  ;;  %v603_v49 = vshrl.u32 %v602_v45, 23  ;;  %v5301_v58 = vand.u32 8388607, %v8493_v50  ;;  %v5304_v60 = vadd.f32 %v5282_v34, %v224_v51 }
  0x8d   :  { %v543_v29 = vshll.u32 %v503_v55, 8 }
  0x8e   :  { %vm506_vm0 = vcmp.gt.s32.totalorder %v505_v47, 0  ;;  %v4391_v53 = vadd.s32 4294967169, %v603_v49  ;;  %8655 = vst [vmem:[#allocation7_spill] sm:$0xff] %v5304_v60  ;;  %v607_v41 = vor.u32 8388608, %v5301_v58  ;;  %v810_v46 = vand.u32 2139095040, %v5304_v60 }
  0x8f   :  { %v507_v52 = vsel %vm506_vm0, %v505_v47, 0 }
  0x90   :  { %v509_v54 = vand.u32 31, %v507_v52  ;;  %v508_v56 = vshrl.u32 %v507_v52, 5  ;;  %v609_v59 = vadd.s32 1, %v4391_v53 }
  0x92   :  { %v510_v57 = vsub.s32 32, %v509_v54  ;;  %v512_v62 = vshll.u32 %v8502_v61, %v509_v54  ;;  %v515_v0 = vshll.u32 %v8496_v63, %v509_v54  ;;  %v518_v2 = vshll.u32 %v8498_v1, %v509_v54 }
  0x93   :  { %v521_v4 = vshll.u32 %v8500_v3, %v509_v54  ;;  %v524_v9 = vshll.u32 %v8521_v8, %v509_v54  ;;  %vm527_vm1 = vcmp.lt.s32.totalorder %v508_v56, 1  ;;  %vm529_vm2 = vcmp.lt.s32.totalorder %v508_v56, 3 }
  0x94   :  { %v513_v5 = vshrl.u32 %v8496_v63, %v510_v57  ;;  %v516_v6 = vshrl.u32 %v8498_v1, %v510_v57  ;;  %v519_v7 = vshrl.u32 %v8500_v3, %v510_v57  ;;  %v511_v10 = vshrl.u32 %v8502_v61, %v510_v57 }
  0x95   :  { %v522_v11 = vshrl.u32 %v8521_v8, %v510_v57  ;;  %v525_v13 = vshrl.u32 %v8513_v12, %v510_v57  ;;  %vm530_vm3 = vcmp.lt.s32.totalorder %v508_v56, 4  ;;  %vm610_vm4 = vcmp.gt.s32.totalorder %v609_v59, 0  ;;  %v58_v57 = vpop.permute.xlu0 %57 }
  0x96   :  { %v514_v14 = vor.u32 %v513_v5, %v512_v62  ;;  %v517_v15 = vor.u32 %v516_v6, %v515_v0  ;;  %v520_v16 = vor.u32 %v519_v7, %v518_v2  ;;  %v611_v26 = vsel %vm610_vm4, %v609_v59, 0 }
  0x97   :  { %v523_v17 = vor.u32 %v522_v11, %v521_v4  ;;  %v526_v18 = vor.u32 %v525_v13, %v524_v9  ;;  %vm528_vm5 = vcmp.lt.s32.totalorder %v508_v56, 2  ;;  %v613_v35 = vand.u32 31, %v611_v26 }
  0x98   :  { %v531_v19 = vsel %vm527_vm1, %v511_v10, %v514_v14  ;;  %v532_v20 = vsel %vm530_vm3, %v520_v16, 2102212464  ;;  %v535_v21 = vsel %vm527_vm1, %v514_v14, %v517_v15  ;;  %v539_v22 = vsel %vm527_vm1, %v517_v15, %v520_v16 }
  0x99   :  { %v533_v23 = vsel %vm529_vm2, %v517_v15, %v532_v20  ;;  %v536_v24 = vsel %vm530_vm3, %v523_v17, 920167782  ;;  %v540_v25 = vsel %vm530_vm3, %v526_v18, 1326507024  ;;  %v612_v44 = vshrl.u32 %v611_v26, 5 }
  0x9a   :  { %v537_v27 = vsel %vm529_vm2, %v520_v16, %v536_v24  ;;  %v541_v28 = vsel %vm529_vm2, %v523_v17, %v540_v25  ;;  %v534_v30 = vsel %vm528_vm5, %v531_v19, %v533_v23  ;;  %v614_v45 = vsub.s32 32, %v613_v35  ;;  %v63_v23 = vpop.permute.xlu0 %62 }
  0x9b   :  { %v538_v31 = vsel %vm528_vm5, %v535_v21, %v537_v27  ;;  %v542_v32 = vsel %vm528_vm5, %v539_v22, %v541_v28  ;;  %v550_v47 = vmul.u32 %v543_v29, %v534_v30  ;;  %v616_v48 = vshll.u32 %v8502_v61, %v613_v35 }
  0x9c   :  { %v5317_v36 = vmul.u32.u64.low %v543_v29, %v542_v32  ;;  %v5318_v38 = vmul.u32.u64.high %v543_v29, %v542_v32, %v5317_v36  ;;  %v5320_v39 = vmul.u32.u64.low %v543_v29, %v538_v31  ;;  %v5321_v40 = vmul.u32.u64.high %v543_v29, %v538_v31, %v5320_v39 }
  0x9d   :  { %v619_v49 = vshll.u32 %v8496_v63, %v613_v35  ;;  %v622_v51 = vshll.u32 %v8498_v1, %v613_v35  ;;  %v617_v52 = vshrl.u32 %v8496_v63, %v614_v45  ;;  %v620_v53 = vshrl.u32 %v8498_v1, %v614_v45 }
  0x9e   :  { %v623_v54 = vshrl.u32 %v8500_v3, %v614_v45  ;;  %v625_v55 = vshll.u32 %v8500_v3, %v613_v35  ;;  %vm552_vm6 = vc.u32 %v5318_v38, %v5320_v39  ;;  %v553_v56 = vadd.s32 1, %v5321_v40 }
  0x9f   :  { %v626_v58 = vshrl.u32 %v8521_v8, %v614_v45  ;;  %v628_v59 = vshll.u32 %v8521_v8, %v613_v35  ;;  %v618_v62 = vor.u32 %v617_v52, %v616_v48  ;;  %v621_v0 = vor.u32 %v620_v53, %v619_v49 }
  0xa0   :  { %v624_v2 = vor.u32 %v623_v54, %v622_v51  ;;  %v629_v4 = vshrl.u32 %v8513_v12, %v614_v45  ;;  %v554_v5 = vsel %vm552_vm6, %v553_v56, %v5321_v40  ;;  %vm631_vm7 = vcmp.lt.s32.totalorder %v612_v44, 1 }
  0xa1   :  { %v627_v6 = vor.u32 %v626_v58, %v625_v55  ;;  %vm634_vm8 = vcmp.lt.s32.totalorder %v612_v44, 4  ;;  %v555_v7 = vadd.s32 %v554_v5, %v550_v47  ;;  %v615_v9 = vshrl.u32 %v8502_v61, %v614_v45  ;;  %v78_v45 = vpop.permute.xlu0 %77 }
  0xa2   :  { %v630_v10 = vor.u32 %v629_v4, %v628_v59  ;;  %v636_v11 = vsel %vm634_vm8, %v624_v2, 2102212464  ;;  %vm633_vm9 = vcmp.lt.s32.totalorder %v612_v44, 3  ;;  %v639_v13 = vsel %vm631_vm7, %v618_v62, %v621_v0 }
  0xa3   :  { %v640_v14 = vsel %vm634_vm8, %v627_v6, 920167782  ;;  %v643_v15 = vsel %vm631_vm7, %v621_v0, %v624_v2  ;;  %vm632_vm10 = vcmp.lt.s32.totalorder %v612_v44, 2  ;;  %v647_v18 = vshll.u32 %v607_v41, 8 }
  0xa4   :  { %v641_v16 = vsel %vm633_vm9, %v624_v2, %v640_v14  ;;  %v644_v17 = vsel %vm634_vm8, %v630_v10, 1326507024  ;;  %v635_v19 = vsel %vm631_vm7, %v615_v9, %v618_v62  ;;  %v637_v20 = vsel %vm633_vm9, %v621_v0, %v636_v11 }
  0xa5   :  { %v642_v21 = vsel %vm632_vm10, %v639_v13, %v641_v16  ;;  %v645_v22 = vsel %vm633_vm9, %v627_v6, %v644_v17  ;;  %v556_v24 = vadd.s32 536870912, %v555_v7  ;;  %v811_v30 = vshrl.u32 %v810_v46, 23 }
  0xa6   :  { %v646_v25 = vsel %vm632_vm10, %v643_v15, %v645_v22  ;;  %v5341_v26 = vmul.u32.u64.low %v647_v18, %v642_v21  ;;  %v5342_v27 = vmul.u32.u64.high %v647_v18, %v642_v21, %v5341_v26  ;;  %v638_v31 = vsel %vm632_vm10, %v635_v19, %v637_v20 }
  0xa7   :  { %v5345_v28 = vmul.u32.u64.low %v647_v18, %v646_v25  ;;  %v5346_v29 = vmul.u32.u64.high %v647_v18, %v646_v25, %v5345_v28  ;;  %v219_v32 = vmul.f32 %v5277_v33, %v58_v57  ;;  %v4399_v35 = vadd.s32 4294967169, %v811_v30 }
  0xa8   :  { %v5349_v36 = vshrl.u32 %v556_v24, 30  ;;  %v657_v40 = vadd.s32 1, %v5342_v27  ;;  %v654_v41 = vmul.u32 %v647_v18, %v638_v31  ;;  %v8491_v51 = vand.u32 2147483647, %v5304_v60 }
  0xa9   :  { %vm656_vm11 = vc.u32 %v5346_v29, %v5341_v26  ;;  %v817_v44 = vadd.s32 1, %v4399_v35  ;;  %v5356_v48 = vadd.f32 %v5282_v34, %v219_v32  ;;  %v223_v53 = vmul.f32 %v5277_v33, %v78_v45 }
  0xaa   :  { %8656 = vst [vmem:[#allocation8_spill] sm:$0xff] %v5349_v36  ;;  %v658_v47 = vsel %vm656_vm11, %v657_v40, %v5342_v27  ;;  %v558_v49 = vshll.u32 %v5349_v36, 30  ;;  %v220_v57 = vmul.f32 %v5277_v33, %v63_v23  ;;  %v814_v62 = vand.u32 8388607, %v8491_v51  ;;  %v93_v40 = vpop.permute.xlu1 %92 }
  0xab   :  { %8657 = vst [vmem:[#allocation9_spill] sm:$0xff] %v5356_v48  ;;  %v659_v46 = vadd.s32 %v658_v47, %v654_v41  ;;  %vm818_vm12 = vcmp.gt.s32.totalorder %v817_v44, 0  ;;  %v290_v56 = vand.u32 2139095040, %v5356_v48  ;;  %v5368_v2 = vadd.f32 %v5282_v34, %v223_v53 }
  0xac   :  { %v819_v52 = vsel %vm818_vm12, %v817_v44, 0  ;;  %v5363_v59 = vsub.s32 %v555_v7, %v558_v49  ;;  %v815_v18 = vor.u32 8388608, %v814_v62  ;;  %v5386_v27 = vadd.f32 %v5282_v34, %v220_v57 }
  0xad   :  { %v821_v54 = vand.u32 31, %v819_v52  ;;  %v660_v55 = vadd.s32 536870912, %v659_v46  ;;  %v820_v0 = vshrl.u32 %v819_v52, 5  ;;  %v706_v19 = vand.u32 2139095040, %v5368_v2 }
  0xae   :  { %v561_v20 = vsub.s32 0, %v5363_v59  ;;  %v291_v24 = vshrl.u32 %v290_v56, 23  ;;  %8659 = vst [vmem:[#allocation11_spill] sm:$0xff] %v5386_v27  ;;  %v855_v32 = vshll.u32 %v815_v18, 8  ;;  %v226_v57 = vmul.f32 %v5277_v33, %v93_v40 }
  0xaf   :  { %v822_v58 = vsub.s32 32, %v821_v54  ;;  %v824_v4 = vshll.u32 %v8502_v61, %v821_v54  ;;  %v827_v6 = vshll.u32 %v8496_v63, %v821_v54  ;;  %v5374_v10 = vshrl.u32 %v660_v55, 30 }
  0xb0   :  { %v830_v7 = vshll.u32 %v8498_v1, %v821_v54  ;;  %v833_v16 = vshll.u32 %v8500_v3, %v821_v54  ;;  %v836_v23 = vshll.u32 %v8521_v8, %v821_v54  ;;  %vm839_vm13 = vcmp.lt.s32.totalorder %v820_v0, 1 }
  0xb1   :  { %v825_v5 = vshrl.u32 %v8496_v63, %v822_v58  ;;  %v828_v9 = vshrl.u32 %v8498_v1, %v822_v58  ;;  %8658 = vst [vmem:[#allocation10_spill] sm:$0xff] %v5374_v10  ;;  %v831_v11 = vshrl.u32 %v8500_v3, %v822_v58  ;;  %v834_v13 = vshrl.u32 %v8521_v8, %v822_v58 }
  0xb2   :  { %v837_v17 = vshrl.u32 %v8513_v12, %v822_v58  ;;  %v662_v25 = vshll.u32 %v5374_v10, 30  ;;  %vm842_vm14 = vcmp.lt.s32.totalorder %v820_v0, 4  ;;  %vm841_vm15 = vcmp.lt.s32.totalorder %v820_v0, 3 }
  0xb3   :  { %v826_v14 = vor.u32 %v825_v5, %v824_v4  ;;  %v829_v15 = vor.u32 %v828_v9, %v827_v6  ;;  %v832_v21 = vor.u32 %v831_v11, %v830_v7  ;;  %v835_v22 = vor.u32 %v834_v13, %v833_v16 }
  0xb4   :  { %v838_v28 = vor.u32 %v837_v17, %v836_v23  ;;  %v707_v35 = vshrl.u32 %v706_v19, 23  ;;  %v4388_v41 = vmin.u32 %v561_v20, %v5363_v59  ;;  %vm840_vm0 = vcmp.lt.s32.totalorder %v820_v0, 2 }
  0xb5   :  { %v847_v30 = vsel %vm839_vm13, %v826_v14, %v829_v15  ;;  %v848_v31 = vsel %vm842_vm14, %v835_v22, 920167782  ;;  %v844_v44 = vsel %vm842_vm14, %v832_v21, 2102212464  ;;  %v5391_v47 = vsub.s32 %v659_v46, %v662_v25 }
  0xb6   :  { %v849_v45 = vsel %vm841_vm15, %v832_v21, %v848_v31  ;;  %v823_v49 = vshrl.u32 %v8502_v61, %v822_v58  ;;  %v851_v53 = vsel %vm839_vm13, %v829_v15, %v832_v21  ;;  %v852_v54 = vsel %vm842_vm14, %v838_v28, 1326507024 }
  0xb7   :  { %v850_v52 = vsel %vm840_vm0, %v847_v30, %v849_v45  ;;  %v845_v4 = vsel %vm841_vm15, %v829_v15, %v844_v44  ;;  %v853_v46 = vsel %vm841_vm15, %v835_v22, %v852_v54  ;;  %v4395_v5 = vadd.s32 4294967169, %v707_v35 }
  0xb8   :  { %v5396_v55 = vmul.u32.u64.low %v855_v32, %v850_v52  ;;  %v5397_v56 = vmul.u32.u64.high %v855_v32, %v850_v52, %v5396_v55  ;;  %v843_v62 = vsel %vm839_vm13, %v823_v49, %v826_v14  ;;  %v563_v6 = vclz %v4388_v41 }
  0xb9   :  { %v394_v58 = vand.u32 2139095040, %v5386_v27  ;;  %v854_v9 = vsel %vm840_vm0, %v851_v53, %v853_v46  ;;  %v8492_v7 = vand.u32 2147483647, %v5368_v2  ;;  %v665_v11 = vsub.s32 0, %v5391_v47 }
  0xba   :  { %v5408_v13 = vmul.u32.u64.low %v855_v32, %v854_v9  ;;  %v5409_v16 = vmul.u32.u64.high %v855_v32, %v854_v9, %v5408_v13  ;;  %v846_v17 = vsel %vm840_vm0, %v843_v62, %v845_v4  ;;  %v865_v14 = vadd.s32 1, %v5397_v56 }
  0xbb   :  { %v5414_v15 = vadd.f32 %v5282_v34, %v226_v57  ;;  %v713_v18 = vadd.s32 1, %v4395_v5  ;;  %v4389_v19 = vadd.s32 4294967294, %v563_v6  ;;  %v4379_v20 = vadd.s32 4294967169, %v291_v24 }
  0xbc   :  { %v395_v21 = vshrl.u32 %v394_v58, 23  ;;  %v710_v22 = vand.u32 8388607, %v8492_v7  ;;  %v4392_v23 = vmin.u32 %v665_v11, %v5391_v47  ;;  %v862_v25 = vmul.u32 %v855_v32, %v846_v17 }
  0xbd   :  { %8660 = vst [vmem:[#allocation12_spill] sm:$0xff] %v5414_v15  ;;  %vm864_vm1 = vc.u32 %v5409_v16, %v5396_v55  ;;  %vm714_vm2 = vcmp.gt.s32.totalorder %v713_v18, 0  ;;  %v1018_v30 = vand.u32 2139095040, %v5414_v15  ;;  %v297_v40 = vadd.s32 1, %v4379_v20 }
  0xbe   :  { %v866_v0 = vsel %vm864_vm1, %v865_v14, %v5397_v56  ;;  %v715_v28 = vsel %vm714_vm2, %v713_v18, 0  ;;  %v5423_v24 = vadd.s32 4294967169, %v395_v21  ;;  %v711_v41 = vor.u32 8388608, %v710_v22  ;;  %v88_v56 = vpop.permute.xlu0 %87 }
  0xbf   :  { %v867_v31 = vadd.s32 %v866_v0, %v862_v25  ;;  %v717_v35 = vand.u32 31, %v715_v28  ;;  %vm4390_vm3 = vcmp.lt.s32.totalorder %v4389_v19, 0  ;;  %v667_v44 = vclz %v4392_v23 }
  0xc0   :  { %v716_v32 = vshrl.u32 %v715_v28, 5  ;;  %v1019_v54 = vshrl.u32 %v1018_v30, 23  ;;  %vm298_vm4 = vcmp.gt.s32.totalorder %v297_v40, 0  ;;  %v225_v14 = vmul.f32 %v5277_v33, %v88_v56 }
  0xc1   :  { %v868_v45 = vadd.s32 536870912, %v867_v31  ;;  %v718_v49 = vsub.s32 32, %v717_v35  ;;  %v720_v52 = vshll.u32 %v8502_v61, %v717_v35  ;;  %v723_v53 = vshll.u32 %v8496_v63, %v717_v35 }
  0xc2   :  { %v726_v4 = vshll.u32 %v8498_v1, %v717_v35  ;;  %v729_v46 = vshll.u32 %v8500_v3, %v717_v35  ;;  %v732_v58 = vshll.u32 %v8521_v8, %v717_v35  ;;  %v4407_v22 = vadd.s32 4294967169, %v1019_v54 }
  0xc3   :  { %v721_v57 = vshrl.u32 %v8496_v63, %v718_v49  ;;  %v724_v62 = vshrl.u32 %v8498_v1, %v718_v49  ;;  %v727_v5 = vshrl.u32 %v8500_v3, %v718_v49  ;;  %v730_v6 = vshrl.u32 %v8521_v8, %v718_v49 }
  0xc4   :  { %v733_v9 = vshrl.u32 %v8513_v12, %v718_v49  ;;  %v5435_v11 = vshrl.u32 %v868_v45, 30  ;;  %v5439_v23 = vsel %vm4390_vm3, 0, %v4389_v19  ;;  %v4393_v25 = vadd.s32 4294967294, %v667_v44 }
  0xc5   :  { %v722_v13 = vor.u32 %v721_v57, %v720_v52  ;;  %v725_v17 = vor.u32 %v724_v62, %v723_v53  ;;  %v728_v18 = vor.u32 %v727_v5, %v726_v4  ;;  %v731_v20 = vor.u32 %v730_v6, %v729_v46 }
  0xc6   :  { %8661 = vst [vmem:[#allocation13_spill] sm:$0xff] %v5435_v11  ;;  %v734_v21 = vor.u32 %v733_v9, %v732_v58  ;;  %vm735_vm5 = vcmp.lt.s32.totalorder %v716_v32, 1  ;;  %vm738_vm6 = vcmp.lt.s32.totalorder %v716_v32, 4  ;;  %v719_v0 = vshrl.u32 %v8502_v61, %v718_v49 }
  0xc7   :  { %v740_v28 = vsel %vm738_vm6, %v728_v18, 2102212464  ;;  %v743_v30 = vsel %vm735_vm5, %v722_v13, %v725_v17  ;;  %v751_v35 = vshll.u32 %v711_v41, 8  ;;  %v870_v45 = vshll.u32 %v5435_v11, 30 }
  0xc8   :  { %vm737_vm7 = vcmp.lt.s32.totalorder %v716_v32, 3  ;;  %v744_v52 = vsel %vm738_vm6, %v731_v20, 920167782  ;;  %v747_v53 = vsel %vm735_vm5, %v725_v17, %v728_v18  ;;  %vm736_vm8 = vcmp.lt.s32.totalorder %v716_v32, 2 }
  0xc9   :  { %v745_v56 = vsel %vm737_vm7, %v728_v18, %v744_v52  ;;  %v748_v57 = vsel %vm738_vm6, %v734_v21, 1326507024  ;;  %v1025_v54 = vadd.s32 1, %v4407_v22  ;;  %v739_v62 = vsel %vm735_vm5, %v719_v0, %v722_v13 }
  0xca   :  { %v741_v19 = vsel %vm737_vm7, %v725_v17, %v740_v28  ;;  %v746_v44 = vsel %vm736_vm8, %v743_v30, %v745_v56  ;;  %v749_v4 = vsel %vm737_vm7, %v731_v20, %v748_v57  ;;  %v571_v41 = vsub.s32 4294967266, %v5439_v23 }
  0xcb   :  { %v750_v46 = vsel %vm736_vm8, %v747_v53, %v749_v4  ;;  %v5445_v49 = vmul.u32.u64.low %v751_v35, %v746_v44  ;;  %v5446_v5 = vmul.u32.u64.high %v751_v35, %v746_v44, %v5445_v49  ;;  %vm1026_vm9 = vcmp.gt.s32.totalorder %v1025_v54, 0 }
  0xcc   :  { %v5450_v6 = vmul.u32.u64.low %v751_v35, %v750_v46  ;;  %v5451_v58 = vmul.u32.u64.high %v751_v35, %v750_v46, %v5450_v6  ;;  %v1027_v9 = vsel %vm1026_vm9, %v1025_v54, 0  ;;  %vm4394_vm10 = vcmp.lt.s32.totalorder %v4393_v25, 0 }
  0xcd   :  { %v8490_v13 = vand.u32 2147483647, %v5414_v15  ;;  %v1029_v17 = vand.u32 31, %v1027_v9  ;;  %v5455_v18 = vsel %vm298_vm4, %v297_v40, 0  ;;  %v5457_v20 = vsub.s32 %v867_v31, %v870_v45 }
  0xce   :  { %v742_v21 = vsel %vm736_vm8, %v739_v62, %v741_v19  ;;  %v5461_v22 = vadd.f32 %v5282_v34, %v225_v14  ;;  %v551_v0 = vadd.s32 %v5320_v39, %v5318_v38  ;;  %v401_v28 = vadd.s32 1, %v5423_v24 }
  0xcf   :  { %v761_v30 = vadd.s32 1, %v5446_v5  ;;  %v1030_v52 = vsub.s32 32, %v1029_v17  ;;  %v567_v53 = vsub.s32 32, %v5439_v23  ;;  %v5468_v56 = vadd.s32 127, %v571_v41 }
  0xd0   :  { %8662 = vst [vmem:[#allocation14_spill] sm:$0xff] %v5461_v22  ;;  %v5470_v40 = vsel %vm4394_vm10, 0, %v4393_v25  ;;  %vm760_vm11 = vc.u32 %v5451_v58, %v5445_v49  ;;  %v758_v31 = vmul.u32 %v751_v35, %v742_v21  ;;  %v1022_v38 = vand.u32 8388607, %v8490_v13 }
  0xd1   :  { %v762_v32 = vsel %vm760_vm11, %v761_v30, %v5446_v5  ;;  %v1033_v39 = vshrl.u32 %v8496_v63, %v1030_v52  ;;  %v873_v24 = vsub.s32 0, %v5457_v20  ;;  %v1032_v14 = vshll.u32 %v8502_v61, %v1029_v17 }
  0xd2   :  { %v1035_v45 = vshll.u32 %v8496_v63, %v1029_v17  ;;  %v914_v25 = vand.u32 2139095040, %v5461_v22  ;;  %v5482_v57 = vadd.s32 %v762_v32, %v758_v31  ;;  %v1036_v54 = vshrl.u32 %v8498_v1, %v1030_v52 }
  0xd3   :  { %v1038_v35 = vshll.u32 %v8498_v1, %v1029_v17  ;;  %v1039_v62 = vshrl.u32 %v8500_v3, %v1030_v52  ;;  %v1028_v19 = vshrl.u32 %v1027_v9, 5  ;;  %v1034_v44 = vor.u32 %v1033_v39, %v1032_v14 }
  0xd4   :  { %v1041_v4 = vshll.u32 %v8500_v3, %v1029_v17  ;;  %v1042_v46 = vshrl.u32 %v8521_v8, %v1030_v52  ;;  %v1037_v5 = vor.u32 %v1036_v54, %v1035_v45  ;;  %v1044_v6 = vshll.u32 %v8521_v8, %v1029_v17 }
  0xd5   :  { %v1040_v41 = vor.u32 %v1039_v62, %v1038_v35  ;;  %v1045_v21 = vshrl.u32 %v8513_v12, %v1030_v52  ;;  %v569_v30 = vshrl.u32 %v551_v0, %v567_v53  ;;  %vm402_vm12 = vcmp.gt.s32.totalorder %v401_v28, 0 }
  0xd6   :  { %v1023_v31 = vor.u32 8388608, %v1022_v38  ;;  %v1043_v32 = vor.u32 %v1042_v46, %v1041_v4  ;;  %v573_v13 = vshll.u32 %v5468_v56, 23  ;;  %v675_v51 = vsub.s32 4294967266, %v5470_v40 }
  0xd7   :  { %v764_v9 = vadd.s32 536870912, %v5482_v57  ;;  %v1046_v39 = vor.u32 %v1045_v21, %v1044_v6  ;;  %v4400_v14 = vmin.u32 %v873_v24, %v5457_v20  ;;  %vm1047_vm13 = vcmp.lt.s32.totalorder %v1028_v19, 1 }
  0xd8   :  { %vm1050_vm14 = vcmp.lt.s32.totalorder %v1028_v19, 4  ;;  %v915_v45 = vshrl.u32 %v914_v25, 23  ;;  %vm1049_vm15 = vcmp.lt.s32.totalorder %v1028_v19, 3  ;;  %v1055_v54 = vsel %vm1047_vm13, %v1034_v44, %v1037_v5 }
  0xd9   :  { %v1052_v17 = vsel %vm1050_vm14, %v1040_v41, 2102212464  ;;  %v1056_v0 = vsel %vm1050_vm14, %v1043_v32, 920167782  ;;  %v1031_v53 = vshrl.u32 %v8502_v61, %v1030_v52  ;;  %vm1048_vm0 = vcmp.lt.s32.totalorder %v1028_v19, 2 }
  0xda   :  { %v1057_v38 = vsel %vm1049_vm15, %v1040_v41, %v1056_v0  ;;  %v1063_v56 = vshll.u32 %v1023_v31, 8  ;;  %v5497_v35 = vshrl.u32 %v764_v9, 30  ;;  %v1059_v4 = vsel %vm1047_vm13, %v1037_v5, %v1040_v41 }
  0xdb   :  { %v1058_v62 = vsel %vm1048_vm0, %v1055_v54, %v1057_v38  ;;  %v1060_v24 = vsel %vm1050_vm14, %v1046_v39, 1326507024  ;;  %v676_v46 = vadd.s32 127, %v675_v51  ;;  %v1051_v25 = vsel %vm1047_vm13, %v1031_v53, %v1034_v44 }
  0xdc   :  { %8663 = vst [vmem:[#allocation15_spill] sm:$0xff] %v5497_v35  ;;  %v1053_v6 = vsel %vm1049_vm15, %v1037_v5, %v1052_v17  ;;  %v1061_v21 = vsel %vm1049_vm15, %v1043_v32, %v1060_v24  ;;  %v5503_v50 = vmul.u32.u64.low %v1063_v56, %v1058_v62  ;;  %v5504_v42 = vmul.u32.u64.high %v1063_v56, %v1058_v62, %v5503_v50 }
  0xdd   :  { %v1062_v7 = vsel %vm1048_vm0, %v1059_v4, %v1061_v21  ;;  %v4403_v52 = vadd.s32 4294967169, %v915_v45  ;;  %v568_v31 = vshll.u32 %v5363_v59, %v5439_v23  ;;  %v875_v9 = vclz %v4400_v14  ;;  %v103_v23 = vpop.permute.xlu1 %102 }
  0xde   :  { %v5509_v54 = vmul.u32.u64.low %v1063_v56, %v1062_v7  ;;  %v5510_v0 = vmul.u32.u64.high %v1063_v56, %v1062_v7, %v5509_v54  ;;  %v5513_v51 = vsel %vm402_vm12, %v401_v28, 0  ;;  %v766_v44 = vshll.u32 %v5497_v35, 30 }
  0xdf   :  { %v1054_v5 = vsel %vm1048_vm0, %v1051_v25, %v1053_v6  ;;  %v921_v41 = vadd.s32 1, %v4403_v52  ;;  %v5517_v32 = vor.u32 %v569_v30, %v568_v31  ;;  %v5519_v39 = vor.u32 4788187, %v573_v13 }
  0xe0   :  { %v655_v45 = vadd.s32 %v5341_v26, %v5346_v29  ;;  %v671_v59 = vsub.s32 32, %v5470_v40  ;;  %v677_v7 = vshll.u32 %v676_v46, 23  ;;  %v1073_v14 = vadd.s32 1, %v5504_v42 }
  0xe1   :  { %v8495_v28 = vand.u32 2147483647, %v5461_v22  ;;  %vm922_vm1 = vcmp.gt.s32.totalorder %v921_v41, 0  ;;  %v4401_v17 = vadd.s32 4294967294, %v875_v9  ;;  %v1070_v19 = vmul.u32 %v1063_v56, %v1054_v5 }
  0xe2   :  { %vm1072_vm2 = vc.u32 %v5510_v0, %v5503_v50  ;;  %v923_v30 = vsel %vm922_vm1, %v921_v41, 0  ;;  %v5529_v13 = vsub.s32 %v5482_v57, %v766_v44  ;;  %v228_v53 = vmul.f32 %v5277_v33, %v103_v23  ;;  %v98_v57 = vpop.permute.xlu0 %97 }
  0xe3   :  { %v1074_v26 = vsel %vm1072_vm2, %v1073_v14, %v5504_v42  ;;  %v925_v29 = vand.u32 31, %v923_v30  ;;  %v5534_v38 = vshrl.u32 %v5455_v18, 5  ;;  %v5537_v62 = vand.u32 31, %v5455_v18 }
  0xe4   :  { %v5540_v56 = vand.u32 31, %v5513_v51  ;;  %v1075_v4 = vadd.s32 %v1074_v26, %v1070_v19  ;;  %v673_v46 = vshrl.u32 %v655_v45, %v671_v59  ;;  %v5544_v42 = vor.u32 4788187, %v677_v7 }
  0xe5   :  { %8664 = vst [vmem:[#allocation16_spill] sm:$0xff] %v5534_v38  ;;  %8665 = vst [vmem:[#allocation17_spill] sm:$0xff] %v5537_v62  ;;  %v926_v25 = vsub.s32 32, %v925_v29  ;;  %vm4402_vm3 = vcmp.lt.s32.totalorder %v4401_v17, 0  ;;  %v918_v21 = vand.u32 8388607, %v8495_v28  ;;  %v5552_v9 = vadd.f32 %v5282_v34, %v228_v53 }
  0xe6   :  { %8666 = vst [vmem:[#allocation18_spill] sm:$0xff] %v5540_v56  ;;  %v1076_v6 = vadd.s32 536870912, %v1075_v4  ;;  %v769_v18 = vsub.s32 0, %v5529_v13  ;;  %v5554_v54 = vshrl.u32 %v923_v30, 5  ;;  %v928_v44 = vshll.u32 %v8502_v61, %v925_v29 }
  0xe7   :  { %v929_v52 = vshrl.u32 %v8496_v63, %v926_v25  ;;  %v932_v31 = vshrl.u32 %v8498_v1, %v926_v25  ;;  %8667 = vst [vmem:[#allocation19_spill] sm:$0xff] %v5552_v9  ;;  %v931_v5 = vshll.u32 %v8496_v63, %v925_v29  ;;  %v935_v41 = vshrl.u32 %v8500_v3, %v926_v25 }
  0xe8   :  { %v5559_v45 = vshrl.u32 %v1076_v6, 30  ;;  %v934_v59 = vshll.u32 %v8498_v1, %v925_v29  ;;  %v937_v23 = vshll.u32 %v8500_v3, %v925_v29  ;;  %v938_v7 = vshrl.u32 %v8521_v8, %v926_v25 }
  0xe9   :  { %v672_v14 = vshll.u32 %v5391_v47, %v5470_v40  ;;  %v5567_v19 = vsel %vm4402_vm3, 0, %v4401_v17  ;;  %v930_v30 = vor.u32 %v929_v52, %v928_v44  ;;  %v933_v26 = vor.u32 %v932_v31, %v931_v5 }
  0xea   :  { %8668 = vst [vmem:[#allocation20_spill] sm:$0xff] %v5559_v45  ;;  %v936_v53 = vor.u32 %v935_v41, %v934_v59  ;;  %v939_v28 = vor.u32 %v938_v7, %v937_v23  ;;  %v940_v63 = vshll.u32 %v8521_v8, %v925_v29  ;;  %v941_v6 = vshrl.u32 %v8513_v12, %v926_v25 }
  0xeb   :  { %v674_v1 = vor.u32 %v673_v46, %v672_v14  ;;  %v679_v3 = vand.u32 2147483647, %v5544_v42  ;;  %v4396_v24 = vmin.u32 %v769_v18, %v5529_v13  ;;  %v919_v61 = vor.u32 8388608, %v918_v21 }
  0xec   :  { %v1078_v47 = vshll.u32 %v5559_v45, 30  ;;  %v942_v40 = vor.u32 %v941_v6, %v940_v63  ;;  %vm943_vm4 = vcmp.lt.s32.totalorder %v5554_v54, 1  ;;  %v1226_v17 = vand.u32 2139095040, %v5552_v9 }
  0xed   :  { %v883_v52 = vsub.s32 4294967266, %v5567_v19  ;;  %vm946_vm5 = vcmp.lt.s32.totalorder %v5554_v54, 4  ;;  %v951_v29 = vsel %vm943_vm4, %v930_v30, %v933_v26  ;;  %v227_v46 = vmul.f32 %v5277_v33, %v98_v57 }
  0xee   :  { %vm945_vm6 = vcmp.lt.s32.totalorder %v5554_v54, 3  ;;  %v952_v42 = vsel %vm946_vm5, %v939_v28, 920167782  ;;  %v955_v63 = vsel %vm943_vm4, %v933_v26, %v936_v53  ;;  %v956_v21 = vsel %vm946_vm5, %v942_v40, 1326507024 }
  0xef   :  { %v771_v18 = vclz %v4396_v24  ;;  %vm944_vm7 = vcmp.lt.s32.totalorder %v5554_v54, 2  ;;  %v953_v31 = vsel %vm945_vm6, %v936_v53, %v952_v42  ;;  %v959_v44 = vshll.u32 %v919_v61, 8 }
  0xf0   :  { %v5591_v5 = vsub.s32 %v1075_v4, %v1078_v47  ;;  %v954_v33 = vsel %vm944_vm7, %v951_v29, %v953_v31  ;;  %v957_v57 = vsel %vm945_vm6, %v939_v28, %v956_v21  ;;  %v1227_v41 = vshrl.u32 %v1226_v17, 23 }
  0xf1   :  { %v879_v59 = vsub.s32 32, %v5567_v19  ;;  %v884_v23 = vadd.s32 127, %v883_v52  ;;  %v948_v24 = vsel %vm946_vm5, %v936_v53, 2102212464  ;;  %v958_v7 = vsel %vm944_vm7, %v955_v63, %v957_v57 }
  0xf2   :  { %v5602_v14 = vmul.u32.u64.low %v959_v44, %v958_v7  ;;  %v5603_v61 = vmul.u32.u64.high %v959_v44, %v958_v7, %v5602_v14  ;;  %v5605_v4 = vmul.u32.u64.low %v959_v44, %v954_v33  ;;  %v5606_v6 = vmul.u32.u64.high %v959_v44, %v954_v33, %v5605_v4 }
  0xf3   :  { %v4397_v47 = vadd.s32 4294967294, %v771_v18  ;;  %v8669_v40 = vmov 683565275   ;;  %v8504_v17 = vand.u32 2147483647, %v5552_v9  ;;  %v4415_v29 = vadd.s32 4294967169, %v1227_v41 }
  0xf4   :  { %v927_v28 = vshrl.u32 %v8669_v40, %v926_v25  ;;  %v681_v52 = vcvt.s32.f32 %v674_v1  ;;  %v863_v53 = vadd.s32 %v5396_v55, %v5409_v16  ;;  %v1081_v42 = vsub.s32 0, %v5591_v5 }
  0xf5   :  { %v5615_v63 = vadd.f32 %v5282_v34, %v227_v46  ;;  %v8671_v21 = vand.u32 2147483647, %v5519_v39  ;;  %v8672_v31 = vcvt.s32.f32 %v5517_v32  ;;  %v949_v1 = vsel %vm945_vm6, %v933_v26, %v948_v24 }
  0xf6   :  { %v947_v25 = vsel %vm943_vm4, %v927_v28, %v930_v30  ;;  %v1233_v18 = vadd.s32 1, %v4415_v29  ;;  %v5627_v57 = vmul.f32 %v681_v52, %v679_v3  ;;  %v881_v55 = vshrl.u32 %v863_v53, %v879_v59 }
  0xf7   :  { %8670 = vst [vmem:[#allocation21_spill] sm:$0xff] %v5615_v63  ;;  %v5621_v33 = vmul.f32 %v8672_v31, %v8671_v21  ;;  %v885_v16 = vshll.u32 %v884_v23, 23  ;;  %v969_v34 = vadd.s32 1, %v5606_v6  ;;  %vm4398_vm8 = vcmp.lt.s32.totalorder %v4397_v47, 0 }
  0xf8   :  { %vm968_vm9 = vc.u32 %v5603_v61, %v5605_v4  ;;  %v1230_v32 = vand.u32 8388607, %v8504_v17  ;;  %vm1234_vm10 = vcmp.gt.s32.totalorder %v1233_v18, 0  ;;  %v4408_v39 = vmin.u32 %v1081_v42, %v5591_v5 }
  0xf9   :  { %v950_v30 = vsel %vm944_vm7, %v947_v25, %v949_v1  ;;  %v1235_v26 = vsel %vm1234_vm10, %v1233_v18, 0  ;;  %v1122_v3 = vand.u32 2139095040, %v5615_v63  ;;  %v5639_v46 = vsub.s32 32, %v5537_v62 }
  0xfa   :  { %v5642_v41 = vshrl.u32 %v5513_v51, 5  ;;  %v5645_v59 = vsub.s32 32, %v5540_v56  ;;  %v880_v23 = vshll.u32 %v5457_v20, %v5567_v19  ;;  %v970_v7 = vsel %vm968_vm9, %v969_v34, %v5606_v6 }
  0xfb   :  { %8673 = vst [vmem:[#allocation22_spill] sm:$0xff] %v5639_v46  ;;  %v1237_v14 = vand.u32 31, %v1235_v26  ;;  %v5654_v29 = vor.u32 4788187, %v885_v16  ;;  %v5657_v51 = vsel %vm4398_vm8, 0, %v4397_v47  ;;  %v966_v52 = vmul.u32 %v959_v44, %v950_v30 }
  0xfc   :  { %8674 = vst [vmem:[#allocation23_spill] sm:$0xff] %v5642_v41  ;;  %8675 = vst [vmem:[#allocation24_spill] sm:$0xff] %v5645_v59  ;;  %v5652_v28 = vor.u32 %v881_v55, %v880_v23  ;;  %v1083_v53 = vclz %v4408_v39  ;;  %v1231_v42 = vor.u32 8388608, %v1230_v32  ;;  %v1123_v31 = vshrl.u32 %v1122_v3, 23 }
  0xfd   :  { %v1238_v21 = vsub.s32 32, %v1237_v14  ;;  %v5659_v20 = vadd.s32 %v970_v7, %v966_v52  ;;  %v1236_v19 = vshrl.u32 %v1235_v26, 5  ;;  %v1240_v25 = vshll.u32 %v8669_v40, %v1237_v14 }
  0xfe   :  { %v8676_v1 = vmov 2475754826   ;;  %v8677_v55 = vmov 2131351028   ;;  %v8678_v47 = vmov 2102212464   ;;  %v1252_v30 = vshll.u32 %v8521_v8, %v1237_v14 }
  0xff   :  { %v1243_v6 = vshll.u32 %v8676_v1, %v1237_v14  ;;  %v1241_v18 = vshrl.u32 %v8676_v1, %v1238_v21  ;;  %v1244_v16 = vshrl.u32 %v8677_v55, %v1238_v21  ;;  %v1246_v34 = vshll.u32 %v8677_v55, %v1237_v14 }
 0x100   :  { %v1247_v23 = vshrl.u32 %v8678_v47, %v1238_v21  ;;  %v887_v44 = vand.u32 2147483647, %v5654_v29  ;;  %v1249_v32 = vshll.u32 %v8678_v47, %v1237_v14  ;;  %v1250_v39 = vshrl.u32 %v8521_v8, %v1238_v21 }
 0x101   :  { %v1242_v26 = vor.u32 %v1241_v18, %v1240_v25  ;;  %v1245_v3 = vor.u32 %v1244_v16, %v1243_v6  ;;  %v1253_v52 = vshrl.u32 %v8513_v12, %v1238_v21  ;;  %v779_v17 = vsub.s32 4294967266, %v5657_v51 }
 0x102   :  { %v1248_v7 = vor.u32 %v1247_v23, %v1246_v34  ;;  %v4409_v54 = vadd.s32 4294967294, %v1083_v53  ;;  %v972_v24 = vadd.s32 536870912, %v5659_v20  ;;  %v1251_v45 = vor.u32 %v1250_v39, %v1249_v32 }
 0x103   :  { %v1254_v11 = vor.u32 %v1253_v52, %v1252_v30  ;;  %vm1255_vm11 = vcmp.lt.s32.totalorder %v1236_v19, 1  ;;  %v1271_v29 = vshll.u32 %v1231_v42, 8  ;;  %v4411_v35 = vadd.s32 4294967169, %v1123_v31  ;;  %v113_v42 = vpop.permute.xlu1 %112 }
 0x104   :  { %v1239_v10 = vshrl.u32 %v8669_v40, %v1238_v21  ;;  %vm1257_vm12 = vcmp.lt.s32.totalorder %v1236_v19, 3  ;;  %vm1258_vm13 = vcmp.lt.s32.totalorder %v1236_v19, 4  ;;  %v1263_v14 = vsel %vm1255_vm11, %v1242_v26, %v1245_v3 }
 0x105   :  { %v1260_v25 = vsel %vm1258_vm13, %v1248_v7, 2102212464  ;;  %v1264_v6 = vsel %vm1258_vm13, %v1251_v45, 920167782  ;;  %v1267_v18 = vsel %vm1255_vm11, %v1245_v3, %v1248_v7  ;;  %v1268_v16 = vsel %vm1258_vm13, %v1254_v11, 1326507024 }
 0x106   :  { %v5677_v34 = vshrl.u32 %v972_v24, 30  ;;  %vm1256_vm14 = vcmp.lt.s32.totalorder %v1236_v19, 2  ;;  %v1265_v53 = vsel %vm1257_vm12, %v1248_v7, %v1264_v6  ;;  %v8515_v23 = vand.u32 2147483647, %v5615_v63 }
 0x107   :  { %v1259_v31 = vsel %vm1255_vm11, %v1239_v10, %v1242_v26  ;;  %v1266_v21 = vsel %vm1256_vm14, %v1263_v14, %v1265_v53  ;;  %v1269_v32 = vsel %vm1257_vm12, %v1251_v45, %v1268_v16  ;;  %v1129_v39 = vadd.s32 1, %v4411_v35  ;;  %v5696_v10 = vld [vmem:[%s8486_s1] ss:$0 sm:$0xff] }
 0x108   :  { %8679 = vst [vmem:[#allocation25_spill] sm:$0xff] %v5677_v34  ;;  %v1261_v30 = vsel %vm1257_vm12, %v1245_v3, %v1260_v25  ;;  %v1270_v52 = vsel %vm1256_vm14, %v1267_v18, %v1269_v32  ;;  %v5686_v11 = vmul.u32.u64.low %v1271_v29, %v1266_v21  ;;  %v5687_v24 = vmul.u32.u64.high %v1271_v29, %v1266_v21, %v5686_v11  ;;  %v108_v25 = vpop.permute.xlu0 %107 }
 0x109   :  { %v5690_v12 = vmul.u32.u64.low %v1271_v29, %v1270_v52  ;;  %v5691_v7 = vmul.u32.u64.high %v1271_v29, %v1270_v52, %v5690_v12  ;;  %vm1130_vm15 = vcmp.gt.s32.totalorder %v1129_v39, 0  ;;  %v230_v45 = vmul.f32 %v5696_v10, %v113_v42 }
 0x10a   :  { %v889_v35 = vcvt.s32.f32 %v5652_v28  ;;  %v775_v26 = vsub.s32 32, %v5657_v51  ;;  %v780_v3 = vadd.s32 127, %v779_v17  ;;  %v1131_v14 = vsel %vm1130_vm15, %v1129_v39, 0 }
 0x10b   :  { %v759_v6 = vadd.s32 %v5445_v49, %v5451_v58  ;;  %v1262_v12 = vsel %vm1256_vm14, %v1259_v31, %v1261_v30  ;;  %v1126_v18 = vand.u32 8388607, %v8515_v23  ;;  %v1133_v16 = vand.u32 31, %v1131_v14  ;;  %v5715_v49 = vld [vmem:[%s8486_s1 + $0x1] ss:$0 sm:$0xff] }
 0x10c   :  { %v5706_v53 = vmul.f32 %v889_v35, %v887_v44  ;;  %vm4410_vm0 = vcmp.lt.s32.totalorder %v4409_v54, 0  ;;  %v974_v42 = vshll.u32 %v5677_v34, 30  ;;  %v1281_v28 = vadd.s32 1, %v5687_v24 }
 0x10d   :  { %vm1280_vm1 = vc.u32 %v5691_v7, %v5686_v11  ;;  %v1134_v17 = vsub.s32 32, %v1133_v16  ;;  %v5718_v58 = vadd.f32 %v5715_v49, %v230_v45  ;;  %v5721_v19 = vmul.f32 %v5696_v10, %v108_v25 }
 0x10e   :  { %v777_v44 = vshrl.u32 %v759_v6, %v775_v26  ;;  %v781_v31 = vshll.u32 %v780_v3, 23  ;;  %v1278_v21 = vmul.u32 %v1271_v29, %v1262_v12  ;;  %v1282_v32 = vsel %vm1280_vm1, %v1281_v28, %v5687_v24 }
 0x10f   :  { %8680 = vst [vmem:[#allocation26_spill] sm:$0xff] %v5718_v58  ;;  %v776_v39 = vshll.u32 %v5529_v13, %v5657_v51  ;;  %v5726_v30 = vsel %vm4410_vm0, 0, %v4409_v54  ;;  %v1127_v52 = vor.u32 8388608, %v1126_v18  ;;  %v1137_v35 = vshrl.u32 %v8676_v1, %v1134_v17 }
 0x110   :  { %v5730_v23 = vsub.s32 %v5659_v20, %v974_v42  ;;  %v5732_v45 = vadd.s32 %v1282_v32, %v1278_v21  ;;  %v1136_v25 = vshll.u32 %v8669_v40, %v1133_v16  ;;  %v1140_v26 = vshrl.u32 %v8677_v55, %v1134_v17 }
 0x111   :  { %v1139_v29 = vshll.u32 %v8676_v1, %v1133_v16  ;;  %v1142_v24 = vshll.u32 %v8677_v55, %v1133_v16  ;;  %v1143_v13 = vshrl.u32 %v8678_v47, %v1134_v17  ;;  %v1434_v54 = vand.u32 2139095040, %v5718_v58 }
 0x112   :  { %v5740_v51 = vor.u32 %v777_v44, %v776_v39  ;;  %v5742_v3 = vor.u32 4788187, %v781_v31  ;;  %v1132_v20 = vshrl.u32 %v1131_v14, 5  ;;  %v1138_v6 = vor.u32 %v1137_v35, %v1136_v25 }
 0x113   :  { %v1141_v12 = vor.u32 %v1140_v26, %v1139_v29  ;;  %v1144_v18 = vor.u32 %v1143_v13, %v1142_v24  ;;  %v1145_v42 = vshll.u32 %v8678_v47, %v1133_v16  ;;  %v1146_v28 = vshrl.u32 %v8521_v8, %v1134_v17 }
 0x114   :  { %v1091_v21 = vsub.s32 4294967266, %v5726_v30  ;;  %v1284_v32 = vadd.s32 536870912, %v5732_v45  ;;  %v1148_v34 = vshll.u32 %v8521_v8, %v1133_v16  ;;  %v8681_v36 = vmov 1326507024  }
 0x115   :  { %v1149_v41 = vshrl.u32 %v8681_v36, %v1134_v17  ;;  %v977_v44 = vsub.s32 0, %v5730_v23  ;;  %v1147_v31 = vor.u32 %v1146_v28, %v1145_v42  ;;  %v1167_v39 = vshll.u32 %v1127_v52, 8 }
 0x116   :  { %v1435_v14 = vshrl.u32 %v1434_v54, 23  ;;  %v1135_v35 = vshrl.u32 %v8669_v40, %v1134_v17  ;;  %vm1151_vm2 = vcmp.lt.s32.totalorder %v1132_v20, 1  ;;  %vm1154_vm3 = vcmp.lt.s32.totalorder %v1132_v20, 4 }
 0x117   :  { %v1150_v25 = vor.u32 %v1149_v41, %v1148_v34  ;;  %vm1153_vm4 = vcmp.lt.s32.totalorder %v1132_v20, 3  ;;  %v1156_v26 = vsel %vm1154_vm3, %v1144_v18, 2102212464  ;;  %v1159_v29 = vsel %vm1151_vm2, %v1138_v6, %v1141_v12 }
 0x118   :  { %v1160_v24 = vsel %vm1154_vm3, %v1147_v31, 920167782  ;;  %v5752_v13 = vshrl.u32 %v1284_v32, 30  ;;  %vm1152_vm5 = vcmp.lt.s32.totalorder %v1132_v20, 2  ;;  %v1163_v8 = vsel %vm1151_vm2, %v1141_v12, %v1144_v18 }
 0x119   :  { %v1161_v16 = vsel %vm1153_vm4, %v1144_v18, %v1160_v24  ;;  %vm497_vm6 = vcmp.lt.s32.totalorder %v5286_v37, 0  ;;  %vm601_vm7 = vcmp.lt.s32.totalorder %v5292_v43, 0  ;;  %vm809_vm8 = vcmp.lt.s32.totalorder %v5304_v60, 0 }
 0x11a   :  { %8682 = vst [vmem:[#allocation27_spill] sm:$0xff] %v5752_v13  ;;  %v1087_v41 = vsub.s32 32, %v5726_v30  ;;  %v1155_v34 = vsel %vm1151_vm2, %v1135_v35, %v1138_v6  ;;  %v1162_v17 = vsel %vm1152_vm5, %v1159_v29, %v1161_v16  ;;  %v1164_v52 = vsel %vm1154_vm3, %v1150_v25, 1326507024 }
 0x11b   :  { %v1157_v54 = vsel %vm1153_vm4, %v1141_v12, %v1156_v26  ;;  %v1165_v42 = vsel %vm1153_vm4, %v1147_v31, %v1164_v52  ;;  %v5762_v28 = vmul.u32.u64.low %v1167_v39, %v1162_v17  ;;  %v5763_v32 = vmul.u32.u64.high %v1167_v39, %v1162_v17, %v5762_v28 }
 0x11c   :  { %v1092_v18 = vadd.s32 127, %v1091_v21  ;;  %v4404_v24 = vmin.u32 %v977_v44, %v5730_v23  ;;  %v1166_v56 = vsel %vm1152_vm5, %v1163_v8, %v1165_v42  ;;  %v4423_v59 = vadd.s32 4294967169, %v1435_v14 }
 0x11d   :  { %v1071_v6 = vadd.s32 %v5503_v50, %v5510_v0  ;;  %v1286_v35 = vshll.u32 %v5752_v13, 30  ;;  %v5771_v25 = vmul.u32.u64.low %v1167_v39, %v1166_v56  ;;  %v5772_v29 = vmul.u32.u64.high %v1167_v39, %v1166_v56, %v5771_v25 }
 0x11e   :  { %v891_v12 = vxor.u32 2147483648, %v5706_v53  ;;  %v1158_v31 = vsel %vm1152_vm5, %v1155_v34, %v1157_v54  ;;  %v1441_v26 = vadd.s32 1, %v4423_v59  ;;  %v5778_v21 = vadd.f32 %v5715_v49, %v5721_v19 }
 0x11f   :  { %v783_v8 = vand.u32 2147483647, %v5742_v3  ;;  %v785_v44 = vcvt.s32.f32 %v5740_v51  ;;  %v1089_v14 = vshrl.u32 %v1071_v6, %v1087_v41  ;;  %v1177_v50 = vadd.s32 1, %v5763_v32 }
 0x120   :  { %8683 = vst [vmem:[#allocation28_spill] sm:$0xff] %v5778_v21  ;;  %v1093_v0 = vshll.u32 %v1092_v18, 23  ;;  %v979_v16 = vclz %v4404_v24  ;;  %v8526_v56 = vand.u32 2147483647, %v5718_v58  ;;  %vm1442_vm9 = vcmp.gt.s32.totalorder %v1441_v26, 0 }
 0x121   :  { %v5785_v20 = vsub.s32 %v5732_v45, %v1286_v35  ;;  %v1174_v59 = vmul.u32 %v1167_v39, %v1158_v31  ;;  %vm1176_vm10 = vc.u32 %v5772_v29, %v5762_v28  ;;  %v1443_v19 = vsel %vm1442_vm9, %v1441_v26, 0 }
 0x122   :  { %v1088_v3 = vshll.u32 %v5591_v5, %v5726_v30  ;;  %v1178_v51 = vsel %vm1176_vm10, %v1177_v50, %v5763_v32  ;;  %v1445_v41 = vand.u32 31, %v1443_v19  ;;  %v1330_v34 = vand.u32 2139095040, %v5778_v21 }
 0x123   :  { %v8684_v17 = vxor.u32 2147483648, %v5621_v33  ;;  %v8686_v39 = vxor.u32 2147483648, %v5627_v57  ;;  %v5810_v5 = vsel %vm809_vm8, %v891_v12, %v5706_v53  ;;  %v1179_v30 = vadd.s32 %v1178_v51, %v1174_v59 }
 0x124   :  { %8688 = vst [vmem:[#allocation31_spill] sm:$0xff] %v5810_v5  ;;  %v5812_v54 = vmul.f32 %v785_v44, %v783_v8  ;;  %v5814_v42 = vor.u32 %v1089_v14, %v1088_v3  ;;  %v5816_v32 = vor.u32 4788187, %v1093_v0  ;;  %v4405_v18 = vadd.s32 4294967294, %v979_v16 }
 0x125   :  { %v5798_v45 = vsel %vm497_vm6, %v8684_v17, %v5621_v33  ;;  %v5805_v52 = vsel %vm601_vm7, %v8686_v39, %v5627_v57  ;;  %v1446_v33 = vsub.s32 32, %v1445_v41  ;;  %v1289_v24 = vsub.s32 0, %v5785_v20 }
 0x126   :  { %8685 = vst [vmem:[#allocation29_spill] sm:$0xff] %v5798_v45  ;;  %8687 = vst [vmem:[#allocation30_spill] sm:$0xff] %v5805_v52  ;;  %v1180_v6 = vadd.s32 536870912, %v1179_v30  ;;  %v1438_v57 = vand.u32 8388607, %v8526_v56  ;;  %v1448_v35 = vshll.u32 %v8669_v40, %v1445_v41  ;;  %v1451_v25 = vshll.u32 %v8676_v1, %v1445_v41 }
 0x127   :  { %v1449_v53 = vshrl.u32 %v8676_v1, %v1446_v33  ;;  %v1331_v12 = vshrl.u32 %v1330_v34, 23  ;;  %v1452_v26 = vshrl.u32 %v8677_v55, %v1446_v33  ;;  %v1454_v8 = vshll.u32 %v8677_v55, %v1445_v41 }
 0x128   :  { %v5824_v31 = vshrl.u32 %v1180_v6, 30  ;;  %v1455_v44 = vshrl.u32 %v8678_v47, %v1446_v33  ;;  %v1444_v14 = vshrl.u32 %v1443_v19, 5  ;;  %v1457_v50 = vshll.u32 %v8678_v47, %v1445_v41 }
 0x129   :  { %v8690_v0 = vmov 920167782   ;;  %v1450_v51 = vor.u32 %v1449_v53, %v1448_v35  ;;  %v1453_v17 = vor.u32 %v1452_v26, %v1451_v25  ;;  %v1439_v39 = vor.u32 8388608, %v1438_v57 }
 0x12a   :  { %8689 = vst [vmem:[#allocation32_spill] sm:$0xff] %v5824_v31  ;;  %v1458_v16 = vshrl.u32 %v8690_v0, %v1446_v33  ;;  %v1182_v3 = vshll.u32 %v5824_v31, 30  ;;  %v1456_v34 = vor.u32 %v1455_v44, %v1454_v8  ;;  %v1460_v56 = vshll.u32 %v8690_v0, %v1445_v41 }
 0x12b   :  { %v1461_v13 = vshrl.u32 %v8681_v36, %v1446_v33  ;;  %vm4406_vm11 = vcmp.lt.s32.totalorder %v4405_v18, 0  ;;  %v4416_v19 = vmin.u32 %v1289_v24, %v5785_v20  ;;  %v1447_v5 = vshrl.u32 %v8669_v40, %v1446_v33 }
 0x12c   :  { %v1459_v6 = vor.u32 %v1458_v16, %v1457_v50  ;;  %v4419_v60 = vadd.s32 4294967169, %v1331_v12  ;;  %v5837_v52 = vsub.s32 %v1179_v30, %v1182_v3  ;;  %vm1463_vm12 = vcmp.lt.s32.totalorder %v1444_v14, 1  ;;  %v123_v12 = vpop.permute.xlu1 %122 }
 0x12d   :  { %v1462_v59 = vor.u32 %v1461_v13, %v1460_v56  ;;  %vm1466_vm13 = vcmp.lt.s32.totalorder %v1444_v14, 4  ;;  %vm1465_vm14 = vcmp.lt.s32.totalorder %v1444_v14, 3  ;;  %v1471_v53 = vsel %vm1463_vm12, %v1450_v51, %v1453_v17 }
 0x12e   :  { %v1468_v35 = vsel %vm1466_vm13, %v1456_v34, 2102212464  ;;  %v1472_v57 = vsel %vm1466_vm13, %v1459_v6, 920167782  ;;  %vm1464_vm15 = vcmp.lt.s32.totalorder %v1444_v14, 2  ;;  %v1475_v41 = vsel %vm1463_vm12, %v1453_v17, %v1456_v34 }
 0x12f   :  { %v1473_v25 = vsel %vm1465_vm14, %v1456_v34, %v1472_v57  ;;  %v1479_v26 = vshll.u32 %v1439_v39, 8  ;;  %v982_v8 = vsel %vm4406_vm11, 0, %v4405_v18  ;;  %v1467_v44 = vsel %vm1463_vm12, %v1447_v5, %v1450_v51 }
 0x130   :  { %v1474_v24 = vsel %vm1464_vm15, %v1471_v53, %v1473_v25  ;;  %v1476_v33 = vsel %vm1466_vm13, %v1462_v59, 1326507024  ;;  %v1469_v30 = vsel %vm1465_vm14, %v1453_v17, %v1468_v35  ;;  %v1291_v16 = vclz %v4416_v19 }
 0x131   :  { %v1477_v50 = vsel %vm1465_vm14, %v1459_v6, %v1476_v33  ;;  %v5841_v13 = vmul.u32.u64.low %v1479_v26, %v1474_v24  ;;  %v5842_v56 = vmul.u32.u64.high %v1479_v26, %v1474_v24, %v5841_v13  ;;  %v1185_v3 = vsub.s32 0, %v5837_v52 }
 0x132   :  { %v1478_v57 = vsel %vm1464_vm15, %v1475_v41, %v1477_v50  ;;  %v1337_v34 = vadd.s32 1, %v4419_v60  ;;  %v1095_v39 = vand.u32 2147483647, %v5816_v32  ;;  %v232_v59 = vmul.f32 %v5696_v10, %v123_v12 }
 0x133   :  { %v5848_v18 = vmul.u32.u64.low %v1479_v26, %v1478_v57  ;;  %v5849_v5 = vmul.u32.u64.high %v1479_v26, %v1478_v57, %v5848_v18  ;;  %v983_v51 = vsub.s32 32, %v982_v8  ;;  %v987_v17 = vsub.s32 4294967266, %v982_v8 }
 0x134   :  { %v1470_v6 = vsel %vm1464_vm15, %v1467_v44, %v1469_v30  ;;  %vm1338_vm0 = vcmp.gt.s32.totalorder %v1337_v34, 0  ;;  %v1097_v35 = vcvt.s32.f32 %v5814_v42  ;;  %v1489_v19 = vadd.s32 1, %v5842_v56 }
 0x135   :  { %v8691_v53 = vand.u32 2147483647, %v5778_v21  ;;  %v1339_v60 = vsel %vm1338_vm0, %v1337_v34, 0  ;;  %v967_v32 = vadd.s32 %v5605_v4, %v5603_v61  ;;  %v4417_v41 = vadd.s32 4294967294, %v1291_v16 }
 0x136   :  { %v4412_v24 = vmin.u32 %v1185_v3, %v5837_v52  ;;  %v1341_v33 = vand.u32 31, %v1339_v60  ;;  %v5861_v14 = vmul.f32 %v1097_v35, %v1095_v39  ;;  %v1486_v44 = vmul.u32 %v1479_v26, %v1470_v6 }
 0x137   :  { %v1334_v25 = vand.u32 8388607, %v8691_v53  ;;  %vm1488_vm1 = vc.u32 %v5849_v5, %v5841_v13  ;;  %v984_v42 = vshll.u32 %v5730_v23, %v982_v8  ;;  %v985_v30 = vshrl.u32 %v967_v32, %v983_v51 }
 0x138   :  { %v5866_v50 = vadd.s32 127, %v987_v17  ;;  %v1490_v57 = vsel %vm1488_vm1, %v1489_v19, %v5842_v56  ;;  %v1342_v16 = vsub.s32 32, %v1341_v33  ;;  %v5870_v3 = vadd.f32 %v5715_v49, %v232_v59 }
 0x139   :  { %v1491_v61 = vadd.s32 %v1490_v57, %v1486_v44  ;;  %v1335_v4 = vor.u32 8388608, %v1334_v25  ;;  %vm4418_vm2 = vcmp.lt.s32.totalorder %v4417_v41, 0  ;;  %v1187_v34 = vclz %v4412_v24 }
 0x13a   :  { %8692 = vst [vmem:[#allocation33_spill] sm:$0xff] %v5870_v3  ;;  %v1340_v39 = vshrl.u32 %v1339_v60, 5  ;;  %v1344_v26 = vshll.u32 %v8669_v40, %v1341_v33  ;;  %v1345_v6 = vshrl.u32 %v8676_v1, %v1342_v16  ;;  %v1347_v23 = vshll.u32 %v8676_v1, %v1341_v33 }
 0x13b   :  { %v1492_v18 = vadd.s32 536870912, %v1491_v61  ;;  %v1348_v8 = vshrl.u32 %v8677_v55, %v1342_v16  ;;  %v1350_v56 = vshll.u32 %v8677_v55, %v1341_v33  ;;  %v1351_v51 = vshrl.u32 %v8678_v47, %v1342_v16 }
 0x13c   :  { %v1353_v17 = vshll.u32 %v8678_v47, %v1341_v33  ;;  %v1354_v59 = vshrl.u32 %v8690_v0, %v1342_v16  ;;  %v5880_v35 = vor.u32 %v985_v30, %v984_v42  ;;  %v1346_v19 = vor.u32 %v1345_v6, %v1344_v26 }
 0x13d   :  { %v1349_v53 = vor.u32 %v1348_v8, %v1347_v23  ;;  %v1642_v25 = vand.u32 2139095040, %v5870_v3  ;;  %v989_v60 = vshll.u32 %v5866_v50, 23  ;;  %v1352_v32 = vor.u32 %v1351_v51, %v1350_v56 }
 0x13e   :  { %v1355_v24 = vor.u32 %v1354_v59, %v1353_v17  ;;  %v5886_v57 = vsel %vm4418_vm2, 0, %v4417_v41  ;;  %v5888_v12 = vshrl.u32 %v1492_v18, 30  ;;  %v1356_v31 = vshll.u32 %v8690_v0, %v1341_v33 }
 0x13f   :  { %v1357_v42 = vshrl.u32 %v8681_v36, %v1342_v16  ;;  %v4413_v30 = vadd.s32 4294967294, %v1187_v34  ;;  %vm1359_vm3 = vcmp.lt.s32.totalorder %v1340_v39, 1  ;;  %vm1362_vm4 = vcmp.lt.s32.totalorder %v1340_v39, 4  ;;  %v118_v34 = vpop.permute.xlu0 %117 }
 0x140   :  { %8693 = vst [vmem:[#allocation34_spill] sm:$0xff] %v5888_v12  ;;  %v1375_v26 = vshll.u32 %v1335_v4, 8  ;;  %v1364_v23 = vsel %vm1362_vm4, %v1352_v32, 2102212464  ;;  %v1367_v50 = vsel %vm1359_vm3, %v1346_v19, %v1349_v53  ;;  %v1643_v8 = vshrl.u32 %v1642_v25, 23 }
 0x141   :  { %v1358_v6 = vor.u32 %v1357_v42, %v1356_v31  ;;  %v1343_v56 = vshrl.u32 %v8669_v40, %v1342_v16  ;;  %vm1361_vm5 = vcmp.lt.s32.totalorder %v1340_v39, 3  ;;  %v1368_v41 = vsel %vm1362_vm4, %v1355_v24, 920167782 }
 0x142   :  { %v1371_v18 = vsel %vm1359_vm3, %v1349_v53, %v1352_v32  ;;  %v1494_v51 = vshll.u32 %v5888_v12, 30  ;;  %vm1360_vm9 = vcmp.lt.s32.totalorder %v1340_v39, 2  ;;  %v1369_v33 = vsel %vm1361_vm5, %v1352_v32, %v1368_v41 }
 0x143   :  { %v1372_v17 = vsel %vm1362_vm4, %v1358_v6, 1326507024  ;;  %v1363_v59 = vsel %vm1359_vm3, %v1343_v56, %v1346_v19  ;;  %v1365_v4 = vsel %vm1361_vm5, %v1349_v53, %v1364_v23  ;;  %v1370_v31 = vsel %vm1360_vm9, %v1367_v50, %v1369_v33 }
 0x144   :  { %v1373_v42 = vsel %vm1361_vm5, %v1355_v24, %v1372_v17  ;;  %v1299_v25 = vsub.s32 4294967266, %v5886_v57  ;;  %v5900_v44 = vmul.u32.u64.low %v1375_v26, %v1370_v31  ;;  %v5901_v43 = vmul.u32.u64.high %v1375_v26, %v1370_v31, %v5900_v44 }
 0x145   :  { %v1374_v16 = vsel %vm1360_vm9, %v1371_v18, %v1373_v42  ;;  %v4431_v32 = vadd.s32 4294967169, %v1643_v8  ;;  %v231_v6 = vmul.f32 %v5696_v10, %v118_v34  ;;  %v1279_v53 = vadd.s32 %v5686_v11, %v5691_v7 }
 0x146   :  { %v5904_v45 = vmul.u32.u64.low %v1375_v26, %v1374_v16  ;;  %v5905_v12 = vmul.u32.u64.high %v1375_v26, %v1374_v16, %v5904_v45  ;;  %v5911_v24 = vsub.s32 %v1491_v61, %v1494_v51  ;;  %v1366_v23 = vsel %vm1360_vm9, %v1363_v59, %v1365_v4 }
 0x147   :  { %v5914_v50 = vor.u32 4788187, %v989_v60  ;;  %vm4414_vm10 = vcmp.lt.s32.totalorder %v4413_v30, 0  ;;  %v1649_v41 = vadd.s32 1, %v4431_v32  ;;  %v1295_v45 = vsub.s32 32, %v5886_v57 }
 0x148   :  { %v5918_v8 = vadd.s32 127, %v1299_v25  ;;  %v1385_v18 = vadd.s32 1, %v5901_v43  ;;  %v8694_v33 = vand.u32 2147483647, %v5870_v3  ;;  %v1382_v11 = vmul.u32 %v1375_v26, %v1366_v23 }
 0x149   :  { %vm1384_vm11 = vc.u32 %v5905_v12, %v5900_v44  ;;  %vm1650_vm12 = vcmp.gt.s32.totalorder %v1649_v41, 0  ;;  %v5926_v7 = vadd.f32 %v5715_v49, %v231_v6  ;;  %v5928_v61 = vsel %vm4414_vm10, 0, %v4413_v30 }
 0x14a   :  { %v1646_v17 = vand.u32 8388607, %v8694_v33  ;;  %v1497_v39 = vsub.s32 0, %v5911_v24  ;;  %v1386_v60 = vsel %vm1384_vm11, %v1385_v18, %v5901_v43  ;;  %v1651_v51 = vsel %vm1650_vm12, %v1649_v41, 0  ;;  %v133_v18 = vpop.permute.xlu1 %132 }
 0x14b   :  { %v1175_v59 = vadd.s32 %v5762_v28, %v5772_v29  ;;  %v1387_v26 = vadd.s32 %v1386_v60, %v1382_v11  ;;  %v1653_v4 = vand.u32 31, %v1651_v51  ;;  %v5937_v42 = vshrl.u32 %v1279_v53, %v1295_v45 }
 0x14c   :  { %v1647_v25 = vor.u32 8388608, %v1646_v17  ;;  %v1191_v16 = vsub.s32 32, %v5928_v61  ;;  %v1538_v6 = vand.u32 2139095040, %v5926_v7  ;;  %v1195_v23 = vsub.s32 4294967266, %v5928_v61 }
 0x14d   :  { %v1388_v32 = vadd.s32 536870912, %v1387_v26  ;;  %v1654_v43 = vsub.s32 32, %v1653_v4  ;;  %v4424_v28 = vmin.u32 %v1497_v39, %v5911_v24  ;;  %v1652_v29 = vshrl.u32 %v1651_v51, 5 }
 0x14e   :  { %v1656_v41 = vshll.u32 %v8669_v40, %v1653_v4  ;;  %v1659_v45 = vshll.u32 %v8676_v1, %v1653_v4  ;;  %v1662_v11 = vshll.u32 %v8677_v55, %v1653_v4  ;;  %v1665_v19 = vshll.u32 %v8678_v47, %v1653_v4 }
 0x14f   :  { %v5945_v33 = vshrl.u32 %v1388_v32, 30  ;;  %v1657_v53 = vshrl.u32 %v8676_v1, %v1654_v43  ;;  %v1660_v17 = vshrl.u32 %v8677_v55, %v1654_v43  ;;  %v1663_v60 = vshrl.u32 %v8678_v47, %v1654_v43 }
 0x150   :  { %v1666_v39 = vshrl.u32 %v8690_v0, %v1654_v43  ;;  %v1539_v31 = vshrl.u32 %v1538_v6, 23  ;;  %v234_v32 = vmul.f32 %v5696_v10, %v133_v18  ;;  %v1193_v56 = vshrl.u32 %v1175_v59, %v1191_v16 }
 0x151   :  { %8695 = vst [vmem:[#allocation35_spill] sm:$0xff] %v5945_v33  ;;  %v1658_v51 = vor.u32 %v1657_v53, %v1656_v41  ;;  %v1661_v30 = vor.u32 %v1660_v17, %v1659_v45  ;;  %v1196_v34 = vadd.s32 127, %v1195_v23  ;;  %v1664_v37 = vor.u32 %v1663_v60, %v1662_v11 }
 0x152   :  { %v1667_v27 = vor.u32 %v1666_v39, %v1665_v19  ;;  %v1499_v38 = vclz %v4424_v28  ;;  %v1390_v46 = vshll.u32 %v5945_v33, 30  ;;  %v1668_v62 = vshll.u32 %v8690_v0, %v1653_v4 }
 0x153   :  { %v1669_v48 = vshrl.u32 %v8681_v36, %v1654_v43  ;;  %vm1671_vm13 = vcmp.lt.s32.totalorder %v1652_v29, 1  ;;  %vm1674_vm14 = vcmp.lt.s32.totalorder %v1652_v29, 4  ;;  %v1687_v3 = vshll.u32 %v1647_v25, 8 }
 0x154   :  { %vm705_vm15 = vcmp.lt.s32.totalorder %v5368_v2, 0  ;;  %v1676_v59 = vsel %vm1674_vm14, %v1664_v37, 2102212464  ;;  %v1679_v16 = vsel %vm1671_vm13, %v1658_v51, %v1661_v30  ;;  %v4427_v19 = vadd.s32 4294967169, %v1539_v31 }
 0x155   :  { %v1670_v6 = vor.u32 %v1669_v48, %v1668_v62  ;;  %v1655_v23 = vshrl.u32 %v8669_v40, %v1654_v43  ;;  %vm1673_vm0 = vcmp.lt.s32.totalorder %v1652_v29, 3  ;;  %v1680_v4 = vsel %vm1674_vm14, %v1667_v27, 920167782 }
 0x156   :  { %v1683_v28 = vsel %vm1671_vm13, %v1661_v30, %v1664_v37  ;;  %vm1017_vm1 = vcmp.lt.s32.totalorder %v5414_v15, 0  ;;  %v5966_v25 = vsub.s32 %v1387_v26, %v1390_v46  ;;  %vm1672_vm2 = vcmp.lt.s32.totalorder %v1652_v29, 2 }
 0x157   :  { %v1681_v18 = vsel %vm1673_vm0, %v1664_v37, %v1680_v4  ;;  %v1684_v48 = vsel %vm1674_vm14, %v1670_v6, 1326507024  ;;  %v1675_v62 = vsel %vm1671_vm13, %v1655_v23, %v1658_v51  ;;  %v1677_v53 = vsel %vm1673_vm0, %v1661_v30, %v1676_v59 }
 0x158   :  { %v1682_v45 = vsel %vm1672_vm2, %v1679_v16, %v1681_v18  ;;  %v1685_v31 = vsel %vm1673_vm0, %v1667_v27, %v1684_v48  ;;  %v4425_v17 = vadd.s32 4294967294, %v1499_v38  ;;  %v1197_v39 = vshll.u32 %v1196_v34, 23 }
 0x159   :  { %v1686_v43 = vsel %vm1672_vm2, %v1683_v28, %v1685_v31  ;;  %v5970_v11 = vmul.u32.u64.low %v1687_v3, %v1682_v45  ;;  %v5971_v60 = vmul.u32.u64.high %v1687_v3, %v1682_v45, %v5970_v11  ;;  %v1545_v46 = vadd.s32 1, %v4427_v19 }
 0x15a   :  { %v5974_v41 = vmul.u32.u64.low %v1687_v3, %v1686_v43  ;;  %v5975_v33 = vmul.u32.u64.high %v1687_v3, %v1686_v43, %v5974_v41  ;;  %v1192_v37 = vshll.u32 %v5837_v52, %v5928_v61  ;;  %v1393_v26 = vsub.s32 0, %v5966_v25 }
 0x15b   :  { %v1678_v29 = vsel %vm1672_vm2, %v1675_v62, %v1677_v53  ;;  %v8696_v30 = vand.u32 2147483647, %v5926_v7  ;;  %v8697_v38 = vand.u32 2147483647, %v5914_v50  ;;  %v8698_v51 = vcvt.s32.f32 %v5880_v35 }
 0x15c   :  { %v8699_v34 = vshll.u32 %v5785_v20, %v5886_v57  ;;  %v8700_v52 = vshll.u32 %v5918_v8, 23  ;;  %vm1546_vm3 = vcmp.gt.s32.totalorder %v1545_v46, 0  ;;  %v5998_v59 = vor.u32 %v1193_v56, %v1192_v37 }
 0x15d   :  { %v1542_v27 = vand.u32 8388607, %v8696_v30  ;;  %v5986_v6 = vmul.f32 %v8698_v51, %v8697_v38  ;;  %vm4426_vm4 = vcmp.lt.s32.totalorder %v4425_v17, 0  ;;  %v1697_v50 = vadd.s32 1, %v5971_v60 }
 0x15e   :  { %v5992_v41 = vor.u32 %v5937_v42, %v8699_v34  ;;  %v5996_v61 = vor.u32 4788187, %v8700_v52  ;;  %v1547_v16 = vsel %vm1546_vm3, %v1545_v46, 0  ;;  %v8701_v35 = vxor.u32 2147483648, %v5812_v54 }
 0x15f   :  { %v6008_v57 = vor.u32 4788187, %v1197_v39  ;;  %v1694_v42 = vmul.u32 %v1687_v3, %v1678_v29  ;;  %vm1696_vm5 = vc.u32 %v5975_v33, %v5970_v11  ;;  %v4420_v56 = vmin.u32 %v1393_v26, %v5966_v25 }
 0x160   :  { %v6006_v20 = vsel %vm705_vm15, %v8701_v35, %v5812_v54  ;;  %v1698_v8 = vsel %vm1696_vm5, %v1697_v50, %v5971_v60  ;;  %v1543_v19 = vor.u32 8388608, %v1542_v27  ;;  %v6015_v23 = vadd.f32 %v5715_v49, %v234_v32 }
 0x161   :  { %8702 = vst [vmem:[#allocation36_spill] sm:$0xff] %v6006_v20  ;;  %v8704_v4 = vxor.u32 2147483648, %v5861_v14  ;;  %v6024_v28 = vsel %vm4426_vm4, 0, %v4425_v17  ;;  %v1699_v3 = vadd.s32 %v1698_v8, %v1694_v42  ;;  %v1549_v18 = vand.u32 31, %v1547_v16 }
 0x162   :  { %8703 = vst [vmem:[#allocation37_spill] sm:$0xff] %v6015_v23  ;;  %v995_v48 = vxor.u32 2147483648, %v5986_v6  ;;  %v1303_v62 = vand.u32 2147483647, %v5996_v61  ;;  %v1305_v53 = vcvt.s32.f32 %v5992_v41  ;;  %v1201_v32 = vcvt.s32.f32 %v5998_v59 }
 0x163   :  { %v6022_v54 = vsel %vm1017_vm1, %v8704_v4, %v5861_v14  ;;  %v1199_v45 = vand.u32 2147483647, %v6008_v57  ;;  %v1700_v31 = vadd.s32 536870912, %v1699_v3  ;;  %v1548_v43 = vshrl.u32 %v1547_v16, 5 }
 0x164   :  { %8705 = vst [vmem:[#allocation38_spill] sm:$0xff] %v6022_v54  ;;  %v1550_v60 = vsub.s32 32, %v1549_v18  ;;  %v1503_v14 = vsub.s32 32, %v6024_v28  ;;  %v1395_v39 = vclz %v4420_v56  ;;  %v6032_v17 = vshll.u32 %v1543_v19, 8 }
 0x165   :  { %v1850_v46 = vand.u32 2139095040, %v6015_v23  ;;  %v1552_v37 = vshll.u32 %v8669_v40, %v1549_v18  ;;  %v1555_v29 = vshll.u32 %v8676_v1, %v1549_v18  ;;  %v1558_v27 = vshll.u32 %v8677_v55, %v1549_v18 }
 0x166   :  { %v1553_v26 = vshrl.u32 %v8676_v1, %v1550_v60  ;;  %v1556_v30 = vshrl.u32 %v8677_v55, %v1550_v60  ;;  %v1559_v38 = vshrl.u32 %v8678_v47, %v1550_v60  ;;  %v1561_v51 = vshll.u32 %v8678_v47, %v1549_v18 }
 0x167   :  { %v1562_v34 = vshrl.u32 %v8690_v0, %v1550_v60  ;;  %v6043_v41 = vshrl.u32 %v1700_v31, 30  ;;  %vm1567_vm9 = vcmp.lt.s32.totalorder %v1548_v43, 1  ;;  %v1564_v16 = vshll.u32 %v8690_v0, %v1549_v18 }
 0x168   :  { %v1554_v52 = vor.u32 %v1553_v26, %v1552_v37  ;;  %v1557_v61 = vor.u32 %v1556_v30, %v1555_v29  ;;  %v1560_v59 = vor.u32 %v1559_v38, %v1558_v27  ;;  %v1565_v35 = vshrl.u32 %v8681_v36, %v1550_v60  ;;  %v128_v26 = vpop.permute.xlu0 %127 }
 0x169   :  { %8706 = vst [vmem:[#allocation39_spill] sm:$0xff] %v6043_v41  ;;  %v1563_v50 = vor.u32 %v1562_v34, %v1561_v51  ;;  %v1551_v57 = vshrl.u32 %v8669_v40, %v1550_v60  ;;  %vm1569_vm10 = vcmp.lt.s32.totalorder %v1548_v43, 3  ;;  %vm1570_vm11 = vcmp.lt.s32.totalorder %v1548_v43, 4 }
 0x16a   :  { %v1575_v42 = vsel %vm1567_vm9, %v1554_v52, %v1557_v61  ;;  %v1566_v56 = vor.u32 %v1565_v35, %v1564_v16  ;;  %v1572_v8 = vsel %vm1570_vm11, %v1560_v59, 2102212464  ;;  %v1851_v4 = vshrl.u32 %v1850_v46, 23 }
 0x16b   :  { %v1576_v19 = vsel %vm1570_vm11, %v1563_v50, 920167782  ;;  %vm913_vm12 = vcmp.lt.s32.totalorder %v5461_v22, 0  ;;  %v1702_v31 = vshll.u32 %v6043_v41, 30  ;;  %vm1568_vm13 = vcmp.lt.s32.totalorder %v1548_v43, 2 }
 0x16c   :  { %v1577_v37 = vsel %vm1569_vm10, %v1560_v59, %v1576_v19  ;;  %v1579_v18 = vsel %vm1567_vm9, %v1557_v61, %v1560_v59  ;;  %v1507_v60 = vsub.s32 4294967266, %v6024_v28  ;;  %v1571_v29 = vsel %vm1567_vm9, %v1551_v57, %v1554_v52 }
 0x16d   :  { %v1578_v30 = vsel %vm1568_vm13, %v1575_v42, %v1577_v37  ;;  %v1580_v27 = vsel %vm1570_vm11, %v1566_v56, 1326507024  ;;  %v1573_v38 = vsel %vm1569_vm10, %v1557_v61, %v1572_v8  ;;  %v4421_v16 = vadd.s32 4294967294, %v1395_v39 }
 0x16e   :  { %v1581_v46 = vsel %vm1569_vm10, %v1563_v50, %v1580_v27  ;;  %v6059_v51 = vmul.u32.u64.low %v6032_v17, %v1578_v30  ;;  %v6060_v34 = vmul.u32.u64.high %v6032_v17, %v1578_v30, %v6059_v51  ;;  %v4439_v35 = vadd.s32 4294967169, %v1851_v4 }
 0x16f   :  { %v1582_v59 = vsel %vm1568_vm13, %v1579_v18, %v1581_v46  ;;  %v233_v19 = vmul.f32 %v5696_v10, %v128_v26  ;;  %v1487_v52 = vadd.s32 %v5841_v13, %v5849_v5  ;;  %v6067_v57 = vsub.s32 %v1699_v3, %v1702_v31 }
 0x170   :  { %v6070_v61 = vmul.u32.u64.low %v6032_v17, %v1582_v59  ;;  %v6071_v42 = vmul.u32.u64.high %v6032_v17, %v1582_v59, %v6070_v61  ;;  %v6073_v50 = vmul.f32 %v1305_v53, %v1303_v62  ;;  %v6075_v56 = vmul.f32 %v1201_v32, %v1199_v45  ;;  %v143_v62 = vpop.permute.xlu1 %142 }
 0x171   :  { %v1574_v39 = vsel %vm1568_vm13, %v1571_v29, %v1573_v38  ;;  %v1857_v8 = vadd.s32 1, %v4439_v35  ;;  %v1504_v4 = vshll.u32 %v5911_v24, %v6024_v28  ;;  %v1505_v37 = vshrl.u32 %v1487_v52, %v1503_v14 }
 0x172   :  { %v1508_v18 = vadd.s32 127, %v1507_v60  ;;  %v1593_v13 = vadd.s32 1, %v6060_v34  ;;  %vm4422_vm14 = vcmp.lt.s32.totalorder %v4421_v16, 0  ;;  %v8551_v5 = vand.u32 2147483647, %v6015_v23 }
 0x173   :  { %vm1858_vm0 = vcmp.gt.s32.totalorder %v1857_v8, 0  ;;  %v6083_v3 = vadd.f32 %v5715_v49, %v233_v19  ;;  %v1705_v53 = vsub.s32 0, %v6067_v57  ;;  %v1590_v32 = vmul.u32 %v6032_v17, %v1574_v39 }
 0x174   :  { %vm1592_vm2 = vc.u32 %v6071_v42, %v6059_v51  ;;  %v1859_v24 = vsel %vm1858_vm0, %v1857_v8, 0  ;;  %v6094_v28 = vsel %vm913_vm12, %v995_v48, %v5986_v6  ;;  %v6099_v26 = vor.u32 %v1505_v37, %v1504_v4 }
 0x175   :  { %8707 = vst [vmem:[#allocation40_spill] sm:$0xff] %v6083_v3  ;;  %8708 = vst [vmem:[#allocation41_spill] sm:$0xff] %v6094_v28  ;;  %v1594_v43 = vsel %vm1592_vm2, %v1593_v13, %v6060_v34  ;;  %v1861_v14 = vand.u32 31, %v1859_v24  ;;  %v6104_v60 = vmul.f32 %v5696_v10, %v143_v62  ;;  %v1509_v29 = vshll.u32 %v1508_v18, 23 }
 0x176   :  { %v6101_v17 = vadd.s32 %v1594_v43, %v1590_v32  ;;  %v6107_v30 = vsel %vm4422_vm14, 0, %v4421_v16  ;;  %v1854_v6 = vand.u32 8388607, %v8551_v5  ;;  %v4432_v27 = vmin.u32 %v1705_v53, %v6067_v57 }
 0x177   :  { %v1862_v48 = vsub.s32 32, %v1861_v14  ;;  %v1864_v38 = vshll.u32 %v8669_v40, %v1861_v14  ;;  %v1867_v46 = vshll.u32 %v8676_v1, %v1861_v14  ;;  %v1746_v34 = vand.u32 2139095040, %v6083_v3 }
 0x178   :  { %v1870_v35 = vshll.u32 %v8677_v55, %v1861_v14  ;;  %v1596_v19 = vadd.s32 536870912, %v6101_v17  ;;  %v1860_v52 = vshrl.u32 %v1859_v24, 5  ;;  %v1873_v61 = vshll.u32 %v8678_v47, %v1861_v14 }
 0x179   :  { %v1865_v59 = vshrl.u32 %v8676_v1, %v1862_v48  ;;  %v1868_v10 = vshrl.u32 %v8677_v55, %v1862_v48  ;;  %v1871_v16 = vshrl.u32 %v8678_v47, %v1862_v48  ;;  %v1874_v39 = vshrl.u32 %v8690_v0, %v1862_v48 }
 0x17a   :  { %v6122_v8 = vor.u32 4788187, %v1509_v29  ;;  %v1399_v13 = vsub.s32 32, %v6107_v30  ;;  %v1403_v62 = vsub.s32 4294967266, %v6107_v30  ;;  %v1707_v53 = vclz %v4432_v27 }
 0x17b   :  { %v1866_v4 = vor.u32 %v1865_v59, %v1864_v38  ;;  %v1869_v37 = vor.u32 %v1868_v10, %v1867_v46  ;;  %v1872_v18 = vor.u32 %v1871_v16, %v1870_v35  ;;  %v1875_v32 = vor.u32 %v1874_v39, %v1873_v61 }
 0x17c   :  { %v1855_v43 = vor.u32 8388608, %v1854_v6  ;;  %v1876_v5 = vshll.u32 %v8690_v0, %v1861_v14  ;;  %v1877_v24 = vshrl.u32 %v8681_v36, %v1862_v48  ;;  %v1747_v31 = vshrl.u32 %v1746_v34, 23 }
 0x17d   :  { %v6128_v45 = vshrl.u32 %v1596_v19, 30  ;;  %vm1879_vm3 = vcmp.lt.s32.totalorder %v1860_v52, 1  ;;  %vm1881_vm4 = vcmp.lt.s32.totalorder %v1860_v52, 3  ;;  %vm1882_vm5 = vcmp.lt.s32.totalorder %v1860_v52, 4 }
 0x17e   :  { %v1878_v29 = vor.u32 %v1877_v24, %v1876_v5  ;;  %v1884_v38 = vsel %vm1882_vm5, %v1872_v18, 2102212464  ;;  %v1887_v46 = vsel %vm1879_vm3, %v1866_v4, %v1869_v37  ;;  %v1888_v59 = vsel %vm1882_vm5, %v1875_v32, 920167782 }
 0x17f   :  { %8709 = vst [vmem:[#allocation42_spill] sm:$0xff] %v6128_v45  ;;  %vm1225_vm9 = vcmp.lt.s32.totalorder %v5552_v9, 0  ;;  %vm1121_vm10 = vcmp.lt.s32.totalorder %v5615_v63, 0  ;;  %v4433_v6 = vadd.s32 4294967294, %v1707_v53  ;;  %v1863_v14 = vshrl.u32 %v8669_v40, %v1862_v48 }
 0x180   :  { %vm1880_vm11 = vcmp.lt.s32.totalorder %v1860_v52, 2  ;;  %v1889_v27 = vsel %vm1881_vm4, %v1872_v18, %v1888_v59  ;;  %v1891_v10 = vsel %vm1879_vm3, %v1869_v37, %v1872_v18  ;;  %v1892_v35 = vsel %vm1882_vm5, %v1878_v29, 1326507024 }
 0x181   :  { %v1890_v34 = vsel %vm1880_vm11, %v1887_v46, %v1889_v27  ;;  %v1895_v5 = vshll.u32 %v1855_v43, 8  ;;  %v1598_v16 = vshll.u32 %v6128_v45, 30  ;;  %v1883_v19 = vsel %vm1879_vm3, %v1863_v14, %v1866_v4 }
 0x182   :  { %v1885_v61 = vsel %vm1881_vm4, %v1869_v37, %v1884_v38  ;;  %v1893_v39 = vsel %vm1881_vm4, %v1875_v32, %v1892_v35  ;;  %v4435_v59 = vadd.s32 4294967169, %v1747_v31  ;;  %v1513_v46 = vcvt.s32.f32 %v6099_v26 }
 0x183   :  { %v1894_v53 = vsel %vm1880_vm11, %v1891_v10, %v1893_v39  ;;  %v6142_v48 = vmul.u32.u64.low %v1895_v5, %v1890_v34  ;;  %v6143_v24 = vmul.u32.u64.high %v1895_v5, %v1890_v34, %v6142_v48  ;;  %v1383_v18 = vadd.s32 %v5900_v44, %v5905_v12 }
 0x184   :  { %v6149_v43 = vmul.u32.u64.low %v1895_v5, %v1894_v53  ;;  %v6150_v29 = vmul.u32.u64.high %v1895_v5, %v1894_v53, %v6149_v43  ;;  %v1511_v4 = vand.u32 2147483647, %v6122_v8  ;;  %vm4434_vm13 = vcmp.lt.s32.totalorder %v4433_v6, 0 }
 0x185   :  { %v1886_v37 = vsel %vm1880_vm11, %v1883_v19, %v1885_v61  ;;  %v1753_v32 = vadd.s32 1, %v4435_v59  ;;  %v1400_v38 = vshll.u32 %v5966_v25, %v6107_v30  ;;  %v1401_v14 = vshrl.u32 %v1383_v18, %v1399_v13 }
 0x186   :  { %v1404_v27 = vadd.s32 127, %v1403_v62  ;;  %v6158_v31 = vadd.f32 %v5715_v49, %v6104_v60  ;;  %v6161_v12 = vsub.s32 %v6101_v17, %v1598_v16  ;;  %v1905_v44 = vadd.s32 1, %v6143_v24 }
 0x187   :  { %v8552_v26 = vand.u32 2147483647, %v6083_v3  ;;  %vm1754_vm14 = vcmp.gt.s32.totalorder %v1753_v32, 0  ;;  %v6165_v52 = vsel %vm4434_vm13, 0, %v4433_v6  ;;  %v1902_v8 = vmul.u32 %v1895_v5, %v1886_v37 }
 0x188   :  { %8710 = vst [vmem:[#allocation43_spill] sm:$0xff] %v6158_v31  ;;  %vm1904_vm0 = vc.u32 %v6150_v29, %v6142_v48  ;;  %v1755_v25 = vsel %vm1754_vm14, %v1753_v32, 0  ;;  %v8711_v30 = vxor.u32 2147483648, %v6073_v50  ;;  %v8713_v17 = vxor.u32 2147483648, %v6075_v56 }
 0x189   :  { %v1906_v13 = vsel %vm1904_vm0, %v1905_v44, %v6143_v24  ;;  %v1757_v62 = vand.u32 31, %v1755_v25  ;;  %v6184_v6 = vmul.f32 %v1513_v46, %v1511_v4  ;;  %v6186_v34 = vor.u32 %v1401_v14, %v1400_v38 }
 0x18a   :  { %v6174_v49 = vsel %vm1225_vm9, %v8711_v30, %v6073_v50  ;;  %v6181_v60 = vsel %vm1121_vm10, %v8713_v17, %v6075_v56  ;;  %v1405_v10 = vshll.u32 %v1404_v27, 23  ;;  %v1907_v35 = vadd.s32 %v1906_v13, %v1902_v8 }
 0x18b   :  { %8712 = vst [vmem:[#allocation44_spill] sm:$0xff] %v6174_v49  ;;  %8714 = vst [vmem:[#allocation45_spill] sm:$0xff] %v6181_v60  ;;  %v1715_v5 = vsub.s32 4294967266, %v6165_v52  ;;  %v1601_v50 = vsub.s32 0, %v6161_v12  ;;  %v1750_v16 = vand.u32 8388607, %v8552_v26  ;;  %v1760_v56 = vshll.u32 %v8669_v40, %v1757_v62 }
 0x18c   :  { %v1758_v19 = vsub.s32 32, %v1757_v62  ;;  %v1908_v61 = vadd.s32 536870912, %v1907_v35  ;;  %v1763_v39 = vshll.u32 %v8676_v1, %v1757_v62  ;;  %v2058_v53 = vand.u32 2139095040, %v6158_v31 }
 0x18d   :  { %v1766_v46 = vshll.u32 %v8677_v55, %v1757_v62  ;;  %v1756_v4 = vshrl.u32 %v1755_v25, 5  ;;  %v1769_v37 = vshll.u32 %v8678_v47, %v1757_v62  ;;  %v1406_v38 = vor.u32 4788187, %v1405_v10 }
 0x18e   :  { %v1761_v24 = vshrl.u32 %v8676_v1, %v1758_v19  ;;  %v1764_v59 = vshrl.u32 %v8677_v55, %v1758_v19  ;;  %v1767_v18 = vshrl.u32 %v8678_v47, %v1758_v19  ;;  %v6199_v43 = vshrl.u32 %v1908_v61, 30 }
 0x18f   :  { %v1770_v32 = vshrl.u32 %v8690_v0, %v1758_v19  ;;  %v1711_v8 = vsub.s32 32, %v6165_v52  ;;  %v1716_v30 = vadd.s32 127, %v1715_v5  ;;  %v4428_v26 = vmin.u32 %v1601_v50, %v6161_v12 }
 0x190   :  { %8715 = vst [vmem:[#allocation46_spill] sm:$0xff] %v6199_v43  ;;  %v1762_v14 = vor.u32 %v1761_v24, %v1760_v56  ;;  %v1765_v27 = vor.u32 %v1764_v59, %v1763_v39  ;;  %v1768_v44 = vor.u32 %v1767_v18, %v1766_v46  ;;  %v1910_v17 = vshll.u32 %v6199_v43, 30 }
 0x191   :  { %v1771_v13 = vor.u32 %v1770_v32, %v1769_v37  ;;  %v1751_v41 = vor.u32 8388608, %v1750_v16  ;;  %v1772_v61 = vshll.u32 %v8690_v0, %v1757_v62  ;;  %v1773_v25 = vshrl.u32 %v8681_v36, %v1758_v19 }
 0x192   :  { %vm1775_vm2 = vcmp.lt.s32.totalorder %v1756_v4, 1  ;;  %vm1777_vm3 = vcmp.lt.s32.totalorder %v1756_v4, 3  ;;  %vm1778_vm4 = vcmp.lt.s32.totalorder %v1756_v4, 4  ;;  %v2059_v10 = vshrl.u32 %v2058_v53, 23 }
 0x193   :  { %v1774_v56 = vor.u32 %v1773_v25, %v1772_v61  ;;  %v1780_v39 = vsel %vm1778_vm4, %v1768_v44, 2102212464  ;;  %v1783_v24 = vsel %vm1775_vm2, %v1762_v14, %v1765_v27  ;;  %v1784_v59 = vsel %vm1778_vm4, %v1771_v13, 920167782 }
 0x194   :  { %vm8579_vm5 = vcmp.lt.s32.totalorder %v5718_v58, 0  ;;  %v6210_v5 = vsub.s32 %v1907_v35, %v1910_v17  ;;  %v1759_v50 = vshrl.u32 %v8669_v40, %v1758_v19  ;;  %vm1776_vm11 = vcmp.lt.s32.totalorder %v1756_v4, 2 }
 0x195   :  { %v1785_v62 = vsel %vm1777_vm3, %v1768_v44, %v1784_v59  ;;  %v1787_v46 = vsel %vm1775_vm2, %v1765_v27, %v1768_v44  ;;  %v1788_v18 = vsel %vm1778_vm4, %v1774_v56, 1326507024  ;;  %v1791_v53 = vshll.u32 %v1751_v41, 8 }
 0x196   :  { %v1786_v16 = vsel %vm1776_vm11, %v1783_v24, %v1785_v62  ;;  %v1603_v37 = vclz %v4428_v26  ;;  %v1779_v32 = vsel %vm1775_vm2, %v1759_v50, %v1762_v14  ;;  %v1781_v61 = vsel %vm1777_vm3, %v1765_v27, %v1780_v39 }
 0x197   :  { %v1789_v25 = vsel %vm1777_vm3, %v1771_v13, %v1788_v18  ;;  %v6220_v17 = vmul.u32.u64.low %v1791_v53, %v1786_v16  ;;  %v6221_v19 = vmul.u32.u64.high %v1791_v53, %v1786_v16, %v6220_v17  ;;  %v4447_v59 = vadd.s32 4294967169, %v2059_v10 }
 0x198   :  { %v1790_v35 = vsel %vm1776_vm11, %v1787_v46, %v1789_v25  ;;  %v1695_v24 = vadd.s32 %v5970_v11, %v5975_v33  ;;  %v1913_v44 = vsub.s32 0, %v6210_v5  ;;  %v1515_v14 = vxor.u32 2147483648, %v6184_v6 }
 0x199   :  { %v6227_v41 = vmul.u32.u64.low %v1791_v53, %v1790_v35  ;;  %v6228_v26 = vmul.u32.u64.high %v1791_v53, %v1790_v35, %v6227_v41  ;;  %v1407_v27 = vand.u32 2147483647, %v1406_v38  ;;  %v1782_v13 = vsel %vm1776_vm11, %v1779_v32, %v1781_v61  ;;  %v138_v38 = vpop.permute.xlu0 %137 }
 0x19a   :  { %v2065_v56 = vadd.s32 1, %v4447_v59  ;;  %v1409_v39 = vcvt.s32.f32 %v6186_v34  ;;  %v1713_v50 = vshrl.u32 %v1695_v24, %v1711_v8  ;;  %v1717_v62 = vshll.u32 %v1716_v30, 23  ;;  %v153_v34 = vpop.permute.xlu1 %152 }
 0x19b   :  { %v8555_v10 = vand.u32 2147483647, %v6158_v31  ;;  %v1712_v33 = vshll.u32 %v6067_v57, %v6165_v52  ;;  %v4429_v11 = vadd.s32 4294967294, %v1603_v37  ;;  %v1801_v16 = vadd.s32 1, %v6221_v19 }
 0x19c   :  { %vm2066_vm13 = vcmp.gt.s32.totalorder %v2065_v56, 0  ;;  %v4440_v46 = vmin.u32 %v1913_v44, %v6210_v5  ;;  %v1798_v18 = vmul.u32 %v1791_v53, %v1782_v13  ;;  %vm1800_vm14 = vc.u32 %v6228_v26, %v6220_v17 }
 0x19d   :  { %v2067_v4 = vsel %vm2066_vm13, %v2065_v56, 0  ;;  %v6243_v8 = vsel %vm8579_vm5, %v1515_v14, %v6184_v6  ;;  %v6245_v30 = vmul.f32 %v1409_v39, %v1407_v27  ;;  %v1802_v57 = vsel %vm1800_vm14, %v1801_v16, %v6221_v19  ;;  %v6257_v6 = vld [vmem:[%s8486_s1] ss:$0 sm:$0xff] }
 0x19e   :  { %8716 = vst [vmem:[#allocation47_spill] sm:$0xff] %v6243_v8  ;;  %v2069_v52 = vand.u32 31, %v2067_v4  ;;  %v6248_v37 = vor.u32 %v1713_v50, %v1712_v33  ;;  %v6250_v32 = vor.u32 4788187, %v1717_v62  ;;  %v1803_v53 = vadd.s32 %v1802_v57, %v1798_v18 }
 0x19f   :  { %v2062_v61 = vand.u32 8388607, %v8555_v10  ;;  %vm4430_vm0 = vcmp.lt.s32.totalorder %v4429_v11, 0  ;;  %v235_v35 = vmul.f32 %v6257_v6, %v138_v38  ;;  %v238_v19 = vmul.f32 %v6257_v6, %v153_v34 }
 0x1a0   :  { %v2070_v25 = vsub.s32 32, %v2069_v52  ;;  %v1915_v59 = vclz %v4440_v46  ;;  %v1804_v24 = vadd.s32 536870912, %v1803_v53  ;;  %v2072_v44 = vshll.u32 %v8669_v40, %v2069_v52 }
 0x1a1   :  { %v2075_v41 = vshll.u32 %v8676_v1, %v2069_v52  ;;  %v2078_v13 = vshll.u32 %v8677_v55, %v2069_v52  ;;  %v2068_v50 = vshrl.u32 %v2067_v4, 5  ;;  %v2081_v62 = vshll.u32 %v8678_v47, %v2069_v52 }
 0x1a2   :  { %v2073_v14 = vshrl.u32 %v8676_v1, %v2070_v25  ;;  %v2076_v27 = vshrl.u32 %v8677_v55, %v2070_v25  ;;  %v2079_v56 = vshrl.u32 %v8678_v47, %v2070_v25  ;;  %v6267_v39 = vshrl.u32 %v1804_v24, 30  ;;  %v6278_v24 = vld [vmem:[%s8486_s1 + $0x1] ss:$0 sm:$0xff] }
 0x1a3   :  { %v2082_v33 = vshrl.u32 %v8690_v0, %v2070_v25  ;;  %v6272_v16 = vsel %vm4430_vm0, 0, %v4429_v11  ;;  %v2063_v57 = vor.u32 8388608, %v2062_v61  ;;  %v6281_v4 = vadd.f32 %v6278_v24, %v235_v35 }
 0x1a4   :  { %8717 = vst [vmem:[#allocation48_spill] sm:$0xff] %v6267_v39  ;;  %v2074_v46 = vor.u32 %v2073_v14, %v2072_v44  ;;  %v2077_v18 = vor.u32 %v2076_v27, %v2075_v41  ;;  %v2080_v38 = vor.u32 %v2079_v56, %v2078_v13  ;;  %v1806_v34 = vshll.u32 %v6267_v39, 30 }
 0x1a5   :  { %v2083_v10 = vor.u32 %v2082_v33, %v2081_v62  ;;  %8718 = vst [vmem:[#allocation49_spill] sm:$0xff] %v6281_v4  ;;  %v4441_v43 = vadd.s32 4294967294, %v1915_v59  ;;  %v2084_v45 = vshll.u32 %v8690_v0, %v2069_v52  ;;  %v2085_v11 = vshrl.u32 %v8681_v36, %v2070_v25 }
 0x1a6   :  { %v6286_v44 = vadd.f32 %v6278_v24, %v238_v19  ;;  %v6288_v41 = vsub.s32 %v1803_v53, %v1806_v34  ;;  %vm2087_vm2 = vcmp.lt.s32.totalorder %v2068_v50, 1  ;;  %vm2089_vm3 = vcmp.lt.s32.totalorder %v2068_v50, 3 }
 0x1a7   :  { %vm2090_vm4 = vcmp.lt.s32.totalorder %v2068_v50, 4  ;;  %v2086_v61 = vor.u32 %v2085_v11, %v2084_v45  ;;  %v2095_v27 = vsel %vm2087_vm2, %v2074_v46, %v2077_v18  ;;  %vm8580_vm11 = vcmp.lt.s32.totalorder %v5778_v21, 0 }
 0x1a8   :  { %8719 = vst [vmem:[#allocation50_spill] sm:$0xff] %v6286_v44  ;;  %v2092_v14 = vsel %vm2090_vm4, %v2080_v38, 2102212464  ;;  %v2096_v13 = vsel %vm2090_vm4, %v2083_v10, 920167782  ;;  %v2071_v35 = vshrl.u32 %v8669_v40, %v2070_v25  ;;  %vm2088_vm13 = vcmp.lt.s32.totalorder %v2068_v50, 2 }
 0x1a9   :  { %v2097_v52 = vsel %vm2089_vm3, %v2080_v38, %v2096_v13  ;;  %v2103_v59 = vshll.u32 %v2063_v57, 8  ;;  %v1809_v19 = vsub.s32 0, %v6288_v41  ;;  %v2099_v56 = vsel %vm2087_vm2, %v2077_v18, %v2080_v38 }
 0x1aa   :  { %v2098_v53 = vsel %vm2088_vm13, %v2095_v27, %v2097_v52  ;;  %v2100_v62 = vsel %vm2090_vm4, %v2086_v61, 1326507024  ;;  %vm4442_vm14 = vcmp.lt.s32.totalorder %v4441_v43, 0  ;;  %v2091_v45 = vsel %vm2087_vm2, %v2071_v35, %v2074_v46 }
 0x1ab   :  { %v2093_v33 = vsel %vm2089_vm3, %v2077_v18, %v2092_v14  ;;  %v2101_v34 = vsel %vm2089_vm3, %v2083_v10, %v2100_v62  ;;  %v1611_v25 = vsub.s32 4294967266, %v6272_v16  ;;  %v1411_v27 = vxor.u32 2147483648, %v6245_v30 }
 0x1ac   :  { %v2102_v11 = vsel %vm2088_vm13, %v2099_v56, %v2101_v34  ;;  %v6302_v13 = vmul.u32.u64.low %v2103_v59, %v2098_v53  ;;  %v6303_v57 = vmul.u32.u64.high %v2103_v59, %v2098_v53, %v6302_v13  ;;  %v1591_v38 = vadd.s32 %v6059_v51, %v6071_v42 }
 0x1ad   :  { %v6309_v61 = vmul.u32.u64.low %v2103_v59, %v2102_v11  ;;  %v6310_v52 = vmul.u32.u64.high %v2103_v59, %v2102_v11, %v6309_v61  ;;  %v6312_v46 = vsel %vm4442_vm14, 0, %v4441_v43  ;;  %v4436_v10 = vmin.u32 %v1809_v19, %v6288_v41  ;;  %v148_v11 = vpop.permute.xlu0 %147 }
 0x1ae   :  { %v2094_v18 = vsel %vm2088_vm13, %v2091_v45, %v2093_v33  ;;  %v1954_v14 = vand.u32 2139095040, %v6281_v4  ;;  %v1719_v35 = vand.u32 2147483647, %v6250_v32  ;;  %v1721_v53 = vcvt.s32.f32 %v6248_v37 }
 0x1af   :  { %v1607_v56 = vsub.s32 32, %v6272_v16  ;;  %v2266_v62 = vand.u32 2139095040, %v6286_v44  ;;  %v1612_v51 = vadd.s32 127, %v1611_v25  ;;  %v2113_v42 = vadd.s32 1, %v6303_v57 }
 0x1b0   :  { %v1955_v34 = vshrl.u32 %v1954_v14, 23  ;;  %v1923_v50 = vsub.s32 4294967266, %v6312_v46  ;;  %v2110_v19 = vmul.u32 %v2103_v59, %v2094_v18  ;;  %vm2112_vm0 = vc.u32 %v6310_v52, %v6302_v13 }
 0x1b1   :  { %v2267_v32 = vshrl.u32 %v2266_v62, 23  ;;  %v6329_v37 = vsel %vm8580_vm11, %v1411_v27, %v6245_v30  ;;  %v1811_v45 = vclz %v4436_v10  ;;  %v2114_v33 = vsel %vm2112_vm0, %v2113_v42, %v6303_v57 }
 0x1b2   :  { %8720 = vst [vmem:[#allocation51_spill] sm:$0xff] %v6329_v37  ;;  %v4443_v25 = vadd.s32 4294967169, %v1955_v34  ;;  %v6332_v61 = vmul.f32 %v1721_v53, %v1719_v35  ;;  %v1609_v14 = vshrl.u32 %v1591_v38, %v1607_v56  ;;  %v2115_v43 = vadd.s32 %v2114_v33, %v2110_v19 }
 0x1b3   :  { %v237_v39 = vmul.f32 %v6257_v6, %v148_v11  ;;  %v1613_v59 = vshll.u32 %v1612_v51, 23  ;;  %v1919_v18 = vsub.s32 32, %v6312_v46  ;;  %v4455_v62 = vadd.s32 4294967169, %v2267_v32 }
 0x1b4   :  { %v1961_v8 = vadd.s32 1, %v4443_v25  ;;  %v1608_v58 = vshll.u32 %v6161_v12, %v6272_v16  ;;  %v6338_v30 = vadd.s32 127, %v1923_v50  ;;  %v2116_v27 = vadd.s32 536870912, %v2115_v43 }
 0x1b5   :  { %v8721_v57 = vand.u32 2147483647, %v6281_v4  ;;  %v1903_v38 = vadd.s32 %v6142_v48, %v6150_v29  ;;  %v4437_v35 = vadd.s32 4294967294, %v1811_v45  ;;  %v2273_v53 = vadd.s32 1, %v4455_v62 }
 0x1b6   :  { %vm1962_vm2 = vcmp.gt.s32.totalorder %v1961_v8, 0  ;;  %v6345_v51 = vor.u32 %v1609_v14, %v1608_v58  ;;  %v6347_v42 = vshrl.u32 %v2116_v27, 30  ;;  %v6349_v12 = vor.u32 4788187, %v1613_v59 }
 0x1b7   :  { %v1958_v10 = vand.u32 8388607, %v8721_v57  ;;  %v1963_v34 = vsel %vm1962_vm2, %v1961_v8, 0  ;;  %v1921_v16 = vshrl.u32 %v1903_v38, %v1919_v18  ;;  %v6352_v50 = vadd.f32 %v6278_v24, %v237_v39 }
 0x1b8   :  { %8722 = vst [vmem:[#allocation52_spill] sm:$0xff] %v6347_v42  ;;  %v1965_v11 = vand.u32 31, %v1963_v34  ;;  %v1925_v19 = vshll.u32 %v6338_v30, 23  ;;  %v2118_v48 = vshll.u32 %v6347_v42, 30  ;;  %vm4438_vm3 = vcmp.lt.s32.totalorder %v4437_v35, 0 }
 0x1b9   :  { %8723 = vst [vmem:[#allocation53_spill] sm:$0xff] %v6352_v50  ;;  %v1959_v29 = vor.u32 8388608, %v1958_v10  ;;  %v1964_v58 = vshrl.u32 %v1963_v34, 5  ;;  %vm2274_vm4 = vcmp.gt.s32.totalorder %v2273_v53, 0  ;;  %v6371_v10 = vsel %vm4438_vm3, 0, %v4437_v35 }
 0x1ba   :  { %v1966_v45 = vsub.s32 32, %v1965_v11  ;;  %v6357_v33 = vsub.s32 %v2115_v43, %v2118_v48  ;;  %v1968_v8 = vshll.u32 %v8669_v40, %v1965_v11  ;;  %v1971_v25 = vshll.u32 %v8676_v1, %v1965_v11 }
 0x1bb   :  { %v1974_v39 = vshll.u32 %v8677_v55, %v1965_v11  ;;  %v1977_v62 = vshll.u32 %v8678_v47, %v1965_v11  ;;  %v1980_v43 = vshll.u32 %v8690_v0, %v1965_v11  ;;  %v1999_v37 = vshll.u32 %v1959_v29, 8 }
 0x1bc   :  { %v1969_v14 = vshrl.u32 %v8676_v1, %v1966_v45  ;;  %v1972_v59 = vshrl.u32 %v8677_v55, %v1966_v45  ;;  %v1975_v18 = vshrl.u32 %v8678_v47, %v1966_v45  ;;  %v2121_v30 = vsub.s32 0, %v6357_v33 }
 0x1bd   :  { %v1978_v27 = vshrl.u32 %v8690_v0, %v1966_v45  ;;  %v1981_v57 = vshrl.u32 %v8681_v36, %v1966_v45  ;;  %v1967_v21 = vshrl.u32 %v8669_v40, %v1966_v45  ;;  %vm1983_vm13 = vcmp.lt.s32.totalorder %v1964_v58, 1 }
 0x1be   :  { %v1970_v38 = vor.u32 %v1969_v14, %v1968_v8  ;;  %v1973_v34 = vor.u32 %v1972_v59, %v1971_v25  ;;  %v1976_v48 = vor.u32 %v1975_v18, %v1974_v39  ;;  %v4448_v56 = vmin.u32 %v2121_v30, %v6357_v33 }
 0x1bf   :  { %v1979_v32 = vor.u32 %v1978_v27, %v1977_v62  ;;  %v1982_v42 = vor.u32 %v1981_v57, %v1980_v43  ;;  %vm1986_vm14 = vcmp.lt.s32.totalorder %v1964_v58, 4  ;;  %v2275_v49 = vsel %vm2274_vm4, %v2273_v53, 0 }
 0x1c0   :  { %vm1984_vm0 = vcmp.lt.s32.totalorder %v1964_v58, 2  ;;  %vm1985_vm2 = vcmp.lt.s32.totalorder %v1964_v58, 3  ;;  %v1988_v11 = vsel %vm1986_vm14, %v1976_v48, 2102212464  ;;  %v1991_v9 = vsel %vm1983_vm13, %v1970_v38, %v1973_v34 }
 0x1c1   :  { %v1987_v35 = vsel %vm1983_vm13, %v1967_v21, %v1970_v38  ;;  %v1992_v60 = vsel %vm1986_vm14, %v1979_v32, 920167782  ;;  %v1995_v8 = vsel %vm1983_vm13, %v1973_v34, %v1976_v48  ;;  %v1996_v25 = vsel %vm1986_vm14, %v1982_v42, 1326507024 }
 0x1c2   :  { %v2123_v39 = vclz %v4448_v56  ;;  %v1989_v14 = vsel %vm1985_vm2, %v1973_v34, %v1988_v11  ;;  %v1993_v59 = vsel %vm1985_vm2, %v1976_v48, %v1992_v60  ;;  %v1997_v18 = vsel %vm1985_vm2, %v1979_v32, %v1996_v25 }
 0x1c3   :  { %v1819_v29 = vsub.s32 4294967266, %v6371_v10  ;;  %v1994_v45 = vsel %vm1984_vm0, %v1991_v9, %v1993_v59  ;;  %v1998_v62 = vsel %vm1984_vm0, %v1995_v8, %v1997_v18  ;;  %v8724_v53 = vand.u32 2147483647, %v6286_v44 }
 0x1c4   :  { %v1920_v27 = vshll.u32 %v6210_v5, %v6312_v46  ;;  %v6383_v21 = vmul.u32.u64.low %v1999_v37, %v1998_v62  ;;  %v6384_v43 = vmul.u32.u64.high %v1999_v37, %v1998_v62, %v6383_v21  ;;  %v2277_v42 = vand.u32 31, %v2275_v49 }
 0x1c5   :  { %v2270_v30 = vand.u32 8388607, %v8724_v53  ;;  %v1990_v60 = vsel %vm1984_vm0, %v1987_v35, %v1989_v14  ;;  %v6388_v32 = vmul.u32.u64.low %v1999_v37, %v1994_v45  ;;  %v6389_v57 = vmul.u32.u64.high %v1999_v37, %v1994_v45, %v6388_v32 }
 0x1c6   :  { %v6393_v38 = vor.u32 %v1921_v16, %v1920_v27  ;;  %v4449_v34 = vadd.s32 4294967294, %v2123_v39  ;;  %v2278_v48 = vsub.s32 32, %v2277_v42  ;;  %v6395_v11 = vor.u32 4788187, %v1925_v19 }
 0x1c7   :  { %v6397_v5 = vadd.s32 127, %v1819_v29  ;;  %v2271_v46 = vor.u32 8388608, %v2270_v30  ;;  %v2162_v8 = vand.u32 2139095040, %v6352_v50  ;;  %v2006_v25 = vmul.u32 %v1999_v37, %v1990_v60 }
 0x1c8   :  { %vm2008_vm3 = vc.u32 %v6384_v43, %v6388_v32  ;;  %v2276_v58 = vshrl.u32 %v2275_v49, 5  ;;  %v2280_v35 = vshll.u32 %v8669_v40, %v2277_v42  ;;  %v2009_v14 = vadd.s32 1, %v6389_v57 }
 0x1c9   :  { %v2281_v16 = vshrl.u32 %v8676_v1, %v2278_v48  ;;  %v2283_v39 = vshll.u32 %v8676_v1, %v2277_v42  ;;  %v2284_v19 = vshrl.u32 %v8677_v55, %v2278_v48  ;;  %vm4450_vm4 = vcmp.lt.s32.totalorder %v4449_v34, 0 }
 0x1ca   :  { %v2286_v59 = vshll.u32 %v8677_v55, %v2277_v42  ;;  %v2287_v18 = vshrl.u32 %v8678_v47, %v2278_v48  ;;  %v2290_v37 = vshrl.u32 %v8690_v0, %v2278_v48  ;;  %v2010_v29 = vsel %vm2008_vm3, %v2009_v14, %v6389_v57 }
 0x1cb   :  { %v2282_v49 = vor.u32 %v2281_v16, %v2280_v35  ;;  %v2285_v45 = vor.u32 %v2284_v19, %v2283_v39  ;;  %v2289_v62 = vshll.u32 %v8678_v47, %v2277_v42  ;;  %v2011_v53 = vadd.s32 %v2010_v29, %v2006_v25 }
 0x1cc   :  { %v2288_v30 = vor.u32 %v2287_v18, %v2286_v59  ;;  %v2311_v27 = vshll.u32 %v2271_v46, 8  ;;  %v2163_v21 = vshrl.u32 %v2162_v8, 23  ;;  %v6412_v60 = vsel %vm4450_vm4, 0, %v4449_v34  ;;  %v163_v59 = vpop.permute.xlu1 %162 }
 0x1cd   :  { %v2291_v56 = vor.u32 %v2290_v37, %v2289_v62  ;;  %v2292_v9 = vshll.u32 %v8690_v0, %v2277_v42  ;;  %v2293_v63 = vshrl.u32 %v8681_v36, %v2278_v48  ;;  %v2012_v54 = vadd.s32 536870912, %v2011_v53 }
 0x1ce   :  { %vm2295_vm13 = vcmp.lt.s32.totalorder %v2276_v58, 1  ;;  %vm2297_vm14 = vcmp.lt.s32.totalorder %v2276_v58, 3  ;;  %vm2298_vm0 = vcmp.lt.s32.totalorder %v2276_v58, 4  ;;  %v2279_v46 = vshrl.u32 %v8669_v40, %v2278_v48 }
 0x1cf   :  { %v2294_v57 = vor.u32 %v2293_v63, %v2292_v9  ;;  %v2300_v35 = vsel %vm2298_vm0, %v2288_v30, 2102212464  ;;  %v2303_v14 = vsel %vm2295_vm13, %v2282_v49, %v2285_v45  ;;  %v2304_v16 = vsel %vm2298_vm0, %v2291_v56, 920167782 }
 0x1d0   :  { %v6417_v25 = vshrl.u32 %v2012_v54, 30  ;;  %vm2296_vm2 = vcmp.lt.s32.totalorder %v2276_v58, 2  ;;  %v2305_v34 = vsel %vm2297_vm14, %v2288_v30, %v2304_v16  ;;  %v2307_v8 = vsel %vm2295_vm13, %v2285_v45, %v2288_v30 }
 0x1d1   :  { %v2306_v42 = vsel %vm2296_vm2, %v2303_v14, %v2305_v34  ;;  %v2308_v39 = vsel %vm2298_vm0, %v2294_v57, 1326507024  ;;  %v4451_v19 = vadd.s32 4294967169, %v2163_v21  ;;  %v2299_v9 = vsel %vm2295_vm13, %v2279_v46, %v2282_v49 }
 0x1d2   :  { %8725 = vst [vmem:[#allocation54_spill] sm:$0xff] %v6417_v25  ;;  %v2014_v63 = vshll.u32 %v6417_v25, 30  ;;  %v2301_v18 = vsel %vm2297_vm14, %v2285_v45, %v2300_v35  ;;  %v2309_v54 = vsel %vm2297_vm14, %v2291_v56, %v2308_v39  ;;  %v2131_v48 = vsub.s32 4294967266, %v6412_v60 }
 0x1d3   :  { %v2310_v37 = vsel %vm2296_vm2, %v2307_v8, %v2309_v54  ;;  %v6429_v29 = vmul.u32.u64.low %v2311_v27, %v2306_v42  ;;  %v6430_v62 = vmul.u32.u64.high %v2311_v27, %v2306_v42, %v6429_v29  ;;  %v240_v14 = vmul.f32 %v6257_v6, %v163_v59  ;;  %v158_v42 = vpop.permute.xlu0 %157 }
 0x1d4   :  { %v6433_v30 = vsub.s32 %v2011_v53, %v2014_v63  ;;  %v6435_v21 = vmul.u32.u64.low %v2311_v27, %v2310_v37  ;;  %v6436_v57 = vmul.u32.u64.high %v2311_v27, %v2310_v37, %v6435_v21  ;;  %v1929_v49 = vcvt.s32.f32 %v6393_v38 }
 0x1d5   :  { %v1799_v56 = vadd.s32 %v6220_v17, %v6228_v26  ;;  %v2302_v45 = vsel %vm2296_vm2, %v2299_v9, %v2301_v18  ;;  %v2169_v35 = vadd.s32 1, %v4451_v19  ;;  %v1927_v16 = vand.u32 2147483647, %v6395_v11 }
 0x1d6   :  { %v1815_v46 = vsub.s32 32, %v6371_v10  ;;  %v2017_v53 = vsub.s32 0, %v6433_v30  ;;  %v8572_v34 = vand.u32 2147483647, %v6352_v50  ;;  %v1821_v8 = vshll.u32 %v6397_v5, 23 }
 0x1d7   :  { %v2132_v39 = vadd.s32 127, %v2131_v48  ;;  %v2321_v38 = vadd.s32 1, %v6430_v62  ;;  %vm2170_vm3 = vcmp.gt.s32.totalorder %v2169_v35, 0  ;;  %v2318_v26 = vmul.u32 %v2311_v27, %v2302_v45 }
 0x1d8   :  { %v4444_v17 = vmin.u32 %v2017_v53, %v6433_v30  ;;  %vm2320_vm4 = vc.u32 %v6436_v57, %v6429_v29  ;;  %v2171_v11 = vsel %vm2170_vm3, %v2169_v35, 0  ;;  %v8726_v58 = vand.u32 2147483647, %v6349_v12 }
 0x1d9   :  { %v8727_v19 = vcvt.s32.f32 %v6345_v51  ;;  %v2322_v63 = vsel %vm2320_vm4, %v2321_v38, %v6430_v62  ;;  %v2173_v5 = vand.u32 31, %v2171_v11  ;;  %v6460_v9 = vmul.f32 %v6257_v6, %v158_v42 }
 0x1da   :  { %v6462_v18 = vmul.f32 %v1929_v49, %v1927_v16  ;;  %v1816_v27 = vshll.u32 %v6288_v41, %v6371_v10  ;;  %v1817_v54 = vshrl.u32 %v1799_v56, %v1815_v46  ;;  %v2323_v48 = vadd.s32 %v2322_v63, %v2318_v26 }
 0x1db   :  { %v6456_v59 = vmul.f32 %v8727_v19, %v8726_v58  ;;  %v6466_v37 = vor.u32 4788187, %v1821_v8  ;;  %v2127_v12 = vsub.s32 32, %v6412_v60  ;;  %v2166_v51 = vand.u32 8388607, %v8572_v34  ;;  %v8730_v34 = vld [vmem:[#allocation33_spill] sm:$0xff] }
 0x1dc   :  { %v2174_v21 = vsub.s32 32, %v2173_v5  ;;  %v2133_v62 = vshll.u32 %v2132_v39, 23  ;;  %v2019_v45 = vclz %v4444_v17  ;;  %v2324_v35 = vadd.s32 536870912, %v2323_v48 }
 0x1dd   :  { %v6472_v53 = vadd.f32 %v6278_v24, %v240_v14  ;;  %v2176_v49 = vshll.u32 %v8669_v40, %v2173_v5  ;;  %v2179_v16 = vshll.u32 %v8676_v1, %v2173_v5  ;;  %v2182_v46 = vshll.u32 %v8677_v55, %v2173_v5 }
 0x1de   :  { %v2177_v41 = vshrl.u32 %v8676_v1, %v2174_v21  ;;  %v2180_v10 = vshrl.u32 %v8677_v55, %v2174_v21  ;;  %v2183_v56 = vshrl.u32 %v8678_v47, %v2174_v21  ;;  %v2186_v42 = vshrl.u32 %v8690_v0, %v2174_v21 }
 0x1df   :  { %8728 = vst [vmem:[#allocation55_spill] sm:$0xff] %v6472_v53  ;;  %v2189_v8 = vshrl.u32 %v8681_v36, %v2174_v21  ;;  %v6482_v39 = vshrl.u32 %v2324_v35, 30  ;;  %v2172_v14 = vshrl.u32 %v2171_v11, 5  ;;  %v2185_v38 = vshll.u32 %v8678_v47, %v2173_v5 }
 0x1e0   :  { %v2188_v17 = vshll.u32 %v8690_v0, %v2173_v5  ;;  %v2167_v26 = vor.u32 8388608, %v2166_v51  ;;  %v2178_v58 = vor.u32 %v2177_v41, %v2176_v49  ;;  %v2181_v19 = vor.u32 %v2180_v10, %v2179_v16 }
 0x1e1   :  { %8729 = vst [vmem:[#allocation56_spill] sm:$0xff] %v6482_v39  ;;  %v2184_v63 = vor.u32 %v2183_v56, %v2182_v46  ;;  %vm8600_vm13 = vcmp.lt.s32.totalorder %v8730_v34, 0  ;;  %v2111_v25 = vadd.s32 %v6302_v13, %v6310_v52  ;;  %v2187_v15 = vor.u32 %v2186_v42, %v2185_v38 }
 0x1e2   :  { %v2190_v28 = vor.u32 %v2189_v8, %v2188_v17  ;;  %v2474_v22 = vand.u32 2139095040, %v6472_v53  ;;  %v1818_v35 = vor.u32 %v1817_v54, %v1816_v27  ;;  %v1823_v11 = vand.u32 2147483647, %v6466_v37 }
 0x1e3   :  { %v2128_v20 = vshll.u32 %v6357_v33, %v6412_v60  ;;  %v4445_v5 = vadd.s32 4294967294, %v2019_v45  ;;  %v2129_v51 = vshrl.u32 %v2111_v25, %v2127_v12  ;;  %v2326_v49 = vshll.u32 %v6482_v39, 30 }
 0x1e4   :  { %vm2191_vm14 = vcmp.lt.s32.totalorder %v2172_v14, 1  ;;  %vm2194_vm0 = vcmp.lt.s32.totalorder %v2172_v14, 4  ;;  %v2134_v41 = vor.u32 4788187, %v2133_v62  ;;  %v2207_v52 = vshll.u32 %v2167_v26, 8 }
 0x1e5   :  { %v2196_v10 = vsel %vm2194_vm0, %v2184_v63, 2102212464  ;;  %v2199_v13 = vsel %vm2191_vm14, %v2178_v58, %v2181_v19  ;;  %v2200_v56 = vsel %vm2194_vm0, %v2187_v15, 920167782  ;;  %v2203_v16 = vsel %vm2191_vm14, %v2181_v19, %v2184_v63 }
 0x1e6   :  { %v2204_v27 = vsel %vm2194_vm0, %v2190_v28, 1326507024  ;;  %v2475_v54 = vshrl.u32 %v2474_v22, 23  ;;  %vm4446_vm2 = vcmp.lt.s32.totalorder %v4445_v5, 0  ;;  %v2175_v37 = vshrl.u32 %v8669_v40, %v2174_v21 }
 0x1e7   :  { %vm2192_vm3 = vcmp.lt.s32.totalorder %v2172_v14, 2  ;;  %vm2193_vm4 = vcmp.lt.s32.totalorder %v2172_v14, 3  ;;  %vm8601_vm5 = vcmp.lt.s32.totalorder %v5926_v7, 0  ;;  %vm8586_vm11 = vcmp.lt.s32.totalorder %v6015_v23, 0 }
 0x1e8   :  { %v6499_v33 = vsub.s32 %v2323_v48, %v2326_v49  ;;  %v2201_v60 = vsel %vm2193_vm4, %v2184_v63, %v2200_v56  ;;  %v2205_v25 = vsel %vm2193_vm4, %v2187_v15, %v2204_v27  ;;  %v4463_v12 = vadd.s32 4294967169, %v2475_v54 }
 0x1e9   :  { %v2195_v62 = vsel %vm2191_vm14, %v2175_v37, %v2178_v58  ;;  %v2197_v45 = vsel %vm2193_vm4, %v2181_v19, %v2196_v10  ;;  %v2202_v28 = vsel %vm2192_vm3, %v2199_v13, %v2201_v60  ;;  %v2206_v22 = vsel %vm2192_vm3, %v2203_v16, %v2205_v25 }
 0x1ea   :  { %v6504_v46 = vmul.u32.u64.low %v2207_v52, %v2206_v22  ;;  %v6505_v21 = vmul.u32.u64.high %v2207_v52, %v2206_v22, %v6504_v46  ;;  %v6507_v42 = vmul.u32.u64.low %v2207_v52, %v2202_v28  ;;  %v6508_v8 = vmul.u32.u64.high %v2207_v52, %v2202_v28, %v6507_v42 }
 0x1eb   :  { %v8731_v48 = vxor.u32 2147483648, %v6332_v61  ;;  %v1825_v38 = vcvt.s32.f32 %v1818_v35  ;;  %v2130_v17 = vor.u32 %v2129_v51, %v2128_v20  ;;  %v2481_v26 = vadd.s32 1, %v4463_v12 }
 0x1ec   :  { %v6519_v58 = vsel %vm4446_vm2, 0, %v4445_v5  ;;  %v2329_v19 = vsub.s32 0, %v6499_v33  ;;  %v2198_v63 = vsel %vm2192_vm3, %v2195_v62, %v2197_v45  ;;  %v6525_v49 = vadd.f32 %v6278_v24, %v6460_v9 }
 0x1ed   :  { %v6516_v15 = vsel %vm8600_vm13, %v8731_v48, %v6332_v61  ;;  %v1619_v10 = vxor.u32 2147483648, %v6456_v59  ;;  %v1931_v13 = vxor.u32 2147483648, %v6462_v18  ;;  %v6529_v61 = vmul.f32 %v1825_v38, %v1823_v11 }
 0x1ee   :  { %vm2482_vm14 = vcmp.gt.s32.totalorder %v2481_v26, 0  ;;  %v2135_v20 = vand.u32 2147483647, %v2134_v41  ;;  %vm2216_vm0 = vc.u32 %v6505_v21, %v6507_v42  ;;  %v2217_v35 = vadd.s32 1, %v6508_v8 }
 0x1ef   :  { %v8581_v14 = vand.u32 2147483647, %v6472_v53  ;;  %v2137_v5 = vcvt.s32.f32 %v2130_v17  ;;  %v2023_v51 = vsub.s32 32, %v6519_v58  ;;  %v2027_v9 = vsub.s32 4294967266, %v6519_v58 }
 0x1f0   :  { %v2214_v56 = vmul.u32 %v2207_v52, %v2198_v63  ;;  %v4456_v16 = vmin.u32 %v2329_v19, %v6499_v33  ;;  %v2218_v11 = vsel %vm2216_vm0, %v2217_v35, %v6508_v8  ;;  %v2483_v27 = vsel %vm2482_vm14, %v2481_v26, 0 }
 0x1f1   :  { %v2370_v41 = vand.u32 2139095040, %v6525_v49  ;;  %v6543_v54 = vsel %vm8601_vm5, %v1619_v10, %v6456_v59  ;;  %v6548_v37 = vsel %vm8586_vm11, %v1931_v13, %v6462_v18  ;;  %v2007_v52 = vadd.s32 %v6388_v32, %v6384_v43 }
 0x1f2   :  { %8732 = vst [vmem:[#allocation33_spill] sm:$0xff] %v6548_v37  ;;  %v2219_v60 = vadd.s32 %v2218_v11, %v2214_v56  ;;  %v1827_v25 = vxor.u32 2147483648, %v6529_v61  ;;  %v6553_v12 = vmul.f32 %v2137_v5, %v2135_v20  ;;  %v2478_v62 = vand.u32 8388607, %v8581_v14 }
 0x1f3   :  { %v2485_v45 = vand.u32 31, %v2483_v27  ;;  %v2024_v59 = vshll.u32 %v6433_v30, %v6519_v58  ;;  %v2025_v28 = vshrl.u32 %v2007_v52, %v2023_v51  ;;  %v2028_v46 = vadd.s32 127, %v2027_v9 }
 0x1f4   :  { %v2220_v22 = vadd.s32 536870912, %v2219_v60  ;;  %v2331_v8 = vclz %v4456_v16  ;;  %v2371_v43 = vshrl.u32 %v2370_v41, 23  ;;  %v2484_v38 = vshrl.u32 %v2483_v27, 5 }
 0x1f5   :  { %v2486_v48 = vsub.s32 32, %v2485_v45  ;;  %v2488_v17 = vshll.u32 %v8669_v40, %v2485_v45  ;;  %v2491_v26 = vshll.u32 %v8676_v1, %v2485_v45  ;;  %v2494_v30 = vshll.u32 %v8677_v55, %v2485_v45 }
 0x1f6   :  { %v6560_v32 = vshrl.u32 %v2220_v22, 30  ;;  %v2497_v13 = vshll.u32 %v8678_v47, %v2485_v45  ;;  %v2500_v35 = vshll.u32 %v8690_v0, %v2485_v45  ;;  %vm8587_vm2 = vcmp.lt.s32.totalorder %v6083_v3, 0 }
 0x1f7   :  { %v2489_v19 = vshrl.u32 %v8676_v1, %v2486_v48  ;;  %v2492_v63 = vshrl.u32 %v8677_v55, %v2486_v48  ;;  %v2495_v58 = vshrl.u32 %v8678_v47, %v2486_v48  ;;  %v2498_v20 = vshrl.u32 %v8690_v0, %v2486_v48 }
 0x1f8   :  { %8733 = vst [vmem:[#allocation57_spill] sm:$0xff] %v6560_v32  ;;  %v2222_v10 = vshll.u32 %v6560_v32, 30  ;;  %v2501_v56 = vshrl.u32 %v8681_v36, %v2486_v48  ;;  %v2029_v16 = vshll.u32 %v2028_v46, 23  ;;  %v4457_v11 = vadd.s32 4294967294, %v2331_v8 }
 0x1f9   :  { %v2490_v5 = vor.u32 %v2489_v19, %v2488_v17  ;;  %v2493_v51 = vor.u32 %v2492_v63, %v2491_v26  ;;  %v2496_v9 = vor.u32 %v2495_v58, %v2494_v30  ;;  %v2479_v27 = vor.u32 8388608, %v2478_v62  ;;  %v173_v62 = vpop.permute.xlu1 %172 }
 0x1fa   :  { %v2499_v41 = vor.u32 %v2498_v20, %v2497_v13  ;;  %v2502_v52 = vor.u32 %v2501_v56, %v2500_v35  ;;  %vm2503_vm3 = vcmp.lt.s32.totalorder %v2484_v38, 1  ;;  %vm2506_vm4 = vcmp.lt.s32.totalorder %v2484_v38, 4 }
 0x1fb   :  { %v4459_v22 = vadd.s32 4294967169, %v2371_v43  ;;  %v6574_v14 = vsub.s32 %v2219_v60, %v2222_v10  ;;  %v2487_v18 = vshrl.u32 %v8669_v40, %v2486_v48  ;;  %v2508_v45 = vsel %vm2506_vm4, %v2496_v9, 2102212464 }
 0x1fc   :  { %v2511_v17 = vsel %vm2503_vm3, %v2490_v5, %v2493_v51  ;;  %vm2505_vm14 = vcmp.lt.s32.totalorder %v2484_v38, 3  ;;  %v2512_v26 = vsel %vm2506_vm4, %v2499_v41, 920167782  ;;  %v2515_v19 = vsel %vm2503_vm3, %v2493_v51, %v2496_v9 }
 0x1fd   :  { %v2516_v63 = vsel %vm2506_vm4, %v2502_v52, 1326507024  ;;  %vm2504_vm0 = vcmp.lt.s32.totalorder %v2484_v38, 2  ;;  %v2507_v30 = vsel %vm2503_vm3, %v2487_v18, %v2490_v5  ;;  %v2513_v46 = vsel %vm2505_vm14, %v2496_v9, %v2512_v26  ;;  %v168_v5 = vpop.permute.xlu0 %167 }
 0x1fe   :  { %v2519_v8 = vshll.u32 %v2479_v27, 8  ;;  %v2509_v58 = vsel %vm2505_vm14, %v2493_v51, %v2508_v45  ;;  %v2514_v13 = vsel %vm2504_vm0, %v2511_v17, %v2513_v46  ;;  %v2517_v20 = vsel %vm2505_vm14, %v2499_v41, %v2516_v63 }
 0x1ff   :  { %v2377_v43 = vadd.s32 1, %v4459_v22  ;;  %v2225_v60 = vsub.s32 0, %v6574_v14  ;;  %v2518_v48 = vsel %vm2504_vm0, %v2515_v19, %v2517_v20  ;;  %v242_v18 = vmul.f32 %v6257_v6, %v173_v62 }
 0x200   :  { %v6580_v10 = vmul.u32.u64.low %v2519_v8, %v2514_v13  ;;  %v6581_v35 = vmul.u32.u64.high %v2519_v8, %v2514_v13, %v6580_v10  ;;  %v6584_v56 = vmul.u32.u64.low %v2519_v8, %v2518_v48  ;;  %v6585_v52 = vmul.u32.u64.high %v2519_v8, %v2518_v48, %v6584_v56 }
 0x201   :  { %vm2378_vm3 = vcmp.gt.s32.totalorder %v2377_v43, 0  ;;  %v6588_v51 = vor.u32 %v2025_v28, %v2024_v59  ;;  %v6590_v9 = vor.u32 4788187, %v2029_v16  ;;  %v2510_v27 = vsel %vm2504_vm0, %v2507_v30, %v2509_v58 }
 0x202   :  { %v2379_v41 = vsel %vm2378_vm3, %v2377_v43, 0  ;;  %v6598_v22 = vsel %vm8587_vm2, %v1827_v25, %v6529_v61  ;;  %v8735_v17 = vand.u32 2147483647, %v6525_v49  ;;  %vm4458_vm4 = vcmp.lt.s32.totalorder %v4457_v11, 0 }
 0x203   :  { %8734 = vst [vmem:[#allocation58_spill] sm:$0xff] %v6598_v22  ;;  %v2381_v19 = vand.u32 31, %v2379_v41  ;;  %v4452_v59 = vmin.u32 %v2225_v60, %v6574_v14  ;;  %v2529_v28 = vadd.s32 1, %v6581_v35  ;;  %v6606_v38 = vmul.f32 %v6257_v6, %v168_v5 }
 0x204   :  { %v2374_v26 = vand.u32 8388607, %v8735_v17  ;;  %v2526_v16 = vmul.u32 %v2519_v8, %v2510_v27  ;;  %vm2528_vm14 = vc.u32 %v6585_v52, %v6580_v10  ;;  %v6611_v25 = vadd.f32 %v6278_v24, %v242_v18 }
 0x205   :  { %v2382_v61 = vsub.s32 32, %v2381_v19  ;;  %v6617_v46 = vadd.s32 %v6429_v29, %v6436_v57  ;;  %v2530_v62 = vsel %vm2528_vm14, %v2529_v28, %v6581_v35  ;;  %v6620_v58 = vsel %vm4458_vm4, 0, %v4457_v11 }
 0x206   :  { %8736 = vst [vmem:[#allocation59_spill] sm:$0xff] %v6611_v25  ;;  %v2531_v8 = vadd.s32 %v2530_v62, %v2526_v16  ;;  %v2375_v13 = vor.u32 8388608, %v2374_v26  ;;  %v2227_v43 = vclz %v4452_v59  ;;  %v2384_v60 = vshll.u32 %v8669_v40, %v2381_v19 }
 0x207   :  { %v2385_v20 = vshrl.u32 %v8676_v1, %v2382_v61  ;;  %v2387_v48 = vshll.u32 %v8676_v1, %v2381_v19  ;;  %v2388_v56 = vshrl.u32 %v8677_v55, %v2382_v61  ;;  %v2390_v5 = vshll.u32 %v8677_v55, %v2381_v19 }
 0x208   :  { %v2532_v18 = vadd.s32 536870912, %v2531_v8  ;;  %v2391_v29 = vshrl.u32 %v8678_v47, %v2382_v61  ;;  %v2682_v57 = vand.u32 2139095040, %v6611_v25  ;;  %v2335_v11 = vsub.s32 32, %v6620_v58 }
 0x209   :  { %v2380_v35 = vshrl.u32 %v2379_v41, 5  ;;  %v2386_v27 = vor.u32 %v2385_v20, %v2384_v60  ;;  %v2389_v17 = vor.u32 %v2388_v56, %v2387_v48  ;;  %v2393_v28 = vshll.u32 %v8678_v47, %v2381_v19 }
 0x20a   :  { %v6630_v26 = vshrl.u32 %v2532_v18, 30  ;;  %v2392_v59 = vor.u32 %v2391_v29, %v2390_v5  ;;  %v2394_v16 = vshrl.u32 %v8690_v0, %v2382_v61  ;;  %v2339_v62 = vsub.s32 4294967266, %v6620_v58 }
 0x20b   :  { %v2396_v45 = vshll.u32 %v8690_v0, %v2381_v19  ;;  %v2397_v30 = vshrl.u32 %v8681_v36, %v2382_v61  ;;  %v2415_v63 = vshll.u32 %v2375_v13, 8  ;;  %v4453_v39 = vadd.s32 4294967294, %v2227_v43 }
 0x20c   :  { %8737 = vst [vmem:[#allocation60_spill] sm:$0xff] %v6630_v26  ;;  %v2534_v32 = vshll.u32 %v6630_v26, 30  ;;  %v2395_v41 = vor.u32 %v2394_v16, %v2393_v28  ;;  %v2683_v20 = vshrl.u32 %v2682_v57, 23  ;;  %v2383_v60 = vshrl.u32 %v8669_v40, %v2382_v61  ;;  %v183_v26 = vpop.permute.xlu1 %182 }
 0x20d   :  { %v2398_v48 = vor.u32 %v2397_v30, %v2396_v45  ;;  %vm2399_vm0 = vcmp.lt.s32.totalorder %v2380_v35, 1  ;;  %vm2402_vm3 = vcmp.lt.s32.totalorder %v2380_v35, 4  ;;  %vm2401_vm4 = vcmp.lt.s32.totalorder %v2380_v35, 3 }
 0x20e   :  { %v2404_v56 = vsel %vm2402_vm3, %v2392_v59, 2102212464  ;;  %v2407_v18 = vsel %vm2399_vm0, %v2386_v27, %v2389_v17  ;;  %v2408_v5 = vsel %vm2402_vm3, %v2395_v41, 920167782  ;;  %vm8599_vm14 = vcmp.lt.s32.totalorder %v6158_v31, 0 }
 0x20f   :  { %v6640_v19 = vsub.s32 %v2531_v8, %v2534_v32  ;;  %vm2400_vm11 = vcmp.lt.s32.totalorder %v2380_v35, 2  ;;  %v2409_v13 = vsel %vm2401_vm4, %v2392_v59, %v2408_v5  ;;  %v2411_v43 = vsel %vm2399_vm0, %v2389_v17, %v2392_v59 }
 0x210   :  { %vm4454_vm2 = vcmp.lt.s32.totalorder %v4453_v39, 0  ;;  %v2403_v29 = vsel %vm2399_vm0, %v2383_v60, %v2386_v27  ;;  %v2410_v57 = vsel %vm2400_vm11, %v2407_v18, %v2409_v13  ;;  %v2412_v28 = vsel %vm2402_vm3, %v2398_v48, 1326507024 }
 0x211   :  { %v2405_v61 = vsel %vm2401_vm4, %v2389_v17, %v2404_v56  ;;  %v2413_v45 = vsel %vm2401_vm4, %v2395_v41, %v2412_v28  ;;  %v6643_v30 = vmul.u32.u64.low %v2415_v63, %v2410_v57  ;;  %v6644_v16 = vmul.u32.u64.high %v2415_v63, %v2410_v57, %v6643_v30 }
 0x212   :  { %v2340_v37 = vadd.s32 127, %v2339_v62  ;;  %v2414_v23 = vsel %vm2400_vm11, %v2411_v43, %v2413_v45  ;;  %v8592_v32 = vand.u32 2147483647, %v6611_v25  ;;  %v4471_v8 = vadd.s32 4294967169, %v2683_v20 }
 0x213   :  { %v6649_v5 = vsel %vm4454_vm2, 0, %v4453_v39  ;;  %v2537_v27 = vsub.s32 0, %v6640_v19  ;;  %v6652_v59 = vmul.u32.u64.low %v2415_v63, %v2414_v23  ;;  %v6653_v60 = vmul.u32.u64.high %v2415_v63, %v2414_v23, %v6652_v59 }
 0x214   :  { %v2406_v17 = vsel %vm2400_vm11, %v2403_v29, %v2405_v61  ;;  %v2689_v41 = vadd.s32 1, %v4471_v8  ;;  %v6658_v48 = vadd.f32 %v6278_v24, %v6606_v38  ;;  %v244_v62 = vmul.f32 %v6257_v6, %v183_v26 }
 0x215   :  { %v8738_v56 = vand.u32 2147483647, %v6590_v9  ;;  %v8739_v20 = vcvt.s32.f32 %v6588_v51  ;;  %v2336_v18 = vshll.u32 %v6499_v33, %v6620_v58  ;;  %v2337_v23 = vshrl.u32 %v6617_v46, %v2335_v11 }
 0x216   :  { %v2425_v35 = vadd.s32 1, %v6644_v16  ;;  %v2341_v13 = vshll.u32 %v2340_v37, 23  ;;  %v2235_v43 = vsub.s32 4294967266, %v6649_v5  ;;  %v2686_v38 = vand.u32 8388607, %v8592_v32 }
 0x217   :  { %v6665_v39 = vmul.f32 %v8739_v20, %v8738_v56  ;;  %vm2690_vm11 = vcmp.gt.s32.totalorder %v2689_v41, 0  ;;  %v4464_v6 = vmin.u32 %v2537_v27, %v6640_v19  ;;  %v2422_v9 = vmul.u32 %v2415_v63, %v2406_v17 }
 0x218   :  { %vm2424_vm2 = vc.u32 %v6653_v60, %v6643_v30  ;;  %v2691_v51 = vsel %vm2690_vm11, %v2689_v41, 0  ;;  %v8740_v33 = vxor.u32 2147483648, %v6553_v12  ;;  %v2578_v11 = vand.u32 2139095040, %v6658_v48 }
 0x219   :  { %v2426_v37 = vsel %vm2424_vm2, %v2425_v35, %v6644_v16  ;;  %v2693_v58 = vand.u32 31, %v2691_v51  ;;  %v6687_v29 = vor.u32 %v2337_v23, %v2336_v18  ;;  %v2215_v63 = vadd.s32 %v6507_v42, %v6505_v21 }
 0x21a   :  { %v6682_v46 = vsel %vm8599_vm14, %v8740_v33, %v6553_v12  ;;  %v2427_v57 = vadd.s32 %v2426_v37, %v2422_v9  ;;  %v6691_v28 = vor.u32 4788187, %v2341_v13  ;;  %v2236_v61 = vadd.s32 127, %v2235_v43 }
 0x21b   :  { %8741 = vst [vmem:[#allocation61_spill] sm:$0xff] %v6682_v46  ;;  %v2694_v45 = vsub.s32 32, %v2693_v58  ;;  %v6694_v12 = vadd.f32 %v6278_v24, %v244_v62  ;;  %v2231_v16 = vsub.s32 32, %v6649_v5  ;;  %v2539_v8 = vclz %v4464_v6 }
 0x21c   :  { %v2428_v27 = vadd.s32 536870912, %v2427_v57  ;;  %v2687_v59 = vor.u32 8388608, %v2686_v38  ;;  %v2696_v17 = vshll.u32 %v8669_v40, %v2693_v58  ;;  %v2699_v56 = vshll.u32 %v8676_v1, %v2693_v58 }
 0x21d   :  { %8742 = vst [vmem:[#allocation62_spill] sm:$0xff] %v6694_v12  ;;  %v2697_v41 = vshrl.u32 %v8676_v1, %v2694_v45  ;;  %v2579_v21 = vshrl.u32 %v2578_v11, 23  ;;  %v2700_v20 = vshrl.u32 %v8677_v55, %v2694_v45  ;;  %v2702_v18 = vshll.u32 %v8677_v55, %v2693_v58 }
 0x21e   :  { %v6700_v42 = vshrl.u32 %v2428_v27, 30  ;;  %v2703_v24 = vshrl.u32 %v8678_v47, %v2694_v45  ;;  %v2237_v62 = vshll.u32 %v2236_v61, 23  ;;  %v2692_v23 = vshrl.u32 %v2691_v51, 5  ;;  %v4841_v61 = vld [vmem:[%s8487_s2] sm:$0xff]  }
 0x21f   :  { %v2705_v35 = vshll.u32 %v8678_v47, %v2693_v58  ;;  %v2706_v13 = vshrl.u32 %v8690_v0, %v2694_v45  ;;  %v2698_v38 = vor.u32 %v2697_v41, %v2696_v17  ;;  %v2701_v6 = vor.u32 %v2700_v20, %v2699_v56  ;;  %4605 = vmatprep.subr.bf16.mxu0 %v4841_v61 }
 0x220   :  { %8743 = vst [vmem:[#allocation63_spill] sm:$0xff] %v6700_v42  ;;  %v2430_v43 = vshll.u32 %v6700_v42, 30  ;;  %v2704_v9 = vor.u32 %v2703_v24, %v2702_v18  ;;  %v4465_v33 = vadd.s32 4294967294, %v2539_v8  ;;  %v2708_v11 = vshll.u32 %v8690_v0, %v2693_v58  ;;  %4606 = vmatpush3.bf16.msra.mxu0 %v4841_v61 }
 0x221   :  { %v2707_v37 = vor.u32 %v2706_v13, %v2705_v35  ;;  %v2709_v27 = vshrl.u32 %v8681_v36, %v2694_v45  ;;  %v2695_v32 = vshrl.u32 %v8669_v40, %v2694_v45  ;;  %v2727_v26 = vshll.u32 %v2687_v59, 8 }
 0x222   :  { %v6713_v51 = vsub.s32 %v2427_v57, %v2430_v43  ;;  %v4467_v46 = vadd.s32 4294967169, %v2579_v21  ;;  %vm2711_vm0 = vcmp.lt.s32.totalorder %v2692_v23, 1  ;;  %vm2713_vm3 = vcmp.lt.s32.totalorder %v2692_v23, 3 }
 0x223   :  { %v2710_v42 = vor.u32 %v2709_v27, %v2708_v11  ;;  %vm2714_vm4 = vcmp.lt.s32.totalorder %v2692_v23, 4  ;;  %v2719_v17 = vsel %vm2711_vm0, %v2698_v38, %v2701_v6  ;;  %vm4466_vm11 = vcmp.lt.s32.totalorder %v4465_v33, 0 }
 0x224   :  { %v2433_v8 = vsub.s32 0, %v6713_v51  ;;  %v2716_v58 = vsel %vm2714_vm4, %v2704_v9, 2102212464  ;;  %v2720_v41 = vsel %vm2714_vm4, %v2707_v37, 920167782  ;;  %vm2712_vm2 = vcmp.lt.s32.totalorder %v2692_v23, 2 }
 0x225   :  { %v2721_v57 = vsel %vm2713_vm3, %v2704_v9, %v2720_v41  ;;  %v2723_v56 = vsel %vm2711_vm0, %v2701_v6, %v2704_v9  ;;  %v2715_v20 = vsel %vm2711_vm0, %v2695_v32, %v2698_v38  ;;  %v2724_v59 = vsel %vm2714_vm4, %v2710_v42, 1326507024 }
 0x226   :  { %v2722_v45 = vsel %vm2712_vm2, %v2719_v17, %v2721_v57  ;;  %v8595_v21 = vand.u32 2147483647, %v6658_v48  ;;  %v2717_v18 = vsel %vm2713_vm3, %v2701_v6, %v2716_v58  ;;  %v2725_v24 = vsel %vm2713_vm3, %v2707_v37, %v2724_v59 }
 0x227   :  { %v6722_v35 = vmul.u32.u64.low %v2727_v26, %v2722_v45  ;;  %v6723_v13 = vmul.u32.u64.high %v2727_v26, %v2722_v45, %v6722_v35  ;;  %v6726_v43 = vsel %vm4466_vm11, 0, %v4465_v33  ;;  %v4460_v11 = vmin.u32 %v2433_v8, %v6713_v51 }
 0x228   :  { %v2726_v9 = vsel %vm2712_vm2, %v2723_v56, %v2725_v24  ;;  %v2585_v32 = vadd.s32 1, %v4467_v46  ;;  %v2343_v38 = vand.u32 2147483647, %v6691_v28  ;;  %v2233_v42 = vshrl.u32 %v2215_v63, %v2231_v16 }
 0x229   :  { %v6731_v27 = vmul.u32.u64.low %v2727_v26, %v2726_v9  ;;  %v6732_v61 = vmul.u32.u64.high %v2727_v26, %v2726_v9, %v6731_v27  ;;  %v6734_v6 = vor.u32 4788187, %v2237_v62  ;;  %v2718_v37 = vsel %vm2712_vm2, %v2715_v20, %v2717_v18 }
 0x22a   :  { %v2582_v58 = vand.u32 8388607, %v8595_v21  ;;  %vm2586_vm0 = vcmp.gt.s32.totalorder %v2585_v32, 0  ;;  %v2345_v33 = vcvt.s32.f32 %v6687_v29  ;;  %v2547_v8 = vsub.s32 4294967266, %v6726_v43 }
 0x22b   :  { %v2737_v46 = vadd.s32 1, %v6723_v13  ;;  %v2587_v17 = vsel %vm2586_vm0, %v2585_v32, 0  ;;  %v2232_v63 = vshll.u32 %v6574_v14, %v6649_v5  ;;  %v2435_v28 = vclz %v4460_v11 }
 0x22c   :  { %v2589_v16 = vand.u32 31, %v2587_v17  ;;  %v2890_v62 = vand.u32 2139095040, %v6694_v12  ;;  %v6745_v23 = vmul.f32 %v2345_v33, %v2343_v38  ;;  %v2527_v41 = vadd.s32 %v6580_v10, %v6585_v52 }
 0x22d   :  { %v2734_v57 = vmul.u32 %v2727_v26, %v2718_v37  ;;  %vm2736_vm3 = vc.u32 %v6732_v61, %v6722_v35  ;;  %v6751_v29 = vor.u32 %v2233_v42, %v2232_v63  ;;  %v2583_v14 = vor.u32 8388608, %v2582_v58 }
 0x22e   :  { %v2738_v20 = vsel %vm2736_vm3, %v2737_v46, %v6723_v13  ;;  %v2543_v5 = vsub.s32 32, %v6726_v43  ;;  %v2548_v45 = vadd.s32 127, %v2547_v8  ;;  %v2590_v18 = vsub.s32 32, %v2589_v16 }
 0x22f   :  { %v2739_v59 = vadd.s32 %v2738_v20, %v2734_v57  ;;  %v4461_v24 = vadd.s32 4294967294, %v2435_v28  ;;  %v2588_v11 = vshrl.u32 %v2587_v17, 5  ;;  %v2592_v10 = vshll.u32 %v8669_v40, %v2589_v16 }
 0x230   :  { %v2891_v52 = vshrl.u32 %v2890_v62, 23  ;;  %v2593_v9 = vshrl.u32 %v8676_v1, %v2590_v18  ;;  %v2595_v32 = vshll.u32 %v8676_v1, %v2589_v16  ;;  %v2596_v38 = vshrl.u32 %v8677_v55, %v2590_v18 }
 0x231   :  { %v2740_v26 = vadd.s32 536870912, %v2739_v59  ;;  %v2598_v13 = vshll.u32 %v8677_v55, %v2589_v16  ;;  %v2599_v42 = vshrl.u32 %v8678_v47, %v2590_v18  ;;  %v2601_v27 = vshll.u32 %v8678_v47, %v2589_v16 }
 0x232   :  { %v2602_v37 = vshrl.u32 %v8690_v0, %v2590_v18  ;;  %v2594_v33 = vor.u32 %v2593_v9, %v2592_v10  ;;  %v2597_v8 = vor.u32 %v2596_v38, %v2595_v32  ;;  %v8598_v46 = vand.u32 2147483647, %v6694_v12 }
 0x233   :  { %v6764_v58 = vshrl.u32 %v2740_v26, 30  ;;  %v2545_v17 = vshrl.u32 %v2527_v41, %v2543_v5  ;;  %v2549_v63 = vshll.u32 %v2548_v45, 23  ;;  %v2600_v28 = vor.u32 %v2599_v42, %v2598_v13 }
 0x234   :  { %v2603_v62 = vor.u32 %v2602_v37, %v2601_v27  ;;  %v2604_v20 = vshll.u32 %v8690_v0, %v2589_v16  ;;  %v2605_v21 = vshrl.u32 %v8681_v36, %v2590_v18  ;;  %v2623_v56 = vshll.u32 %v2583_v14, 8 }
 0x235   :  { %8744 = vst [vmem:[#allocation64_spill] sm:$0xff] %v6764_v58  ;;  %v2742_v57 = vshll.u32 %v6764_v58, 30  ;;  %vm4462_vm4 = vcmp.lt.s32.totalorder %v4461_v24, 0  ;;  %vm2607_vm11 = vcmp.lt.s32.totalorder %v2588_v11, 1  ;;  %vm2610_vm2 = vcmp.lt.s32.totalorder %v2588_v11, 4 }
 0x236   :  { %v4479_v26 = vadd.s32 4294967169, %v2891_v52  ;;  %v2606_v10 = vor.u32 %v2605_v21, %v2604_v20  ;;  %v2612_v9 = vsel %vm2610_vm2, %v2600_v28, 2102212464  ;;  %v2615_v32 = vsel %vm2607_vm11, %v2594_v33, %v2597_v8 }
 0x237   :  { %v6770_v31 = vsub.s32 %v2739_v59, %v2742_v57  ;;  %v2591_v41 = vshrl.u32 %v8669_v40, %v2590_v18  ;;  %vm2609_vm0 = vcmp.lt.s32.totalorder %v2588_v11, 3  ;;  %v2616_v5 = vsel %vm2610_vm2, %v2603_v62, 920167782 }
 0x238   :  { %v2619_v45 = vsel %vm2607_vm11, %v2597_v8, %v2600_v28  ;;  %vm2608_vm3 = vcmp.lt.s32.totalorder %v2588_v11, 2  ;;  %v2617_v16 = vsel %vm2609_vm0, %v2600_v28, %v2616_v5  ;;  %v2620_v13 = vsel %vm2610_vm2, %v2606_v10, 1326507024  ;;  %v178_v5 = vpop.permute.xlu0 %177 }
 0x239   :  { %v2745_v38 = vsub.s32 0, %v6770_v31  ;;  %v2611_v14 = vsel %vm2607_vm11, %v2591_v41, %v2594_v33  ;;  %v2613_v42 = vsel %vm2609_vm0, %v2597_v8, %v2612_v9  ;;  %v2618_v27 = vsel %vm2608_vm3, %v2615_v32, %v2617_v16 }
 0x23a   :  { %v2621_v52 = vsel %vm2609_vm0, %v2603_v62, %v2620_v13  ;;  %v2544_v21 = vshll.u32 %v6640_v19, %v6726_v43  ;;  %v6778_v37 = vmul.u32.u64.low %v2623_v56, %v2618_v27  ;;  %v6779_v18 = vmul.u32.u64.high %v2623_v56, %v2618_v27, %v6778_v37 }
 0x23b   :  { %v2622_v59 = vsel %vm2608_vm3, %v2619_v45, %v2621_v52  ;;  %v6783_v57 = vsel %vm4462_vm4, 0, %v4461_v24  ;;  %v2897_v33 = vadd.s32 1, %v4479_v26  ;;  %v4472_v62 = vmin.u32 %v2745_v38, %v6770_v31 }
 0x23c   :  { %v6785_v20 = vmul.u32.u64.low %v2623_v56, %v2622_v59  ;;  %v6786_v28 = vmul.u32.u64.high %v2623_v56, %v2622_v59, %v6785_v20  ;;  %v6789_v10 = vor.u32 %v2545_v17, %v2544_v21  ;;  %v2614_v19 = vsel %vm2608_vm3, %v2611_v14, %v2613_v42 }
 0x23d   :  { %v2241_v43 = vcvt.s32.f32 %v6751_v29  ;;  %v6794_v9 = vor.u32 4788187, %v2549_v63  ;;  %v2894_v24 = vand.u32 8388607, %v8598_v46  ;;  %vm2898_vm4 = vcmp.gt.s32.totalorder %v2897_v33, 0  ;;  %v193_v63 = vpop.permute.xlu1 %192 }
 0x23e   :  { %v2439_v32 = vsub.s32 32, %v6783_v57  ;;  %v2443_v26 = vsub.s32 4294967266, %v6783_v57  ;;  %v2633_v41 = vadd.s32 1, %v6779_v18  ;;  %v2899_v17 = vsel %vm2898_vm4, %v2897_v33, 0 }
 0x23f   :  { %v8745_v45 = vand.u32 2147483647, %v6734_v6  ;;  %v2630_v38 = vmul.u32 %v2623_v56, %v2614_v19  ;;  %vm2632_vm11 = vc.u32 %v6786_v28, %v6778_v37  ;;  %v2901_v29 = vand.u32 31, %v2899_v17  ;;  %v6815_v56 = vld [vmem:[%s8486_s1] ss:$0 sm:$0xff] }
 0x240   :  { %v2423_v13 = vadd.s32 %v6643_v30, %v6653_v60  ;;  %v2747_v14 = vclz %v4472_v62  ;;  %v2634_v42 = vsel %vm2632_vm11, %v2633_v41, %v6779_v18  ;;  %v243_v21 = vmul.f32 %v6815_v56, %v178_v5 }
 0x241   :  { %v6803_v11 = vmul.f32 %v2241_v43, %v8745_v45  ;;  %v2635_v52 = vadd.s32 %v2634_v42, %v2630_v38  ;;  %v2902_v6 = vsub.s32 32, %v2901_v29  ;;  %v6820_v20 = vadd.s32 127, %v2443_v26  ;;  %v6834_v38 = vld [vmem:[%s8486_s1 + $0x1] ss:$0 sm:$0xff] }
 0x242   :  { %v6818_v59 = vshrl.u32 %v2423_v13, %v2439_v32  ;;  %v2895_v33 = vor.u32 8388608, %v2894_v24  ;;  %v246_v30 = vmul.f32 %v6815_v56, %v193_v63  ;;  %v2904_v18 = vshll.u32 %v8669_v40, %v2901_v29 }
 0x243   :  { %v2636_v60 = vadd.s32 536870912, %v2635_v52  ;;  %v2905_v62 = vshrl.u32 %v8676_v1, %v2902_v6  ;;  %v2908_v19 = vshrl.u32 %v8677_v55, %v2902_v6  ;;  %v4473_v43 = vadd.s32 4294967294, %v2747_v14 }
 0x244   :  { %v2907_v41 = vshll.u32 %v8676_v1, %v2901_v29  ;;  %v2910_v45 = vshll.u32 %v8677_v55, %v2901_v29  ;;  %v2911_v32 = vshrl.u32 %v8678_v47, %v2902_v6  ;;  %v2900_v26 = vshrl.u32 %v2899_v17, 5 }
 0x245   :  { %v6829_v5 = vshrl.u32 %v2636_v60, 30  ;;  %v2906_v24 = vor.u32 %v2905_v62, %v2904_v18  ;;  %v6837_v63 = vadd.f32 %v6834_v38, %v243_v21  ;;  %v2913_v42 = vshll.u32 %v8678_v47, %v2901_v29 }
 0x246   :  { %v2909_v13 = vor.u32 %v2908_v19, %v2907_v41  ;;  %v2912_v14 = vor.u32 %v2911_v32, %v2910_v45  ;;  %v2914_v46 = vshrl.u32 %v8690_v0, %v2902_v6  ;;  %v2445_v8 = vshll.u32 %v6820_v20, 23  ;;  %v4842_v41 = vld [vmem:[%s8487_s2 + $0x8] sm:$0xff]  }
 0x247   :  { %8746 = vst [vmem:[#allocation65_spill] sm:$0xff] %v6829_v5  ;;  %v2638_v60 = vshll.u32 %v6829_v5, 30  ;;  %v2916_v17 = vshll.u32 %v8690_v0, %v2901_v29  ;;  %v2917_v18 = vshrl.u32 %v8681_v36, %v2902_v6  ;;  %vm8652_vm2 = vcmp.lt.s32.totalorder %v6281_v4, 0  ;;  %4607 = vmatprep.subr.bf16.mxu0 %v4842_v41 }
 0x248   :  { %vm4474_vm0 = vcmp.lt.s32.totalorder %v4473_v43, 0  ;;  %v2915_v62 = vor.u32 %v2914_v46, %v2913_v42  ;;  %v6846_v21 = vshll.u32 %v2895_v33, 8  ;;  %v6849_v19 = vadd.f32 %v6834_v38, %v246_v30  ;;  %4608 = vmatpush3.bf16.msra.mxu0 %v4842_v41 }
 0x249   :  { %v6854_v20 = vsub.s32 %v2635_v52, %v2638_v60  ;;  %v2918_v45 = vor.u32 %v2917_v18, %v2916_v17  ;;  %vm2919_vm3 = vcmp.lt.s32.totalorder %v2900_v26, 1  ;;  %vm2922_vm4 = vcmp.lt.s32.totalorder %v2900_v26, 4  ;;  %v4843_v17 = vld [vmem:[%s8487_s2 + $0x10] sm:$0xff]  }
 0x24a   :  { %v2903_v29 = vshrl.u32 %v8669_v40, %v2902_v6  ;;  %v2924_v32 = vsel %vm2922_vm4, %v2912_v14, 2102212464  ;;  %v2927_v16 = vsel %vm2919_vm3, %v2906_v24, %v2909_v13  ;;  %v2786_v46 = vand.u32 2139095040, %v6837_v63  ;;  %4609 = vmatprep.subr.bf16.mxu0 %v4843_v17 }
 0x24b   :  { %vm8615_vm11 = vcmp.lt.s32.totalorder %v6286_v44, 0  ;;  %vm8625_vm14 = vcmp.lt.s32.totalorder %v6352_v50, 0  ;;  %v2641_v33 = vsub.s32 0, %v6854_v20  ;;  %vm2921_vm13 = vcmp.lt.s32.totalorder %v2900_v26, 3 }
 0x24c   :  { %v2928_v52 = vsel %vm2922_vm4, %v2915_v62, 920167782  ;;  %v2931_v30 = vsel %vm2919_vm3, %v2909_v13, %v2912_v14  ;;  %vm2920_vm5 = vcmp.lt.s32.totalorder %v2900_v26, 2  ;;  %v2923_v42 = vsel %vm2919_vm3, %v2903_v29, %v2906_v24  ;;  %4610 = vmatpush3.bf16.msra.mxu0 %v4843_v17 }
 0x24d   :  { %v2929_v6 = vsel %vm2921_vm13, %v2912_v14, %v2928_v52  ;;  %v2932_v60 = vsel %vm2922_vm4, %v2918_v45, 1326507024  ;;  %v4468_v18 = vmin.u32 %v2641_v33, %v6854_v20  ;;  %v2925_v27 = vsel %vm2921_vm13, %v2909_v13, %v2924_v32 }
 0x24e   :  { %v2930_v58 = vsel %vm2920_vm5, %v2927_v16, %v2929_v6  ;;  %v2933_v5 = vsel %vm2921_vm13, %v2915_v62, %v2932_v60  ;;  %v6870_v22 = vsel %vm4474_vm0, 0, %v4473_v43  ;;  %v2787_v13 = vshrl.u32 %v2786_v46, 23 }
 0x24f   :  { %v2934_v41 = vsel %vm2920_vm5, %v2931_v30, %v2933_v5  ;;  %v6874_v24 = vmul.u32.u64.low %v6846_v21, %v2930_v58  ;;  %v6875_v14 = vmul.u32.u64.high %v6846_v21, %v2930_v58, %v6874_v24  ;;  %v2643_v45 = vclz %v4468_v18  ;;  %v4844_v58 = vld [vmem:[%s8487_s2 + $0x18] sm:$0xff]  }
 0x250   :  { %v6879_v29 = vmul.u32.u64.low %v6846_v21, %v2934_v41  ;;  %v6880_v52 = vmul.u32.u64.high %v6846_v21, %v2934_v41, %v6879_v29  ;;  %v2243_v16 = vxor.u32 2147483648, %v6803_v11  ;;  %v2440_v43 = vshll.u32 %v6713_v51, %v6783_v57  ;;  %4611 = vmatprep.subr.bf16.mxu0 %v4844_v58  ;;  %v4845_v41 = vld [vmem:[%s8487_s2 + $0x20] sm:$0xff]  }
 0x251   :  { %v2446_v62 = vor.u32 4788187, %v2445_v8  ;;  %v2926_v5 = vsel %vm2920_vm5, %v2923_v42, %v2925_v27  ;;  %v8747_v32 = vxor.u32 2147483648, %v6665_v39  ;;  %v8749_v46 = vand.u32 2147483647, %v6794_v9  ;;  %4612 = vmatpush3.bf16.msra.mxu0 %v4844_v58 }
 0x252   :  { %v8750_v30 = vcvt.s32.f32 %v6789_v10  ;;  %v2755_v51 = vsub.s32 4294967266, %v6870_v22  ;;  %v4475_v57 = vadd.s32 4294967169, %v2787_v13  ;;  %v2442_v8 = vor.u32 %v6818_v59, %v2440_v43  ;;  %4613 = vmatprep.subr.bf16.mxu0 %v4845_v41 }
 0x253   :  { %v6894_v33 = vsel %vm8652_vm2, %v8747_v32, %v6665_v39  ;;  %v2945_v27 = vadd.s32 1, %v6875_v14  ;;  %v8606_v26 = vand.u32 2147483647, %v6837_v63  ;;  %v3098_v42 = vand.u32 2139095040, %v6849_v19 }
 0x254   :  { %8748 = vst [vmem:[#allocation66_spill] sm:$0xff] %v6894_v33  ;;  %v6900_v6 = vmul.f32 %v8750_v30, %v8749_v46  ;;  %v4469_v39 = vadd.s32 4294967294, %v2643_v45  ;;  %v2942_v60 = vmul.u32 %v6846_v21, %v2926_v5  ;;  %vm2944_vm5 = vc.u32 %v6880_v52, %v6874_v24  ;;  %v203_v5 = vpop.permute.xlu1 %202 }
 0x255   :  { %v2793_v10 = vadd.s32 1, %v4475_v57  ;;  %v8751_v9 = vxor.u32 2147483648, %v6745_v23  ;;  %v6920_v17 = vsel %vm8625_vm14, %v2243_v16, %v6803_v11  ;;  %v2447_v18 = vand.u32 2147483647, %v2446_v62  ;;  %4614 = vmatpush3.bf16.msra.mxu0 %v4845_v41 }
 0x256   :  { %8753 = vst [vmem:[#allocation68_spill] sm:$0xff] %v6920_v17  ;;  %v2946_v21 = vsel %vm2944_vm5, %v2945_v27, %v6875_v14  ;;  %v2751_v29 = vsub.s32 32, %v6870_v22  ;;  %v2756_v13 = vadd.s32 127, %v2755_v51  ;;  %v2449_v58 = vcvt.s32.f32 %v2442_v8  ;;  %v4846_v8 = vld [vmem:[%s8487_s2 + $0x28] sm:$0xff]  }
 0x257   :  { %v6915_v59 = vsel %vm8615_vm11, %v8751_v9, %v6745_v23  ;;  %v2947_v43 = vadd.s32 %v2946_v21, %v2942_v60  ;;  %v188_v23 = vpop.permute.xlu0 %187  ;;  %v2790_v11 = vand.u32 8388607, %v8606_v26  ;;  %vm2794_vm13 = vcmp.gt.s32.totalorder %v2793_v10, 0  ;;  %4615 = vmatprep.subr.bf16.mxu0 %v4846_v8 }
 0x258   :  { %8752 = vst [vmem:[#allocation67_spill] sm:$0xff] %v6915_v59  ;;  %v3099_v16 = vshrl.u32 %v3098_v42, 23  ;;  %v2735_v14 = vadd.s32 %v6722_v35, %v6732_v61  ;;  %vm4470_vm0 = vcmp.lt.s32.totalorder %v4469_v39, 0  ;;  %v2795_v32 = vsel %vm2794_vm13, %v2793_v10, 0 }
 0x259   :  { %v2948_v62 = vadd.s32 536870912, %v2947_v43  ;;  %v6932_v46 = vmul.f32 %v2449_v58, %v2447_v18  ;;  %v2797_v30 = vand.u32 31, %v2795_v32  ;;  %v6935_v51 = vmul.f32 %v6815_v56, %v188_v23  ;;  %4616 = vmatpush3.bf16.msra.mxu0 %v4846_v8 }
 0x25a   :  { %v6938_v57 = vmul.f32 %v6815_v56, %v203_v5  ;;  %v6945_v61 = vshrl.u32 %v2735_v14, %v2751_v29  ;;  %v2757_v27 = vshll.u32 %v2756_v13, 23  ;;  %v6949_v60 = vsel %vm4470_vm0, 0, %v4469_v39 }
 0x25b   :  { %v6947_v42 = vshrl.u32 %v2948_v62, 30  ;;  %v2791_v10 = vor.u32 8388608, %v2790_v11  ;;  %v2798_v9 = vsub.s32 32, %v2797_v30  ;;  %v4487_v18 = vadd.s32 4294967169, %v3099_v16  ;;  %v4847_v11 = vld [vmem:[%s8487_s2 + $0x30] sm:$0xff]  }
 0x25c   :  { %v2796_v41 = vshrl.u32 %v2795_v32, 5  ;;  %v2800_v23 = vshll.u32 %v8669_v40, %v2797_v30  ;;  %v2803_v5 = vshll.u32 %v8676_v1, %v2797_v30  ;;  %v2806_v58 = vshll.u32 %v8677_v55, %v2797_v30  ;;  %4617 = vmatprep.subr.bf16.mxu0 %v4847_v11 }
 0x25d   :  { %8754 = vst [vmem:[#allocation69_spill] sm:$0xff] %v6947_v42  ;;  %v2950_v21 = vshll.u32 %v6947_v42, 30  ;;  %v2801_v29 = vshrl.u32 %v8676_v1, %v2798_v9  ;;  %v2804_v13 = vshrl.u32 %v8677_v55, %v2798_v9  ;;  %v2807_v39 = vshrl.u32 %v8678_v47, %v2798_v9  ;;  %4618 = vmatpush3.bf16.msra.mxu0 %v4847_v11 }
 0x25e   :  { %v2809_v14 = vshll.u32 %v8678_v47, %v2797_v30  ;;  %v2810_v62 = vshrl.u32 %v8690_v0, %v2798_v9  ;;  %v2812_v32 = vshll.u32 %v8690_v0, %v2797_v30  ;;  %v2813_v35 = vshrl.u32 %v8681_v36, %v2798_v9  ;;  %v4848_v30 = vld [vmem:[%s8487_s2 + $0x38] sm:$0xff]  }
 0x25f   :  { %v6961_v16 = vsub.s32 %v2947_v43, %v2950_v21  ;;  %v2802_v8 = vor.u32 %v2801_v29, %v2800_v23  ;;  %v2805_v26 = vor.u32 %v2804_v13, %v2803_v5  ;;  %v2808_v45 = vor.u32 %v2807_v39, %v2806_v58  ;;  %4619 = vmatprep.subr.bf16.mxu0 %v4848_v30 }
 0x260   :  { %v6967_v42 = vor.u32 4788187, %v2757_v27  ;;  %v2811_v44 = vor.u32 %v2810_v62, %v2809_v14  ;;  %v8616_v43 = vand.u32 2147483647, %v6849_v19  ;;  %v2814_v21 = vor.u32 %v2813_v35, %v2812_v32 }
 0x261   :  { %v2953_v59 = vsub.s32 0, %v6961_v16  ;;  %vm2818_vm3 = vcmp.lt.s32.totalorder %v2796_v41, 4  ;;  %v2831_v17 = vshll.u32 %v2791_v10, 8  ;;  %v3105_v50 = vadd.s32 1, %v4487_v18  ;;  %4620 = vmatpush3.bf16.msra.mxu0 %v4848_v30 }
 0x262   :  { %v2651_v23 = vsub.s32 4294967266, %v6949_v60  ;;  %v2799_v5 = vshrl.u32 %v8669_v40, %v2798_v9  ;;  %vm2815_vm4 = vcmp.lt.s32.totalorder %v2796_v41, 1  ;;  %v2820_v27 = vsel %vm2818_vm3, %v2808_v45, 2102212464 }
 0x263   :  { %vm2816_vm5 = vcmp.lt.s32.totalorder %v2796_v41, 2  ;;  %vm2817_vm13 = vcmp.lt.s32.totalorder %v2796_v41, 3  ;;  %v2823_v29 = vsel %vm2815_vm4, %v2802_v8, %v2805_v26  ;;  %v2824_v13 = vsel %vm2818_vm3, %v2811_v44, 920167782 }
 0x264   :  { %v4480_v35 = vmin.u32 %v2953_v59, %v6961_v16  ;;  %v2819_v10 = vsel %vm2815_vm4, %v2799_v5, %v2802_v8  ;;  %v2825_v18 = vsel %vm2817_vm13, %v2808_v45, %v2824_v13  ;;  %v2827_v58 = vsel %vm2815_vm4, %v2805_v26, %v2808_v45 }
 0x265   :  { %v2821_v39 = vsel %vm2817_vm13, %v2805_v26, %v2820_v27  ;;  %v2826_v11 = vsel %vm2816_vm5, %v2823_v29, %v2825_v18  ;;  %v2828_v9 = vsel %vm2818_vm3, %v2814_v21, 1326507024  ;;  %vm3106_vm0 = vcmp.gt.s32.totalorder %v3105_v50, 0 }
 0x266   :  { %v2829_v14 = vsel %vm2817_vm13, %v2811_v44, %v2828_v9  ;;  %v6981_v62 = vmul.u32.u64.low %v2831_v17, %v2826_v11  ;;  %v6982_v32 = vmul.u32.u64.high %v2831_v17, %v2826_v11, %v6981_v62  ;;  %v3102_v33 = vand.u32 8388607, %v8616_v43 }
 0x267   :  { %v2652_v4 = vadd.s32 127, %v2651_v23  ;;  %v2830_v59 = vsel %vm2816_vm5, %v2827_v58, %v2829_v14  ;;  %v3107_v8 = vsel %vm3106_vm0, %v3105_v50, 0  ;;  %v6990_v26 = vadd.f32 %v6834_v38, %v6935_v51 }
 0x268   :  { %v2955_v45 = vclz %v4480_v35  ;;  %v2822_v21 = vsel %vm2816_vm5, %v2819_v10, %v2821_v39  ;;  %v6993_v30 = vmul.u32.u64.low %v2831_v17, %v2830_v59  ;;  %v6994_v44 = vmul.u32.u64.high %v2831_v17, %v2830_v59, %v6993_v30 }
 0x269   :  { %v8755_v5 = vshll.u32 %v6770_v31, %v6870_v22  ;;  %v2759_v23 = vand.u32 2147483647, %v6967_v42  ;;  %v2631_v50 = vadd.s32 %v6778_v37, %v6786_v28  ;;  %v3109_v29 = vand.u32 31, %v3107_v8 }
 0x26a   :  { %v2647_v51 = vsub.s32 32, %v6949_v60  ;;  %v2648_v41 = vshll.u32 %v6854_v20, %v6949_v60  ;;  %v2841_v13 = vadd.s32 1, %v6982_v32  ;;  %v3103_v35 = vor.u32 8388608, %v3102_v33 }
 0x26b   :  { %v7000_v27 = vor.u32 %v6945_v61, %v8755_v5  ;;  %v2653_v10 = vshll.u32 %v2652_v4, 23  ;;  %v2838_v18 = vmul.u32 %v2831_v17, %v2822_v21  ;;  %v3110_v31 = vsub.s32 32, %v3109_v29 }
 0x26c   :  { %v8617_v22 = vand.u32 2147483647, %v6990_v26  ;;  %v4481_v61 = vadd.s32 4294967294, %v2955_v45  ;;  %vm2840_vm3 = vc.u32 %v6994_v44, %v6981_v62  ;;  %v3112_v37 = vshll.u32 %v8669_v40, %v3109_v29 }
 0x26d   :  { %v2994_v28 = vand.u32 2139095040, %v6990_v26  ;;  %v2842_v58 = vsel %vm2840_vm3, %v2841_v13, %v6982_v32  ;;  %v3113_v20 = vshrl.u32 %v8676_v1, %v3110_v31  ;;  %v3115_v60 = vshll.u32 %v8676_v1, %v3109_v29 }
 0x26e   :  { %v3116_v4 = vshrl.u32 %v8677_v55, %v3110_v31  ;;  %v2843_v33 = vadd.s32 %v2842_v58, %v2838_v18  ;;  %v3108_v17 = vshrl.u32 %v3107_v8, 5  ;;  %v3118_v39 = vshll.u32 %v8677_v55, %v3109_v29 }
 0x26f   :  { %v3119_v11 = vshrl.u32 %v8678_v47, %v3110_v31  ;;  %v3114_v9 = vor.u32 %v3113_v20, %v3112_v37  ;;  %v3121_v59 = vshll.u32 %v8678_v47, %v3109_v29  ;;  %v3122_v45 = vshrl.u32 %v8690_v0, %v3110_v31 }
 0x270   :  { %v3117_v14 = vor.u32 %v3116_v4, %v3115_v60  ;;  %v2649_v21 = vshrl.u32 %v2631_v50, %v2647_v51  ;;  %v2844_v32 = vadd.s32 536870912, %v2843_v33  ;;  %v7022_v5 = vshll.u32 %v3103_v35, 8 }
 0x271   :  { %v3120_v30 = vor.u32 %v3119_v11, %v3118_v39  ;;  %vm8624_vm4 = vcmp.lt.s32.totalorder %v6472_v53, 0  ;;  %v2654_v13 = vor.u32 4788187, %v2653_v10  ;;  %v3123_v18 = vor.u32 %v3122_v45, %v3121_v59 }
 0x272   :  { %v3124_v8 = vshll.u32 %v8690_v0, %v3109_v29  ;;  %v3125_v58 = vshrl.u32 %v8681_v36, %v3110_v31  ;;  %vm4482_vm5 = vcmp.lt.s32.totalorder %v4481_v61, 0  ;;  %v7027_v37 = vshrl.u32 %v2844_v32, 30 }
 0x273   :  { %vm3127_vm13 = vcmp.lt.s32.totalorder %v3108_v17, 1  ;;  %v2995_v20 = vshrl.u32 %v2994_v28, 23  ;;  %v3111_v60 = vshrl.u32 %v8669_v40, %v3110_v31  ;;  %vm3130_vm0 = vcmp.lt.s32.totalorder %v3108_v17, 4 }
 0x274   :  { %8756 = vst [vmem:[#allocation70_spill] sm:$0xff] %v7027_v37  ;;  %v3126_v50 = vor.u32 %v3125_v58, %v3124_v8  ;;  %v3135_v51 = vsel %vm3127_vm13, %v3114_v9, %v3117_v14  ;;  %v2846_v35 = vshll.u32 %v7027_v37, 30  ;;  %vm3129_vm3 = vcmp.lt.s32.totalorder %v3108_v17, 3 }
 0x275   :  { %v3132_v10 = vsel %vm3130_vm0, %v3120_v30, 2102212464  ;;  %v3136_v4 = vsel %vm3130_vm0, %v3123_v18, 920167782  ;;  %vm3128_vm11 = vcmp.lt.s32.totalorder %v3108_v17, 2  ;;  %v3139_v39 = vsel %vm3127_vm13, %v3117_v14, %v3120_v30 }
 0x276   :  { %v3137_v29 = vsel %vm3129_vm3, %v3120_v30, %v3136_v4  ;;  %v3140_v11 = vsel %vm3130_vm0, %v3126_v50, 1326507024  ;;  %v7034_v59 = vsel %vm4482_vm5, 0, %v4481_v61  ;;  %v7036_v28 = vsub.s32 %v2843_v33, %v2846_v35 }
 0x277   :  { %v3131_v31 = vsel %vm3127_vm13, %v3111_v60, %v3114_v9  ;;  %v3138_v45 = vsel %vm3128_vm11, %v3135_v51, %v3137_v29  ;;  %v3133_v32 = vsel %vm3129_vm3, %v3117_v14, %v3132_v10  ;;  %v3141_v8 = vsel %vm3129_vm3, %v3123_v18, %v3140_v11 }
 0x278   :  { %v7041_v58 = vmul.u32.u64.low %v7022_v5, %v3138_v45  ;;  %v7042_v43 = vmul.u32.u64.high %v7022_v5, %v3138_v45, %v7041_v58  ;;  %v2650_v4 = vor.u32 %v2649_v21, %v2648_v41  ;;  %v2849_v30 = vsub.s32 0, %v7036_v28 }
 0x279   :  { %v3142_v50 = vsel %vm3128_vm11, %v3139_v39, %v3141_v8  ;;  %v4483_v61 = vadd.s32 4294967169, %v2995_v20  ;;  %v2761_v33 = vcvt.s32.f32 %v7000_v27  ;;  %v2963_v35 = vsub.s32 4294967266, %v7034_v59  ;;  %v198_v39 = vpop.permute.xlu0 %197 }
 0x27a   :  { %v7050_v9 = vmul.u32.u64.low %v7022_v5, %v3142_v50  ;;  %v7051_v60 = vmul.u32.u64.high %v7022_v5, %v3142_v50, %v7050_v9  ;;  %v8757_v14 = vxor.u32 2147483648, %v6900_v6  ;;  %v3134_v41 = vsel %vm3128_vm11, %v3131_v31, %v3133_v32 }
 0x27b   :  { %v3001_v21 = vadd.s32 1, %v4483_v61  ;;  %v7063_v20 = vadd.f32 %v6834_v38, %v6938_v57  ;;  %v7068_v51 = vmul.f32 %v2761_v33, %v2759_v23  ;;  %v2655_v10 = vand.u32 2147483647, %v2654_v13 }
 0x27c   :  { %v7058_v18 = vsel %vm8624_vm4, %v8757_v14, %v6900_v6  ;;  %v3153_v29 = vadd.s32 1, %v7042_v43  ;;  %v2657_v11 = vcvt.s32.f32 %v2650_v4  ;;  %v4476_v6 = vmin.u32 %v2849_v30, %v7036_v28 }
 0x27d   :  { %8758 = vst [vmem:[#allocation71_spill] sm:$0xff] %v7058_v18  ;;  %v2998_v17 = vand.u32 8388607, %v8617_v22  ;;  %vm3002_vm11 = vcmp.gt.s32.totalorder %v3001_v21, 0  ;;  %v2964_v31 = vadd.s32 127, %v2963_v35  ;;  %v3150_v57 = vmul.u32 %v7022_v5, %v3134_v41 }
 0x27e   :  { %vm3152_vm5 = vc.u32 %v7051_v60, %v7041_v58  ;;  %v3003_v42 = vsel %vm3002_vm11, %v3001_v21, 0  ;;  %v3306_v45 = vand.u32 2139095040, %v7063_v20  ;;  %v7080_v32 = vmul.f32 %v6815_v56, %v198_v39 }
 0x27f   :  { %v3154_v23 = vsel %vm3152_vm5, %v3153_v29, %v7042_v43  ;;  %v3005_v13 = vand.u32 31, %v3003_v42  ;;  %v7083_v4 = vmul.f32 %v2657_v11, %v2655_v10  ;;  %v2943_v30 = vadd.s32 %v6874_v24, %v6880_v52 }
 0x280   :  { %v3155_v5 = vadd.s32 %v3154_v23, %v3150_v57  ;;  %v2959_v50 = vsub.s32 32, %v7034_v59  ;;  %v2851_v61 = vclz %v4476_v6  ;;  %v2999_v33 = vor.u32 8388608, %v2998_v17 }
 0x281   :  { %v3006_v35 = vsub.s32 32, %v3005_v13  ;;  %v2960_v43 = vshll.u32 %v6961_v16, %v7034_v59  ;;  %v2965_v9 = vshll.u32 %v2964_v31, 23  ;;  %v3008_v21 = vshll.u32 %v8669_v40, %v3005_v13 }
 0x282   :  { %v3156_v14 = vadd.s32 536870912, %v3155_v5  ;;  %v3011_v10 = vshll.u32 %v8676_v1, %v3005_v13  ;;  %v3014_v29 = vshll.u32 %v8677_v55, %v3005_v13  ;;  %v3307_v24 = vshrl.u32 %v3306_v45, 23 }
 0x283   :  { %v3009_v39 = vshrl.u32 %v8676_v1, %v3006_v35  ;;  %v3012_v11 = vshrl.u32 %v8677_v55, %v3006_v35  ;;  %v3015_v6 = vshrl.u32 %v8678_v47, %v3006_v35  ;;  %v4477_v16 = vadd.s32 4294967294, %v2851_v61 }
 0x284   :  { %v7094_v52 = vshrl.u32 %v3156_v14, 30  ;;  %v3004_v59 = vshrl.u32 %v3003_v42, 5  ;;  %v3017_v17 = vshll.u32 %v8678_v47, %v3005_v13  ;;  %v3018_v31 = vshrl.u32 %v8690_v0, %v3006_v35 }
 0x285   :  { %vm8646_vm13 = vcmp.lt.s32.totalorder %v6525_v49, 0  ;;  %v3010_v23 = vor.u32 %v3009_v39, %v3008_v21  ;;  %v3013_v45 = vor.u32 %v3012_v11, %v3011_v10  ;;  %v3016_v14 = vor.u32 %v3015_v6, %v3014_v29 }
 0x286   :  { %8759 = vst [vmem:[#allocation72_spill] sm:$0xff] %v7094_v52  ;;  %v3158_v57 = vshll.u32 %v7094_v52, 30  ;;  %v2961_v22 = vshrl.u32 %v2943_v30, %v2959_v50  ;;  %v3019_v8 = vor.u32 %v3018_v31, %v3017_v17  ;;  %v3020_v27 = vshll.u32 %v8690_v0, %v3005_v13 }
 0x287   :  { %v3021_v41 = vshrl.u32 %v8681_v36, %v3006_v35  ;;  %vm8632_vm0 = vcmp.lt.s32.totalorder %v6611_v25, 0  ;;  %v2966_v42 = vor.u32 4788187, %v2965_v9  ;;  %v3039_v37 = vshll.u32 %v2999_v33, 8 }
 0x288   :  { %v7106_v61 = vsub.s32 %v3155_v5, %v3158_v57  ;;  %v8760_v18 = vand.u32 2147483647, %v7063_v20  ;;  %vm3023_vm3 = vcmp.lt.s32.totalorder %v3004_v59, 1  ;;  %vm3026_vm11 = vcmp.lt.s32.totalorder %v3004_v59, 4 }
 0x289   :  { %v3022_v3 = vor.u32 %v3021_v41, %v3020_v27  ;;  %v4495_v21 = vadd.s32 4294967169, %v3307_v24  ;;  %vm4478_vm5 = vcmp.lt.s32.totalorder %v4477_v16, 0  ;;  %v3028_v50 = vsel %vm3026_vm11, %v3016_v14, 2102212464 }
 0x28a   :  { %v3310_v53 = vand.u32 8388607, %v8760_v18  ;;  %v3161_v30 = vsub.s32 0, %v7106_v61  ;;  %v3031_v13 = vsel %vm3023_vm3, %v3010_v23, %v3013_v45  ;;  %v3007_v10 = vshrl.u32 %v8669_v40, %v3006_v35 }
 0x28b   :  { %vm3025_vm4 = vcmp.lt.s32.totalorder %v3004_v59, 3  ;;  %v3032_v29 = vsel %vm3026_vm11, %v3019_v8, 920167782  ;;  %v3035_v9 = vsel %vm3023_vm3, %v3013_v45, %v3016_v14  ;;  %vm3024_vm14 = vcmp.lt.s32.totalorder %v3004_v59, 2 }
 0x28c   :  { %v4488_v5 = vmin.u32 %v3161_v30, %v7106_v61  ;;  %v3033_v33 = vsel %vm3025_vm4, %v3016_v14, %v3032_v29  ;;  %v3036_v39 = vsel %vm3026_vm11, %v3022_v3, 1326507024  ;;  %v3027_v18 = vsel %vm3023_vm3, %v3007_v10, %v3010_v23 }
 0x28d   :  { %v3029_v27 = vsel %vm3025_vm4, %v3013_v45, %v3028_v50  ;;  %v3034_v41 = vsel %vm3024_vm14, %v3031_v13, %v3033_v33  ;;  %v3037_v11 = vsel %vm3025_vm4, %v3019_v8, %v3036_v39  ;;  %v8761_v35 = vxor.u32 2147483648, %v6932_v46 }
 0x28e   :  { %v3163_v24 = vclz %v4488_v5  ;;  %v3038_v6 = vsel %vm3024_vm14, %v3035_v9, %v3037_v11  ;;  %v7113_v17 = vmul.u32.u64.low %v3039_v37, %v3034_v41  ;;  %v7114_v31 = vmul.u32.u64.high %v3039_v37, %v3034_v41, %v7113_v17  ;;  %v213_v5 = vpop.permute.xlu1 %212 }
 0x28f   :  { %v7122_v57 = vsel %vm8646_vm13, %v8761_v35, %v6932_v46  ;;  %v7124_v59 = vmul.u32.u64.low %v3039_v37, %v3038_v6  ;;  %v7125_v14 = vmul.u32.u64.high %v3039_v37, %v3038_v6, %v7124_v59  ;;  %v3313_v3 = vadd.s32 1, %v4495_v21 }
 0x290   :  { %v2962_v23 = vor.u32 %v2961_v22, %v2960_v43  ;;  %v7128_v8 = vsel %vm4478_vm5, 0, %v4477_v16  ;;  %v3030_v45 = vsel %vm3024_vm14, %v3027_v18, %v3029_v27  ;;  %v7132_v30 = vadd.f32 %v6834_v38, %v7080_v32 }
 0x291   :  { %v8762_v50 = vxor.u32 2147483648, %v7068_v51  ;;  %v2659_v13 = vxor.u32 2147483648, %v7083_v4  ;;  %v4489_v10 = vadd.s32 4294967294, %v3163_v24  ;;  %vm3314_vm4 = vcmp.gt.s32.totalorder %v3313_v3, 0 }
 0x292   :  { %v2967_v22 = vand.u32 2147483647, %v2966_v42  ;;  %v3049_v43 = vadd.s32 1, %v7114_v31  ;;  %v3311_v16 = vor.u32 8388608, %v3310_v53  ;;  %v3315_v21 = vsel %vm3314_vm4, %v3313_v3, 0 }
 0x293   :  { %v7139_v46 = vsel %vm8632_vm0, %v8762_v50, %v7068_v51  ;;  %v2855_v29 = vsub.s32 32, %v7128_v8  ;;  %v2859_v32 = vsub.s32 4294967266, %v7128_v8  ;;  %v3046_v9 = vmul.u32 %v3039_v37, %v3030_v45 }
 0x294   :  { %8763 = vst [vmem:[#allocation73_spill] sm:$0xff] %v7139_v46  ;;  %vm3048_vm14 = vc.u32 %v7125_v14, %v7113_v17  ;;  %v2969_v51 = vcvt.s32.f32 %v2962_v23  ;;  %v7148_v39 = vshrl.u32 %v3315_v21, 5  ;;  %v3202_v42 = vand.u32 2139095040, %v7132_v30 }
 0x295   :  { %v3050_v33 = vsel %vm3048_vm14, %v3049_v43, %v7114_v31  ;;  %v2839_v53 = vadd.s32 %v6981_v62, %v6994_v44  ;;  %vm4490_vm3 = vcmp.lt.s32.totalorder %v4489_v10, 0  ;;  %v3317_v27 = vand.u32 31, %v3315_v21 }
 0x296   :  { %v3051_v18 = vadd.s32 %v3050_v33, %v3046_v9  ;;  %v7153_v41 = vmul.f32 %v2969_v51, %v2967_v22  ;;  %v7155_v37 = vshll.u32 %v3311_v16, 8  ;;  %v250_v24 = vmul.f32 %v6815_v56, %v213_v5 }
 0x297   :  { %v2857_v6 = vshrl.u32 %v2839_v53, %v2855_v29  ;;  %v7159_v31 = vadd.s32 127, %v2859_v32  ;;  %v3318_v59 = vsub.s32 32, %v3317_v27  ;;  %v7161_v3 = vsel %vm4490_vm3, 0, %v4489_v10 }
 0x298   :  { %v3052_v35 = vadd.s32 536870912, %v3051_v18  ;;  %v3320_v62 = vshll.u32 %v8669_v40, %v3317_v27  ;;  %vm3335_vm11 = vcmp.lt.s32.totalorder %v7148_v39, 1  ;;  %v3203_v44 = vshrl.u32 %v3202_v42, 23 }
 0x299   :  { %v3321_v45 = vshrl.u32 %v8676_v1, %v3318_v59  ;;  %v3323_v50 = vshll.u32 %v8676_v1, %v3317_v27  ;;  %v3324_v22 = vshrl.u32 %v8677_v55, %v3318_v59  ;;  %v3326_v43 = vshll.u32 %v8677_v55, %v3317_v27 }
 0x29a   :  { %v7165_v23 = vshrl.u32 %v3052_v35, 30  ;;  %v3327_v16 = vshrl.u32 %v8678_v47, %v3318_v59  ;;  %v3329_v10 = vshll.u32 %v8678_v47, %v3317_v27  ;;  %v3330_v21 = vshrl.u32 %v8690_v0, %v3318_v59 }
 0x29b   :  { %vm8645_vm5 = vcmp.lt.s32.totalorder %v6658_v48, 0  ;;  %v3322_v32 = vor.u32 %v3321_v45, %v3320_v62  ;;  %v3325_v9 = vor.u32 %v3324_v22, %v3323_v50  ;;  %vm3336_vm4 = vcmp.lt.s32.totalorder %v7148_v39, 2 }
 0x29c   :  { %8764 = vst [vmem:[#allocation74_spill] sm:$0xff] %v7165_v23  ;;  %v3054_v29 = vshll.u32 %v7165_v23, 30  ;;  %v3328_v5 = vor.u32 %v3327_v16, %v3326_v43  ;;  %v3331_v51 = vor.u32 %v3330_v21, %v3329_v10  ;;  %v3332_v33 = vshll.u32 %v8690_v0, %v3317_v27 }
 0x29d   :  { %v3333_v42 = vshrl.u32 %v8681_v36, %v3318_v59  ;;  %vm3337_vm14 = vcmp.lt.s32.totalorder %v7148_v39, 3  ;;  %vm3338_vm3 = vcmp.lt.s32.totalorder %v7148_v39, 4  ;;  %v3343_v35 = vsel %vm3335_vm11, %v3322_v32, %v3325_v9 }
 0x29e   :  { %v7179_v53 = vsub.s32 %v3051_v18, %v3054_v29  ;;  %v3319_v62 = vshrl.u32 %v8669_v40, %v3318_v59  ;;  %v3340_v50 = vsel %vm3338_vm3, %v3328_v5, 2102212464  ;;  %v3344_v22 = vsel %vm3338_vm3, %v3331_v51, 920167782 }
 0x29f   :  { %v3334_v45 = vor.u32 %v3333_v42, %v3332_v33  ;;  %v3345_v27 = vsel %vm3337_vm14, %v3328_v5, %v3344_v22  ;;  %v3347_v18 = vsel %vm3335_vm11, %v3325_v9, %v3328_v5  ;;  %v4491_v16 = vadd.s32 4294967169, %v3203_v44 }
 0x2a0   :  { %v3057_v43 = vsub.s32 0, %v7179_v53  ;;  %v3339_v10 = vsel %vm3335_vm11, %v3319_v62, %v3322_v32  ;;  %v3341_v21 = vsel %vm3337_vm14, %v3325_v9, %v3340_v50  ;;  %v3346_v59 = vsel %vm3336_vm4, %v3343_v35, %v3345_v27 }
 0x2a1   :  { %v3348_v29 = vsel %vm3338_vm3, %v3334_v45, 1326507024  ;;  %v7201_v22 = vmul.u32.u64.low %v7155_v37, %v3346_v59  ;;  %v7202_v11 = vmul.u32.u64.high %v7155_v37, %v3346_v59, %v7201_v22  ;;  %v2856_v44 = vshll.u32 %v7036_v28, %v7128_v8 }
 0x2a2   :  { %v4484_v33 = vmin.u32 %v3057_v43, %v7179_v53  ;;  %v3349_v42 = vsel %vm3337_vm14, %v3331_v51, %v3348_v29  ;;  %v3167_v32 = vsub.s32 32, %v7161_v3  ;;  %v7211_v5 = vadd.f32 %v6834_v38, %v250_v24 }
 0x2a3   :  { %v3350_v9 = vsel %vm3336_vm4, %v3347_v18, %v3349_v42  ;;  %v3209_v45 = vadd.s32 1, %v4491_v16  ;;  %v7222_v28 = vsel %vm8645_vm5, %v2659_v13, %v7083_v4  ;;  %v7224_v8 = vor.u32 %v2857_v6, %v2856_v44  ;;  %v208_v16 = vpop.permute.xlu0 %207 }
 0x2a4   :  { %v3059_v35 = vclz %v4484_v33  ;;  %v7214_v62 = vmul.u32.u64.low %v7155_v37, %v3350_v9  ;;  %v7215_v51 = vmul.u32.u64.high %v7155_v37, %v3350_v9, %v7214_v62  ;;  %v3151_v50 = vadd.s32 %v7041_v58, %v7051_v60 }
 0x2a5   :  { %v3342_v24 = vsel %vm3336_vm4, %v3339_v10, %v3341_v21  ;;  %v2861_v43 = vshll.u32 %v7159_v31, 23  ;;  %v3171_v27 = vsub.s32 4294967266, %v7161_v3  ;;  %v3361_v18 = vadd.s32 1, %v7202_v11 }
 0x2a6   :  { %vm3210_vm11 = vcmp.gt.s32.totalorder %v3209_v45, 0  ;;  %v3169_v59 = vshrl.u32 %v3151_v50, %v3167_v32  ;;  %v8765_v4 = vand.u32 2147483647, %v7132_v30  ;;  %v3514_v29 = vand.u32 2139095040, %v7211_v5 }
 0x2a7   :  { %v3211_v6 = vsel %vm3210_vm11, %v3209_v45, 0  ;;  %v4485_v60 = vadd.s32 4294967294, %v3059_v35  ;;  %v3358_v39 = vmul.u32 %v7155_v37, %v3342_v24  ;;  %vm3360_vm4 = vc.u32 %v7215_v51, %v7201_v22 }
 0x2a8   :  { %v3206_v13 = vand.u32 8388607, %v8765_v4  ;;  %v3168_v31 = vshll.u32 %v7106_v61, %v7161_v3  ;;  %v3362_v10 = vsel %vm3360_vm4, %v3361_v18, %v7202_v11  ;;  %v3213_v21 = vand.u32 31, %v3211_v6 }
 0x2a9   :  { %v7244_v33 = vmul.f32 %v6815_v56, %v208_v16  ;;  %v7246_v42 = vor.u32 4788187, %v2861_v43  ;;  %v3172_v32 = vadd.s32 127, %v3171_v27  ;;  %v3363_v9 = vadd.s32 %v3362_v10, %v3358_v39 }
 0x2aa   :  { %v7249_v35 = vor.u32 %v3169_v59, %v3168_v31  ;;  %v3207_v37 = vor.u32 8388608, %v3206_v13  ;;  %v3214_v62 = vsub.s32 32, %v3213_v21  ;;  %v3515_v45 = vshrl.u32 %v3514_v29, 23 }
 0x2ab   :  { %vm4486_vm14 = vcmp.lt.s32.totalorder %v4485_v60, 0  ;;  %v3364_v50 = vadd.s32 536870912, %v3363_v9  ;;  %v3216_v61 = vshll.u32 %v8669_v40, %v3213_v21  ;;  %v3219_v11 = vshll.u32 %v8676_v1, %v3213_v21 }
 0x2ac   :  { %v3217_v56 = vshrl.u32 %v8676_v1, %v3214_v62  ;;  %v3220_v3 = vshrl.u32 %v8677_v55, %v3214_v62  ;;  %v3222_v24 = vshll.u32 %v8677_v55, %v3213_v21  ;;  %v3223_v43 = vshrl.u32 %v8678_v47, %v3214_v62 }
 0x2ad   :  { %v7257_v27 = vshrl.u32 %v3364_v50, 30  ;;  %v3212_v18 = vshrl.u32 %v3211_v6, 5  ;;  %v3225_v16 = vshll.u32 %v8678_v47, %v3213_v21  ;;  %v3226_v59 = vshrl.u32 %v8690_v0, %v3214_v62 }
 0x2ae   :  { %v3173_v4 = vshll.u32 %v3172_v32, 23  ;;  %v3218_v13 = vor.u32 %v3217_v56, %v3216_v61  ;;  %v3221_v29 = vor.u32 %v3220_v3, %v3219_v11  ;;  %v3224_v39 = vor.u32 %v3223_v43, %v3222_v24 }
 0x2af   :  { %8766 = vst [vmem:[#allocation75_spill] sm:$0xff] %v7257_v27  ;;  %v3366_v31 = vshll.u32 %v7257_v27, 30  ;;  %v3227_v10 = vor.u32 %v3226_v59, %v3225_v16  ;;  %v3247_v58 = vshll.u32 %v3207_v37, 8  ;;  %v3062_v52 = vsel %vm4486_vm14, 0, %v4485_v60 }
 0x2b0   :  { %v3228_v50 = vshll.u32 %v8690_v0, %v3213_v21  ;;  %v3229_v6 = vshrl.u32 %v8681_v36, %v3214_v62  ;;  %v4503_v23 = vadd.s32 4294967169, %v3515_v45  ;;  %vm3231_vm3 = vcmp.lt.s32.totalorder %v3212_v18, 1 }
 0x2b1   :  { %v7266_v46 = vsub.s32 %v3363_v9, %v3366_v31  ;;  %vm3233_vm11 = vcmp.lt.s32.totalorder %v3212_v18, 3  ;;  %vm3234_vm4 = vcmp.lt.s32.totalorder %v3212_v18, 4  ;;  %v3239_v11 = vsel %vm3231_vm3, %v3218_v13, %v3221_v29 }
 0x2b2   :  { %v3230_v32 = vor.u32 %v3229_v6, %v3228_v50  ;;  %v3236_v61 = vsel %vm3234_vm4, %v3224_v39, 2102212464  ;;  %v3240_v56 = vsel %vm3234_vm4, %v3227_v10, 920167782  ;;  %v3215_v3 = vshrl.u32 %v8669_v40, %v3214_v62 }
 0x2b3   :  { %v3369_v37 = vsub.s32 0, %v7266_v46  ;;  %vm3232_vm14 = vcmp.lt.s32.totalorder %v3212_v18, 2  ;;  %v3241_v60 = vsel %vm3233_vm11, %v3224_v39, %v3240_v56  ;;  %v3063_v21 = vsub.s32 32, %v3062_v52 }
 0x2b4   :  { %v3242_v45 = vsel %vm3232_vm14, %v3239_v11, %v3241_v60  ;;  %v3243_v9 = vsel %vm3231_vm3, %v3221_v29, %v3224_v39  ;;  %v3244_v24 = vsel %vm3234_vm4, %v3230_v32, 1326507024  ;;  %v3235_v16 = vsel %vm3231_vm3, %v3215_v3, %v3218_v13 }
 0x2b5   :  { %v4496_v43 = vmin.u32 %v3369_v37, %v7266_v46  ;;  %v3237_v59 = vsel %vm3233_vm11, %v3221_v29, %v3236_v61  ;;  %v3245_v31 = vsel %vm3233_vm11, %v3227_v10, %v3244_v24  ;;  %v3067_v50 = vsub.s32 4294967266, %v3062_v52 }
 0x2b6   :  { %v3246_v62 = vsel %vm3232_vm14, %v3243_v9, %v3245_v31  ;;  %v7279_v6 = vmul.u32.u64.low %v3247_v58, %v3242_v45  ;;  %v7280_v44 = vmul.u32.u64.high %v3247_v58, %v3242_v45, %v7279_v6  ;;  %v3047_v11 = vadd.s32 %v7113_v17, %v7125_v14 }
 0x2b7   :  { %v3371_v39 = vclz %v4496_v43  ;;  %v7285_v32 = vmul.u32.u64.low %v3247_v58, %v3246_v62  ;;  %v7286_v56 = vmul.u32.u64.high %v3247_v58, %v3246_v62, %v7285_v32  ;;  %v7289_v37 = vor.u32 4788187, %v3173_v4 }
 0x2b8   :  { %v3238_v29 = vsel %vm3232_vm14, %v3235_v16, %v3237_v59  ;;  %v3521_v10 = vadd.s32 1, %v4503_v23  ;;  %v3065_v3 = vshrl.u32 %v3047_v11, %v3063_v21  ;;  %v7295_v45 = vadd.f32 %v6834_v38, %v7244_v33 }
 0x2b9   :  { %v4497_v60 = vadd.s32 4294967294, %v3371_v39  ;;  %v3068_v17 = vadd.s32 127, %v3067_v50  ;;  %v3257_v14 = vadd.s32 1, %v7280_v44  ;;  %v8768_v9 = vand.u32 2147483647, %v7211_v5 }
 0x2ba   :  { %8767 = vst [vmem:[#allocation76_spill] sm:$0xff] %v7295_v45  ;;  %vm3522_vm3 = vcmp.gt.s32.totalorder %v3521_v10, 0  ;;  %v3064_v4 = vshll.u32 %v7179_v53, %v3062_v52  ;;  %v3254_v18 = vmul.u32 %v3247_v58, %v3238_v29  ;;  %vm3256_vm11 = vc.u32 %v7286_v56, %v7279_v6 }
 0x2bb   :  { %v3518_v24 = vand.u32 8388607, %v8768_v9  ;;  %v3523_v23 = vsel %vm3522_vm3, %v3521_v10, 0  ;;  %vm4498_vm4 = vcmp.lt.s32.totalorder %v4497_v60, 0  ;;  %v3258_v38 = vsel %vm3256_vm11, %v3257_v14, %v7280_v44 }
 0x2bc   :  { %v3525_v33 = vand.u32 31, %v3523_v23  ;;  %v7305_v43 = vor.u32 %v3065_v3, %v3064_v4  ;;  %v3359_v16 = vadd.s32 %v7201_v22, %v7215_v51  ;;  %v3259_v59 = vadd.s32 %v3258_v38, %v3254_v18 }
 0x2bd   :  { %v3069_v52 = vshll.u32 %v3068_v17, 23  ;;  %v3519_v53 = vor.u32 8388608, %v3518_v24  ;;  %v3410_v50 = vand.u32 2139095040, %v7295_v45  ;;  %v3374_v62 = vsel %vm4498_vm4, 0, %v4497_v60 }
 0x2be   :  { %v3526_v58 = vsub.s32 32, %v3525_v33  ;;  %v3260_v11 = vadd.s32 536870912, %v3259_v59  ;;  %v3528_v39 = vshll.u32 %v8669_v40, %v3525_v33  ;;  %v3531_v44 = vshll.u32 %v8676_v1, %v3525_v33 }
 0x2bf   :  { %v3534_v22 = vshll.u32 %v8677_v55, %v3525_v33  ;;  %v3524_v3 = vshrl.u32 %v3523_v23, 5  ;;  %v3537_v17 = vshll.u32 %v8678_v47, %v3525_v33  ;;  %v3070_v14 = vor.u32 4788187, %v3069_v52 }
 0x2c0   :  { %v3529_v32 = vshrl.u32 %v8676_v1, %v3526_v58  ;;  %v3532_v29 = vshrl.u32 %v8677_v55, %v3526_v58  ;;  %v3535_v51 = vshrl.u32 %v8678_v47, %v3526_v58  ;;  %v7317_v10 = vshrl.u32 %v3260_v11, 30 }
 0x2c1   :  { %v3538_v60 = vshrl.u32 %v8690_v0, %v3526_v58  ;;  %v3559_v31 = vshll.u32 %v3519_v53, 8  ;;  %v3411_v61 = vshrl.u32 %v3410_v50, 23  ;;  %vm8635_vm14 = vcmp.lt.s32.totalorder %v6694_v12, 0 }
 0x2c2   :  { %8769 = vst [vmem:[#allocation77_spill] sm:$0xff] %v7317_v10  ;;  %v3530_v9 = vor.u32 %v3529_v32, %v3528_v39  ;;  %v3533_v24 = vor.u32 %v3532_v29, %v3531_v44  ;;  %v3536_v4 = vor.u32 %v3535_v51, %v3534_v22  ;;  %v3262_v18 = vshll.u32 %v7317_v10, 30 }
 0x2c3   :  { %v3539_v38 = vor.u32 %v3538_v60, %v3537_v17  ;;  %v3375_v21 = vsub.s32 32, %v3374_v62  ;;  %v3379_v13 = vsub.s32 4294967266, %v3374_v62  ;;  %v3540_v11 = vshll.u32 %v8690_v0, %v3525_v33 }
 0x2c4   :  { %v3541_v23 = vshrl.u32 %v8681_v36, %v3526_v58  ;;  %v7325_v27 = vsub.s32 %v3259_v59, %v3262_v18  ;;  %vm3543_vm3 = vcmp.lt.s32.totalorder %v3524_v3, 1  ;;  %vm3545_vm11 = vcmp.lt.s32.totalorder %v3524_v3, 3 }
 0x2c5   :  { %vm3546_vm4 = vcmp.lt.s32.totalorder %v3524_v3, 4  ;;  %v3551_v44 = vsel %vm3543_vm3, %v3530_v9, %v3533_v24  ;;  %v3527_v50 = vshrl.u32 %v8669_v40, %v3526_v58  ;;  %vm3544_vm0 = vcmp.lt.s32.totalorder %v3524_v3, 2 }
 0x2c6   :  { %v3542_v52 = vor.u32 %v3541_v23, %v3540_v11  ;;  %v3548_v39 = vsel %vm3546_vm4, %v3536_v4, 2102212464  ;;  %v3552_v32 = vsel %vm3546_vm4, %v3539_v38, 920167782  ;;  %v3265_v53 = vsub.s32 0, %v7325_v27 }
 0x2c7   :  { %v3553_v29 = vsel %vm3545_vm11, %v3536_v4, %v3552_v32  ;;  %v3377_v33 = vshrl.u32 %v3359_v16, %v3375_v21  ;;  %v3555_v59 = vsel %vm3543_vm3, %v3533_v24, %v3536_v4  ;;  %v3380_v17 = vadd.s32 127, %v3379_v13 }
 0x2c8   :  { %v3554_v22 = vsel %vm3544_vm0, %v3551_v44, %v3553_v29  ;;  %v3556_v51 = vsel %vm3546_vm4, %v3542_v52, 1326507024  ;;  %v3547_v60 = vsel %vm3543_vm3, %v3527_v50, %v3530_v9  ;;  %v3549_v18 = vsel %vm3545_vm11, %v3533_v24, %v3548_v39 }
 0x2c9   :  { %v3557_v11 = vsel %vm3545_vm11, %v3539_v38, %v3556_v51  ;;  %v7337_v10 = vmul.u32.u64.low %v3559_v31, %v3554_v22  ;;  %v7338_v58 = vmul.u32.u64.high %v3559_v31, %v3554_v22, %v7337_v10  ;;  %v4499_v32 = vadd.s32 4294967169, %v3411_v61 }
 0x2ca   :  { %v3558_v23 = vsel %vm3544_vm0, %v3555_v59, %v3557_v11  ;;  %v8770_v21 = vand.u32 2147483647, %v7246_v42  ;;  %v8771_v16 = vcvt.s32.f32 %v7224_v8  ;;  %v4492_v13 = vmin.u32 %v3265_v53, %v7325_v27  ;;  %v8777_v11 = vld [vmem:[#allocation9_spill] sm:$0xff] }
 0x2cb   :  { %v7348_v9 = vmul.u32.u64.low %v3559_v31, %v3558_v23  ;;  %v7349_v52 = vmul.u32.u64.high %v3559_v31, %v3558_v23, %v7348_v9  ;;  %v8772_v24 = vand.u32 2147483647, %v7289_v37  ;;  %v8773_v38 = vcvt.s32.f32 %v7249_v35 }
 0x2cc   :  { %v7345_v4 = vmul.f32 %v8771_v16, %v8770_v21  ;;  %v3376_v44 = vshll.u32 %v7266_v46, %v3374_v62  ;;  %v3550_v61 = vsel %vm3544_vm0, %v3547_v60, %v3549_v18  ;;  %v3417_v42 = vadd.s32 1, %v4499_v32 }
 0x2cd   :  { %v7355_v39 = vmul.f32 %v8773_v38, %v8772_v24  ;;  %v8774_v8 = vxor.u32 2147483648, %v7153_v41  ;;  %v3071_v50 = vand.u32 2147483647, %v3070_v14  ;;  %v3073_v29 = vcvt.s32.f32 %v7305_v43 }
 0x2ce   :  { %v8776_v37 = vand.u32 2147483647, %v7295_v45  ;;  %v7369_v22 = vor.u32 %v3377_v33, %v3376_v44  ;;  %v3381_v59 = vshll.u32 %v3380_v17, 23  ;;  %v3569_v46 = vadd.s32 1, %v7338_v58 }
 0x2cf   :  { %v7364_v53 = vsel %vm8635_vm14, %v8774_v8, %v7153_v41  ;;  %vm3418_vm0 = vcmp.gt.s32.totalorder %v3417_v42, 0  ;;  %v3267_v62 = vclz %v4492_v13  ;;  %v3566_v3 = vmul.u32 %v3559_v31, %v3550_v61 }
 0x2d0   :  { %8775 = vst [vmem:[#allocation78_spill] sm:$0xff] %v7364_v53  ;;  %v3414_v35 = vand.u32 8388607, %v8776_v37  ;;  %vm3568_vm3 = vc.u32 %v7349_v52, %v7337_v10  ;;  %v3419_v51 = vsel %vm3418_vm0, %v3417_v42, 0  ;;  %v7377_v18 = vmul.f32 %v3073_v29, %v3071_v50 }
 0x2d1   :  { %v3570_v43 = vsel %vm3568_vm3, %v3569_v46, %v7338_v58  ;;  %v3421_v60 = vand.u32 31, %v3419_v51  ;;  %v8636_v23 = vand.u32 2147483647, %v8777_v11  ;;  %v7380_v32 = vor.u32 4788187, %v3381_v59 }
 0x2d2   :  { %v3571_v33 = vadd.s32 %v3570_v43, %v3566_v3  ;;  %v3415_v17 = vor.u32 8388608, %v3414_v35  ;;  %v7385_v21 = vadd.s32 %v7279_v6, %v7286_v56  ;;  %v4493_v13 = vadd.s32 4294967294, %v3267_v62 }
 0x2d3   :  { %v3422_v16 = vsub.s32 32, %v3421_v60  ;;  %v3424_v58 = vshll.u32 %v8669_v40, %v3421_v60  ;;  %v3427_v24 = vshll.u32 %v8676_v1, %v3421_v60  ;;  %v3430_v61 = vshll.u32 %v8677_v55, %v3421_v60 }
 0x2d4   :  { %v3572_v9 = vadd.s32 536870912, %v3571_v33  ;;  %v3420_v50 = vshrl.u32 %v3419_v51, 5  ;;  %v3433_v6 = vshll.u32 %v8678_v47, %v3421_v60  ;;  %v3383_v29 = vand.u32 2147483647, %v7380_v32 }
 0x2d5   :  { %v3425_v38 = vshrl.u32 %v8676_v1, %v3422_v16  ;;  %v3428_v44 = vshrl.u32 %v8677_v55, %v3422_v16  ;;  %v3431_v42 = vshrl.u32 %v8678_v47, %v3422_v16  ;;  %v3434_v56 = vshrl.u32 %v8690_v0, %v3422_v16 }
 0x2d6   :  { %v7393_v8 = vshrl.u32 %v3572_v9, 30  ;;  %v3455_v3 = vshll.u32 %v3415_v17, 8  ;;  %v7401_v43 = vand.u32 8388607, %v8636_v23  ;;  %vm4494_vm11 = vcmp.lt.s32.totalorder %v4493_v13, 0 }
 0x2d7   :  { %v3426_v37 = vor.u32 %v3425_v38, %v3424_v58  ;;  %v3429_v35 = vor.u32 %v3428_v44, %v3427_v24  ;;  %v3432_v59 = vor.u32 %v3431_v42, %v3430_v61  ;;  %v3435_v62 = vor.u32 %v3434_v56, %v3433_v6 }
 0x2d8   :  { %8778 = vst [vmem:[#allocation9_spill] sm:$0xff] %v7393_v8  ;;  %v3574_v46 = vshll.u32 %v7393_v8, 30  ;;  %v3423_v51 = vshrl.u32 %v8669_v40, %v3422_v16  ;;  %v3436_v9 = vshll.u32 %v8690_v0, %v3421_v60  ;;  %v3437_v14 = vshrl.u32 %v8681_v36, %v3422_v16 }
 0x2d9   :  { %vm3439_vm4 = vcmp.lt.s32.totalorder %v3420_v50, 1  ;;  %vm3441_vm0 = vcmp.lt.s32.totalorder %v3420_v50, 3  ;;  %vm3442_vm3 = vcmp.lt.s32.totalorder %v3420_v50, 4  ;;  %vm3440_vm14 = vcmp.lt.s32.totalorder %v3420_v50, 2 }
 0x2da   :  { %v7406_v41 = vsub.s32 %v3571_v33, %v3574_v46  ;;  %v3438_v32 = vor.u32 %v3437_v14, %v3436_v9  ;;  %v3444_v58 = vsel %vm3442_vm3, %v3432_v59, 2102212464  ;;  %v3447_v24 = vsel %vm3439_vm4, %v3426_v37, %v3429_v35  ;;  %v8779_v46 = vld [vmem:[#allocation17_spill] sm:$0xff] }
 0x2db   :  { %v3448_v17 = vsel %vm3442_vm3, %v3435_v62, 920167782  ;;  %v3443_v44 = vsel %vm3439_vm4, %v3423_v51, %v3426_v37  ;;  %v3445_v42 = vsel %vm3441_vm0, %v3429_v35, %v3444_v58  ;;  %v3451_v6 = vsel %vm3439_vm4, %v3429_v35, %v3432_v59  ;;  %v8780_v37 = vld [vmem:[#allocation22_spill] sm:$0xff] }
 0x2dc   :  { %v3577_v38 = vsub.s32 0, %v7406_v41  ;;  %v3449_v61 = vsel %vm3441_vm0, %v3432_v59, %v3448_v17  ;;  %v3452_v16 = vsel %vm3442_vm3, %v3438_v32, 1326507024  ;;  %v3270_v33 = vsel %vm4494_vm11, 0, %v4493_v13 }
 0x2dd   :  { %v3450_v60 = vsel %vm3440_vm14, %v3447_v24, %v3449_v61  ;;  %v3453_v14 = vsel %vm3441_vm0, %v3435_v62, %v3452_v16  ;;  %v304_v9 = vshll.u32 %v8669_v40, %v8779_v46  ;;  %v305_v51 = vshrl.u32 %v8676_v1, %v8780_v37 }
 0x2de   :  { %v4504_v56 = vmin.u32 %v3577_v38, %v7406_v41  ;;  %v3454_v23 = vsel %vm3440_vm14, %v3451_v6, %v3453_v14  ;;  %v7416_v31 = vmul.u32.u64.low %v3455_v3, %v3450_v60  ;;  %v7417_v8 = vmul.u32.u64.high %v3455_v3, %v3450_v60, %v7416_v31 }
 0x2df   :  { %v3446_v58 = vsel %vm3440_vm14, %v3443_v44, %v3445_v42  ;;  %v7422_v35 = vmul.u32.u64.low %v3455_v3, %v3454_v23  ;;  %v7423_v59 = vmul.u32.u64.high %v3455_v3, %v3454_v23, %v7422_v35  ;;  %v308_v13 = vshrl.u32 %v8677_v55, %v8780_v37 }
 0x2e0   :  { %v3271_v50 = vsub.s32 32, %v3270_v33  ;;  %v3579_v62 = vclz %v4504_v56  ;;  %v307_v32 = vshll.u32 %v8676_v1, %v8779_v46  ;;  %v311_v24 = vshrl.u32 %v8678_v47, %v8780_v37 }
 0x2e1   :  { %v3275_v17 = vsub.s32 4294967266, %v3270_v33  ;;  %v310_v38 = vshll.u32 %v8677_v55, %v8779_v46  ;;  %v314_v44 = vshrl.u32 %v8690_v0, %v8780_v37  ;;  %v317_v23 = vshrl.u32 %v8681_v36, %v8780_v37 }
 0x2e2   :  { %v3462_v61 = vmul.u32 %v3455_v3, %v3446_v58  ;;  %v3465_v42 = vadd.s32 1, %v7417_v8  ;;  %v313_v60 = vshll.u32 %v8678_v47, %v8779_v46  ;;  %v316_v6 = vshll.u32 %v8690_v0, %v8779_v46 }
 0x2e3   :  { %vm3464_vm14 = vc.u32 %v7423_v59, %v7416_v31  ;;  %v306_v16 = vor.u32 %v305_v51, %v304_v9  ;;  %v309_v56 = vor.u32 %v308_v13, %v307_v32  ;;  %v312_v14 = vor.u32 %v311_v24, %v310_v38 }
 0x2e4   :  { %v4505_v35 = vadd.s32 4294967294, %v3579_v62  ;;  %v3466_v53 = vsel %vm3464_vm14, %v3465_v42, %v7417_v8  ;;  %v315_v12 = vor.u32 %v314_v44, %v313_v60  ;;  %v318_v25 = vor.u32 %v317_v23, %v316_v6  ;;  %v8782_v62 = vld [vmem:[#allocation16_spill] sm:$0xff] }
 0x2e5   :  { %vm8649_vm11 = vcmp.lt.s32.totalorder %v6837_v63, 0  ;;  %vm8648_vm4 = vcmp.lt.s32.totalorder %v6849_v19, 0  ;;  %v8781_v3 = vcvt.s32.f32 %v7369_v22  ;;  %v3467_v46 = vadd.s32 %v3466_v53, %v3462_v61 }
 0x2e6   :  { %v295_v45 = vor.u32 8388608, %v7401_v43  ;;  %v303_v9 = vshrl.u32 %v8669_v40, %v8780_v37  ;;  %v3272_v51 = vshll.u32 %v7325_v27, %v3270_v33  ;;  %v3273_v8 = vshrl.u32 %v7385_v21, %v3271_v50 }
 0x2e7   :  { %v7449_v58 = vmul.f32 %v8781_v3, %v3383_v29  ;;  %v3276_v13 = vadd.s32 127, %v3275_v17  ;;  %vm322_vm0 = vcmp.lt.s32.totalorder %v8782_v62, 4  ;;  %v3468_v32 = vadd.s32 536870912, %v3467_v46 }
 0x2e8   :  { %vm319_vm3 = vcmp.lt.s32.totalorder %v8782_v62, 1  ;;  %vm320_vm14 = vcmp.lt.s32.totalorder %v8782_v62, 2  ;;  %v324_v22 = vsel %vm322_vm0, %v312_v14, 2102212464  ;;  %vm4506_vm5 = vcmp.lt.s32.totalorder %v4505_v35, 0 }
 0x2e9   :  { %v327_v53 = vsel %vm319_vm3, %v306_v16, %v309_v56  ;;  %v328_v29 = vsel %vm322_vm0, %v315_v12, 920167782  ;;  %v332_v43 = vsel %vm322_vm0, %v318_v25, 1326507024  ;;  %v7459_v24 = vshrl.u32 %v3468_v32, 30 }
 0x2ea   :  { %vm321_vm13 = vcmp.lt.s32.totalorder %v8782_v62, 3  ;;  %v323_v27 = vsel %vm319_vm3, %v303_v9, %v306_v16  ;;  %v331_v33 = vsel %vm319_vm3, %v309_v56, %v312_v14  ;;  %v335_v17 = vshll.u32 %v295_v45, 8 }
 0x2eb   :  { %v325_v21 = vsel %vm321_vm13, %v309_v56, %v324_v22  ;;  %v329_v37 = vsel %vm321_vm13, %v312_v14, %v328_v29  ;;  %v333_v50 = vsel %vm321_vm13, %v315_v12, %v332_v43  ;;  %v7462_v38 = vor.u32 %v3273_v8, %v3272_v51  ;;  %v8785_v51 = vld [vmem:[#allocation11_spill] sm:$0xff] }
 0x2ec   :  { %v3277_v44 = vshll.u32 %v3276_v13, 23  ;;  %v3470_v23 = vshll.u32 %v7459_v24, 30  ;;  %v330_v61 = vsel %vm320_vm14, %v327_v53, %v329_v37  ;;  %v7468_v25 = vsel %vm4506_vm5, 0, %v4505_v35  ;;  %v8788_v13 = vld [vmem:[#allocation23_spill] sm:$0xff] }
 0x2ed   :  { %v334_v42 = vsel %vm320_vm14, %v331_v33, %v333_v50  ;;  %v7472_v60 = vmul.u32.u64.low %v335_v17, %v330_v61  ;;  %v7473_v6 = vmul.u32.u64.high %v335_v17, %v330_v61, %v7472_v60  ;;  %v326_v45 = vsel %vm320_vm14, %v323_v27, %v325_v21  ;;  %v8786_v27 = vld [vmem:[#allocation24_spill] sm:$0xff]  ;;  %v8787_v50 = vld [vmem:[#allocation18_spill] sm:$0xff] }
 0x2ee   :  { %v7476_v12 = vsub.s32 %v3467_v46, %v3470_v23  ;;  %v7480_v16 = vmul.u32.u64.low %v335_v17, %v334_v42  ;;  %v7481_v56 = vmul.u32.u64.high %v335_v17, %v334_v42, %v7480_v16  ;;  %v8783_v14 = vxor.u32 2147483648, %v7345_v4 }
 0x2ef   :  { %v8784_v3 = vxor.u32 2147483648, %v7355_v39  ;;  %v3075_v9 = vxor.u32 2147483648, %v7377_v18  ;;  %v8647_v8 = vand.u32 2147483647, %v8785_v51  ;;  %v3278_v62 = vor.u32 4788187, %v3277_v44 }
 0x2f0   :  { %v7488_v35 = vsel %vm8649_vm11, %v8783_v14, %v7345_v4  ;;  %v3567_v32 = vadd.s32 %v7337_v10, %v7349_v52  ;;  %v3473_v4 = vsub.s32 0, %v7476_v12  ;;  %v3281_v22 = vcvt.s32.f32 %v7462_v38 }
 0x2f1   :  { %v7495_v46 = vsel %vm8648_vm4, %v8784_v3, %v7355_v39  ;;  %v3587_v53 = vsub.s32 4294967266, %v7468_v25  ;;  %v342_v29 = vmul.u32 %v335_v17, %v326_v45  ;;  %v345_v39 = vadd.s32 1, %v7473_v6 }
 0x2f2   :  { %v4500_v43 = vmin.u32 %v3473_v4, %v7476_v12  ;;  %vm344_vm13 = vc.u32 %v7481_v56, %v7472_v60  ;;  %v409_v33 = vshrl.u32 %v8676_v1, %v8786_v27  ;;  %v412_v10 = vshrl.u32 %v8677_v55, %v8786_v27 }
 0x2f3   :  { %v3583_v52 = vsub.s32 32, %v7468_v25  ;;  %v346_v21 = vsel %vm344_vm13, %v345_v39, %v7473_v6  ;;  %v398_v37 = vand.u32 8388607, %v8647_v8  ;;  %v408_v17 = vshll.u32 %v8669_v40, %v8787_v50 }
 0x2f4   :  { %v3475_v38 = vclz %v4500_v43  ;;  %v347_v44 = vadd.s32 %v346_v21, %v342_v29  ;;  %v411_v23 = vshll.u32 %v8676_v1, %v8787_v50  ;;  %v415_v61 = vshrl.u32 %v8678_v47, %v8786_v27 }
 0x2f5   :  { %v414_v42 = vshll.u32 %v8677_v55, %v8787_v50  ;;  %v417_v6 = vshll.u32 %v8678_v47, %v8787_v50  ;;  %v418_v45 = vshrl.u32 %v8690_v0, %v8786_v27  ;;  %v421_v16 = vshrl.u32 %v8681_v36, %v8786_v27 }
 0x2f6   :  { %v3588_v14 = vadd.s32 127, %v3587_v53  ;;  %v348_v3 = vadd.s32 536870912, %v347_v44  ;;  %v410_v4 = vor.u32 %v409_v33, %v408_v17  ;;  %v413_v29 = vor.u32 %v412_v10, %v411_v23 }
 0x2f7   :  { %vm8651_vm5 = vcmp.lt.s32.totalorder %v6990_v26, 0  ;;  %v3279_v1 = vand.u32 2147483647, %v3278_v62  ;;  %v416_v39 = vor.u32 %v415_v61, %v414_v42  ;;  %v419_v43 = vor.u32 %v418_v45, %v417_v6 }
 0x2f8   :  { %v420_v55 = vshll.u32 %v8690_v0, %v8787_v50  ;;  %vm8650_vm0 = vcmp.lt.s32.totalorder %v7063_v20, 0  ;;  %v3585_v47 = vshrl.u32 %v3567_v32, %v3583_v52  ;;  %v4501_v21 = vadd.s32 4294967294, %v3475_v38 }
 0x2f9   :  { %v7535_v8 = vshrl.u32 %v348_v3, 30  ;;  %vm426_vm3 = vcmp.lt.s32.totalorder %v8788_v13, 4  ;;  %v399_v36 = vor.u32 8388608, %v398_v37  ;;  %vm423_vm14 = vcmp.lt.s32.totalorder %v8788_v13, 1 }
 0x2fa   :  { %v422_v53 = vor.u32 %v421_v16, %v420_v55  ;;  %v432_v62 = vsel %vm426_vm3, %v419_v43, 920167782  ;;  %v3589_v33 = vshll.u32 %v3588_v14, 23  ;;  %vm425_vm13 = vcmp.lt.s32.totalorder %v8788_v13, 3 }
 0x2fb   :  { %v350_v10 = vshll.u32 %v7535_v8, 30  ;;  %v431_v0 = vsel %vm423_vm14, %v410_v4, %v413_v29  ;;  %v7545_v32 = vmul.f32 %v3281_v22, %v3279_v1  ;;  %v3584_v52 = vshll.u32 %v7406_v41, %v7468_v25 }
 0x2fc   :  { %v407_v37 = vshrl.u32 %v8669_v40, %v8786_v27  ;;  %v433_v50 = vsel %vm425_vm13, %v416_v39, %v432_v62  ;;  %vm4502_vm4 = vcmp.lt.s32.totalorder %v4501_v21, 0  ;;  %vm424_vm11 = vcmp.lt.s32.totalorder %v8788_v13, 2 }
 0x2fd   :  { %v7553_v17 = vsub.s32 %v347_v44, %v350_v10  ;;  %v428_v38 = vsel %vm426_vm3, %v416_v39, 2102212464  ;;  %v434_v22 = vsel %vm424_vm11, %v431_v0, %v433_v50  ;;  %v435_v41 = vsel %vm423_vm14, %v413_v29, %v416_v39 }
 0x2fe   :  { %v436_v40 = vsel %vm426_vm3, %v422_v53, 1326507024  ;;  %v439_v25 = vshll.u32 %v399_v36, 8  ;;  %v3586_v27 = vor.u32 %v3585_v47, %v3584_v52  ;;  %v3590_v23 = vor.u32 4788187, %v3589_v33  ;;  %v8790_v33 = vld [vmem:[#allocation5_spill] sm:$0xff] }
 0x2ff   :  { %v353_v44 = vsub.s32 0, %v7553_v17  ;;  %v427_v61 = vsel %vm423_vm14, %v407_v37, %v410_v4  ;;  %v429_v42 = vsel %vm425_vm13, %v413_v29, %v428_v38  ;;  %v437_v6 = vsel %vm425_vm13, %v419_v43, %v436_v40  ;;  %v8797_v38 = vld [vmem:[#allocation29_spill] sm:$0xff] }
 0x300   :  { %v7571_v45 = vmul.u32.u64.low %v439_v25, %v434_v22  ;;  %v7572_v16 = vmul.u32.u64.high %v439_v25, %v434_v22, %v7571_v45  ;;  %v7580_v14 = vsel %vm8651_vm5, %v3075_v9, %v7377_v18  ;;  %v3478_v3 = vsel %vm4502_vm4, 0, %v4501_v21 }
 0x301   :  { %v4380_v4 = vmin.u32 %v353_v44, %v7553_v17  ;;  %v438_v29 = vsel %vm424_vm11, %v435_v41, %v437_v6  ;;  %v8789_v1 = vxor.u32 2147483648, %v7449_v58  ;;  %vm289_vm3 = vcmp.lt.s32.totalorder %v8777_v11, 0 }
 0x302   :  { %v7594_v43 = vmul.u32.u64.low %v439_v25, %v438_v29  ;;  %v7595_v55 = vmul.u32.u64.high %v439_v25, %v438_v29, %v7594_v43  ;;  %v3591_v9 = vand.u32 2147483647, %v3590_v23  ;;  %v430_v21 = vsel %vm424_vm11, %v427_v61, %v429_v42 }
 0x303   :  { %v7591_v39 = vsel %vm8650_vm0, %v8789_v1, %v7449_v58  ;;  %v355_v47 = vclz %v4380_v4  ;;  %v3593_v36 = vcvt.s32.f32 %v3586_v27  ;;  %v3479_v53 = vsub.s32 32, %v3478_v3  ;;  %v8798_v27 = vld [vmem:[#allocation8_spill] sm:$0xff] }
 0x304   :  { %v449_v62 = vadd.s32 1, %v7572_v16  ;;  %v8791_v10 = vand.u32 2147483647, %v8790_v33  ;;  %v3483_v0 = vsub.s32 4294967266, %v3478_v3  ;;  %v8794_v52 = vand.u32 2147483647, %v8777_v11 }
 0x305   :  { %v4381_v50 = vadd.s32 4294967294, %v355_v47  ;;  %v373_v13 = vsub.s32 4, %v7535_v8  ;;  %v3463_v41 = vadd.s32 %v7416_v31, %v7423_v59  ;;  %v446_v40 = vmul.u32 %v439_v25, %v430_v21  ;;  %v8803_v47 = vld [vmem:[#allocation10_spill] sm:$0xff] }
 0x306   :  { %vm7603_vm4 = vcmp.le.f32.partialorder %v8791_v10, 0.7853982  ;;  %vm7609_vm14 = vcmp.le.f32.partialorder %v8794_v52, 0.7853982  ;;  %vm448_vm11 = vc.u32 %v7595_v55, %v7571_v45  ;;  %v581_v23 = vsub.s32 4, %v8798_v27  ;;  %v8804_v10 = vld [vmem:[#allocation30_spill] sm:$0xff] }
 0x307   :  { %v583_v22 = vsel %vm7603_vm4, %v8790_v33, %v8797_v38  ;;  %v7623_v44 = vmul.f32 %v3593_v36, %v3591_v9  ;;  %v343_v61 = vadd.s32 %v7472_v60, %v7481_v56  ;;  %vm4382_vm13 = vcmp.lt.s32.totalorder %v4381_v50, 0  ;;  %v8799_v56 = vld [vmem:[#allocation6_spill] sm:$0xff] }
 0x308   :  { %vm393_vm0 = vcmp.lt.s32.totalorder %v8785_v51, 0  ;;  %v450_v42 = vsel %vm448_vm11, %v449_v62, %v7572_v16  ;;  %v3481_v6 = vshrl.u32 %v3463_v41, %v3479_v53  ;;  %v358_v4 = vsel %vm4382_vm13, 0, %v4381_v50 }
 0x309   :  { %v451_v29 = vadd.s32 %v450_v42, %v446_v40  ;;  %4857 = vcosq.f32 %v583_v22  ;;  %v3484_v31 = vadd.s32 127, %v3483_v0  ;;  %v359_v59 = vsub.s32 32, %v358_v4 }
 0x30a   :  { %v363_v25 = vsub.s32 4294967266, %v358_v4  ;;  %v374_v1 = vsel %vm289_vm3, %v373_v13, %v7535_v8  ;;  %v582_v60 = vsel %vm497_vm6, %v581_v23, %v8798_v27  ;;  %v8800_v9 = vand.u32 2147483647, %v8799_v56 }
 0x30b   :  { %v452_v43 = vadd.s32 536870912, %v451_v29  ;;  %v685_v21 = vsub.s32 4, %v8803_v47  ;;  %v360_v36 = vshll.u32 %v7553_v17, %v358_v4  ;;  %v361_v53 = vshrl.u32 %v343_v61, %v359_v59  ;;  %v8805_v4 = vld [vmem:[#allocation15_spill] sm:$0xff] }
 0x30c   :  { %vm7637_vm5 = vcmp.le.f32.partialorder %v8800_v9, 0.7853982  ;;  %v364_v62 = vadd.s32 127, %v363_v25  ;;  %v3480_v0 = vshll.u32 %v7476_v12, %v3478_v3  ;;  %4859 = vsinq.f32 %v583_v22 }
 0x30d   :  { %v687_v8 = vsel %vm7637_vm5, %v8799_v56, %v8804_v10  ;;  %v453_v52 = vshrl.u32 %v452_v43, 30  ;;  %v686_v50 = vsel %vm601_vm7, %v685_v21, %v8803_v47  ;;  %v362_v13 = vor.u32 %v361_v53, %v360_v36  ;;  %v8812_v21 = vld [vmem:[#allocation36_spill] sm:$0xff] }
 0x30e   :  { %v365_v38 = vshll.u32 %v364_v62, 23  ;;  %v584_v17 = vsel %vm7603_vm4, 0, %v582_v60  ;;  %4861 = vcosq.f32 %v687_v8  ;;  %v376_v41 = vsel %vm7609_vm14, 0, %v374_v1 }
 0x30f   :  { %v454_v40 = vshll.u32 %v453_v52, 30  ;;  %v477_v27 = vsub.s32 4, %v453_v52  ;;  %4863 = vsinq.f32 %v687_v8  ;;  %v7655_v23 = vor.u32 %v3481_v6, %v3480_v0 }
 0x310   :  { %v3485_v12 = vshll.u32 %v3484_v31, 23  ;;  %v366_v3 = vor.u32 4788187, %v365_v38  ;;  %v688_v22 = vsel %vm7637_vm5, 0, %v686_v50  ;;  %v588_v42 = vadd.s32 3, %v584_v17 }
 0x311   :  { %v7659_v61 = vsub.s32 %v451_v29, %v454_v40  ;;  %v478_v58 = vsel %vm393_vm0, %v477_v27, %v453_v52  ;;  %v789_v59 = vsub.s32 4, %v8805_v4  ;;  %v369_v1 = vcvt.s32.f32 %v362_v13  ;;  %v8835_v29 = vld [vmem:[#allocation32_spill] sm:$0xff] }
 0x312   :  { %v367_v25 = vand.u32 2147483647, %v366_v3  ;;  %v380_v43 = vadd.s32 3, %v376_v41  ;;  %v8806_v60 = vand.u32 2147483647, %v5368_v2  ;;  %v692_v47 = vadd.s32 3, %v688_v22 }
 0x313   :  { %v4858_v31 = vpop.eup %4857  ;;  %v8809_v9 = vand.u32 2147483647, %v8785_v51  ;;  %v457_v16 = vsub.s32 0, %v7659_v61  ;;  %v7681_v53 = vor.u32 4788187, %v3485_v12  ;;  %v790_v8 = vsel %vm705_vm15, %v789_v59, %v8805_v4 }
 0x314   :  { %vm7666_vm6 = vcmp.le.f32.partialorder %v8806_v60, 0.7853982  ;;  %v370_v62 = vmul.f32 %v369_v1, %v367_v25  ;;  %v3489_v52 = vcvt.s32.f32 %v7655_v23  ;;  %v589_v13 = vand.u32 3, %v588_v42 }
 0x315   :  { %vm7672_vm7 = vcmp.le.f32.partialorder %v8809_v9, 0.7853982  ;;  %v791_v36 = vsel %vm7666_vm6, %v5368_v2, %v8812_v21  ;;  %v4384_v50 = vmin.u32 %v457_v16, %v7659_v61  ;;  %v7691_v17 = vand.u32 3, %v380_v43  ;;  %v8813_v21 = vld [vmem:[#allocation13_spill] sm:$0xff] }
 0x316   :  { %v480_v10 = vsel %vm7672_vm7, 0, %v478_v58  ;;  %v371_v38 = vxor.u32 2147483648, %v370_v62  ;;  %v595_v41 = vxor.u32 2147483648, %v4858_v31  ;;  %4865 = vcosq.f32 %v791_v36  ;;  %v4860_v40 = vpop.eup %4859 }
 0x317   :  { %v459_v27 = vclz %v4384_v50  ;;  %v484_v12 = vadd.s32 3, %v480_v10  ;;  %v7693_v3 = vand.u32 3, %v692_v47  ;;  %v792_v22 = vsel %vm7666_vm6, 0, %v790_v8 }
 0x318   :  { %v4862_v58 = vpop.eup %4861  ;;  %v3487_v4 = vand.u32 2147483647, %v7681_v53  ;;  %v372_v59 = vsel %vm289_vm3, %v371_v38, %v370_v62  ;;  %v447_v42 = vadd.s32 %v7571_v45, %v7595_v55  ;;  %4867 = vsinq.f32 %v791_v36  ;;  %v8814_v38 = vld [vmem:[#allocation7_spill] sm:$0xff] }
 0x319   :  { %v4864_v25 = vpop.eup %4863  ;;  %v375_v1 = vsel %vm7609_vm14, %v8777_v11, %v372_v59  ;;  %v4385_v43 = vadd.s32 4294967294, %v459_v27  ;;  %vm590_vm15 = vcmp.lt.s32.totalorder %v589_v13, 2  ;;  %vm591_vm5 = vcmp.eq.s32.totalorder %v589_v13, 0  ;;  %v8818_v59 = vld [vmem:[#allocation31_spill] sm:$0xff] }
 0x31a   :  { %vm594_vm4 = vcmp.eq.s32.totalorder %v589_v13, 2  ;;  %4869 = vcosq.f32 %v375_v1  ;;  %v592_v60 = vxor.u32 2147483648, %v4860_v40  ;;  %v796_v9 = vadd.s32 3, %v792_v22 }
 0x31b   :  { %v596_v6 = vsel %vm594_vm4, %v595_v41, %v4860_v40  ;;  %4871 = vsinq.f32 %v375_v1  ;;  %vm4386_vm11 = vcmp.lt.s32.totalorder %v4385_v43, 0  ;;  %v7705_v16 = vand.u32 3, %v484_v12 }
 0x31c   :  { %vm694_vm3 = vcmp.lt.s32.totalorder %v7693_v3, 2  ;;  %v462_v45 = vsel %vm4386_vm11, 0, %v4385_v43  ;;  %v696_v55 = vxor.u32 2147483648, %v4864_v25  ;;  %v699_v47 = vxor.u32 2147483648, %v4862_v58 }
 0x31d   :  { %v893_v37 = vsub.s32 4, %v8813_v21  ;;  %v463_v36 = vsub.s32 32, %v462_v45  ;;  %v467_v62 = vsub.s32 4294967266, %v462_v45  ;;  %vm587_vm14 = vweird.f32 %v8790_v33 }
 0x31e   :  { %vm695_vm13 = vcmp.eq.s32.totalorder %v7693_v3, 0  ;;  %vm698_vm6 = vcmp.eq.s32.totalorder %v7693_v3, 2  ;;  %v464_v10 = vshll.u32 %v7659_v61, %v462_v45  ;;  %v593_v8 = vsel %vm591_vm5, %v4858_v31, %v592_v60 }
 0x31f   :  { %vm691_vm4 = vweird.f32 %v8799_v56  ;;  %v797_v50 = vand.u32 3, %v796_v9  ;;  %v8815_v41 = vand.u32 2147483647, %v8814_v38  ;;  %v465_v27 = vshrl.u32 %v447_v42, %v463_v36  ;;  %v8830_v56 = vld [vmem:[#allocation38_spill] sm:$0xff] }
 0x320   :  { %v468_v12 = vadd.s32 127, %v467_v62  ;;  %v894_v22 = vsel %vm809_vm8, %v893_v37, %v8813_v21  ;;  %v4866_v31 = vpop.eup %4865  ;;  %v697_v1 = vsel %vm695_vm13, %v4862_v58, %v696_v55  ;;  %v700_v43 = vsel %vm698_vm6, %v699_v47, %v4864_v25  ;;  %v8819_v62 = vld [vmem:[#allocation14_spill] sm:$0xff]  ;;  %v8823_v25 = vld [vmem:[#allocation25_spill] sm:$0xff] }
 0x321   :  { %vm7717_vm11 = vcmp.le.f32.partialorder %v8815_v41, 0.7853982  ;;  %vm383_vm5 = vcmp.eq.s32.totalorder %v7691_v17, 0  ;;  %vm386_vm2 = vcmp.eq.s32.totalorder %v7691_v17, 2  ;;  %v466_v42 = vor.u32 %v465_v27, %v464_v10 }
 0x322   :  { %v895_v61 = vsel %vm7717_vm11, %v8814_v38, %v8818_v59  ;;  %v896_v60 = vsel %vm7717_vm11, 0, %v894_v22  ;;  %v469_v9 = vshll.u32 %v468_v12, 23  ;;  %v803_v45 = vxor.u32 2147483648, %v4866_v31  ;;  %v4868_v21 = vpop.eup %4867  ;;  %v8824_v22 = vld [vmem:[#allocation41_spill] sm:$0xff] }
 0x323   :  { %4873 = vcosq.f32 %v895_v61  ;;  %v597_v37 = vsel %vm590_vm15, %v593_v8, %v596_v6  ;;  %v900_v36 = vadd.s32 3, %v896_v60  ;;  %v8820_v41 = vand.u32 2147483647, %v8819_v62 }
 0x324   :  { %4875 = vsinq.f32 %v895_v61  ;;  %v997_v55 = vsub.s32 4, %v8823_v25  ;;  %v470_v47 = vor.u32 4788187, %v469_v9  ;;  %v800_v40 = vxor.u32 2147483648, %v4868_v21  ;;  %v4870_v27 = vpop.eup %4869 }
 0x325   :  { %vm7735_vm8 = vcmp.le.f32.partialorder %v8820_v41, 0.7853982  ;;  %vm802_vm13 = vcmp.eq.s32.totalorder %v797_v50, 2  ;;  %vm382_vm15 = vcmp.lt.s32.totalorder %v7691_v17, 2  ;;  %v473_v13 = vcvt.s32.f32 %v466_v42  ;;  %v4872_v12 = vpop.eup %4871 }
 0x326   :  { %v999_v10 = vsel %vm7735_vm8, %v8819_v62, %v8824_v22  ;;  %v701_v6 = vsel %vm694_vm3, %v697_v1, %v700_v43  ;;  %vm799_vm6 = vcmp.eq.s32.totalorder %v797_v50, 0  ;;  %v804_v8 = vsel %vm802_vm13, %v803_v45, %v4868_v21  ;;  %v8825_v1 = vld [vmem:[#allocation12_spill] sm:$0xff] }
 0x327   :  { %v471_v59 = vand.u32 2147483647, %v470_v47  ;;  %v801_v61 = vsel %vm799_vm6, %v4866_v31, %v800_v40  ;;  %v901_v60 = vand.u32 3, %v900_v36  ;;  %v998_v9 = vsel %vm913_vm12, %v997_v55, %v8823_v25  ;;  %v8829_v21 = vld [vmem:[#allocation20_spill] sm:$0xff] }
 0x328   :  { %v384_v41 = vxor.u32 2147483648, %v4872_v12  ;;  %v387_v0 = vxor.u32 2147483648, %v4870_v27  ;;  %v7752_v22 = vsel %vm587_vm14, nan, %v597_v37  ;;  %4877 = vcosq.f32 %v999_v10 }
 0x329   :  { %v474_v42 = vmul.f32 %v473_v13, %v471_v59  ;;  %v7756_v3 = vsel %vm691_vm4, nan, %v701_v6  ;;  %vm798_vm3 = vcmp.lt.s32.totalorder %v797_v50, 2  ;;  %v8826_v31 = vand.u32 2147483647, %v8825_v1 }
 0x32a   :  { %vm379_vm12 = vweird.f32 %v8777_v11  ;;  %v805_v45 = vsel %vm798_vm3, %v801_v61, %v804_v8  ;;  %v1000_v33 = vsel %vm7735_vm8, 0, %v998_v9  ;;  %4879 = vsinq.f32 %v999_v10 }
 0x32b   :  { %vm7760_vm11 = vcmp.le.f32.partialorder %v8826_v31, 0.7853982  ;;  %v1101_v37 = vsub.s32 4, %v8829_v21  ;;  %v475_v36 = vxor.u32 2147483648, %v474_v42  ;;  %vm902_vm14 = vcmp.lt.s32.totalorder %v901_v60, 2 }
 0x32c   :  { %vm903_vm4 = vcmp.eq.s32.totalorder %v901_v60, 0  ;;  %v1103_v50 = vsel %vm7760_vm11, %v8825_v1, %v8830_v56  ;;  %v385_v55 = vsel %vm383_vm5, %v4870_v27, %v384_v41  ;;  %v388_v47 = vsel %vm386_vm2, %v387_v0, %v4872_v12  ;;  %v8831_v41 = vld [vmem:[#allocation21_spill] sm:$0xff] }
 0x32d   :  { %v4874_v25 = vpop.eup %4873  ;;  %v1102_v58 = vsel %vm1017_vm1, %v1101_v37, %v8829_v21  ;;  %4881 = vcosq.f32 %v1103_v50  ;;  %v476_v10 = vsel %vm393_vm0, %v475_v36, %v474_v42  ;;  %vm906_vm2 = vcmp.eq.s32.totalorder %v901_v60, 2  ;;  %v8836_v21 = vld [vmem:[#allocation45_spill] sm:$0xff] }
 0x32e   :  { %v4876_v40 = vpop.eup %4875  ;;  %v907_v13 = vxor.u32 2147483648, %v4874_v25  ;;  %v1104_v6 = vsel %vm7760_vm11, 0, %v1102_v58  ;;  %4883 = vsinq.f32 %v1103_v50  ;;  %v479_v27 = vsel %vm7672_vm7, %v8785_v51, %v476_v10  ;;  %v8837_v58 = vld [vmem:[#allocation19_spill] sm:$0xff] }
 0x32f   :  { %v904_v8 = vxor.u32 2147483648, %v4876_v40  ;;  %v1004_v0 = vadd.s32 3, %v1000_v33  ;;  %v389_v12 = vsel %vm382_vm15, %v385_v55, %v388_v47  ;;  %4885 = vcosq.f32 %v479_v27  ;;  %v8841_v10 = vld [vmem:[#allocation27_spill] sm:$0xff] }
 0x330   :  { %v908_v59 = vsel %vm906_vm2, %v907_v13, %v4876_v40  ;;  %v1108_v61 = vadd.s32 3, %v1104_v6  ;;  %4887 = vsinq.f32 %v479_v27  ;;  %v8832_v42 = vand.u32 2147483647, %v8831_v41 }
 0x331   :  { %v905_v9 = vsel %vm903_vm4, %v4874_v25, %v904_v8  ;;  %v1205_v43 = vsub.s32 4, %v8835_v29  ;;  %v3616_v33 = vpack.c.bf16 %v7756_v3, %v7752_v22  ;;  %vm795_vm0 = vweird.f32 %v5368_v2  ;;  %v8842_v8 = vld [vmem:[#allocation44_spill] sm:$0xff] }
 0x332   :  { %vm7791_vm1 = vcmp.le.f32.partialorder %v8832_v42, 0.7853982  ;;  %v909_v17 = vsel %vm902_vm14, %v905_v9, %v908_v59  ;;  %v4878_v36 = vpop.eup %4877  ;;  %vm899_vm7 = vweird.f32 %v8814_v38  ;;  %v1005_v56 = vand.u32 3, %v1004_v0 }
 0x333   :  { %v1207_v37 = vsel %vm7791_vm1, %v8831_v41, %v8836_v21  ;;  %v1206_v50 = vsel %vm1121_vm10, %v1205_v43, %v8835_v29  ;;  %v7810_v25 = vsel %vm379_vm12, nan, %v389_v12  ;;  %vm490_vm5 = vcmp.eq.s32.totalorder %v7705_v16, 2 }
 0x334   :  { %4889 = vcosq.f32 %v1207_v37  ;;  %v7813_v2 = vsel %vm795_vm0, nan, %v805_v45  ;;  %v7815_v60 = vsel %vm899_vm7, nan, %v909_v17  ;;  %v1109_v55 = vand.u32 3, %v1108_v61  ;;  %v4880_v47 = vpop.eup %4879 }
 0x335   :  { %vm487_vm8 = vcmp.eq.s32.totalorder %v7705_v16, 0  ;;  %v1208_v38 = vsel %vm7791_vm1, 0, %v1206_v50  ;;  %4891 = vsinq.f32 %v1207_v37  ;;  %v8838_v40 = vand.u32 2147483647, %v8837_v58 }
 0x336   :  { %v1309_v13 = vsub.s32 4, %v8841_v10  ;;  %vm486_vm13 = vcmp.lt.s32.totalorder %v7705_v16, 2  ;;  %v1008_v45 = vxor.u32 2147483648, %v4880_v47  ;;  %v1011_v6 = vxor.u32 2147483648, %v4878_v36 }
 0x337   :  { %vm7822_vm10 = vcmp.le.f32.partialorder %v8838_v40, 0.7853982  ;;  %v1212_v27 = vadd.s32 3, %v1208_v38  ;;  %v4882_v12 = vpop.eup %4881  ;;  %vm483_vm15 = vweird.f32 %v8785_v51  ;;  %vm1006_vm6 = vcmp.lt.s32.totalorder %v1005_v56, 2 }
 0x338   :  { %v1311_v0 = vsel %vm7822_vm10, %v8837_v58, %v8842_v8  ;;  %vm1007_vm3 = vcmp.eq.s32.totalorder %v1005_v56, 0  ;;  %v1310_v59 = vsel %vm1225_vm9, %v1309_v13, %v8841_v10  ;;  %v4884_v61 = vpop.eup %4883  ;;  %v3617_v9 = vpack.c.bf16 %v7815_v60, %v7813_v2  ;;  %v8843_v13 = vld [vmem:[#allocation28_spill] sm:$0xff] }
 0x339   :  { %4893 = vcosq.f32 %v1311_v0  ;;  %vm1010_vm11 = vcmp.eq.s32.totalorder %v1005_v56, 2  ;;  %v1115_v42 = vxor.u32 2147483648, %v4882_v12  ;;  %v1312_v31 = vsel %vm7822_vm10, 0, %v1310_v59  ;;  %v4886_v17 = vpop.eup %4885 }
 0x33a   :  { %vm1110_vm12 = vcmp.lt.s32.totalorder %v1109_v55, 2  ;;  %v1112_v29 = vxor.u32 2147483648, %v4884_v61  ;;  %v1213_v43 = vand.u32 3, %v1212_v27  ;;  %4895 = vsinq.f32 %v1311_v0  ;;  %v4888_v38 = vpop.eup %4887  ;;  %v8847_v0 = vld [vmem:[#allocation35_spill] sm:$0xff] }
 0x33b   :  { %vm1003_vm14 = vweird.f32 %v8819_v62  ;;  %v1009_v21 = vsel %vm1007_vm3, %v4878_v36, %v1008_v45  ;;  %v1012_v37 = vsel %vm1010_vm11, %v1011_v6, %v4880_v47  ;;  %vm1114_vm9 = vcmp.eq.s32.totalorder %v1109_v55, 2  ;;  %v8848_v36 = vld [vmem:[#allocation51_spill] sm:$0xff] }
 0x33c   :  { %v1316_v50 = vadd.s32 3, %v1312_v31  ;;  %v491_v40 = vxor.u32 2147483648, %v4886_v17  ;;  %vm1111_vm4 = vcmp.eq.s32.totalorder %v1109_v55, 0  ;;  %v1116_v10 = vsel %vm1114_vm9, %v1115_v42, %v4884_v61 }
 0x33d   :  { %v8844_v8 = vand.u32 2147483647, %v8843_v13  ;;  %v488_v59 = vxor.u32 2147483648, %v4888_v38  ;;  %vm1107_vm1 = vweird.f32 %v8825_v1  ;;  %v1113_v27 = vsel %vm1111_vm4, %v4882_v12, %v1112_v29  ;;  %v8860_v1 = vld [vmem:[#allocation42_spill] sm:$0xff] }
 0x33e   :  { %v1413_v18 = vsub.s32 4, %v8847_v0  ;;  %v4890_v45 = vpop.eup %4889  ;;  %v492_v6 = vsel %vm490_vm5, %v491_v40, %v4888_v38  ;;  %v1013_v61 = vsel %vm1006_vm6, %v1009_v21, %v1012_v37  ;;  %vm1211_vm0 = vweird.f32 %v8831_v41  ;;  %v8850_v40 = vld [vmem:[#allocation26_spill] sm:$0xff] }
 0x33f   :  { %vm7843_vm2 = vcmp.le.f32.partialorder %v8844_v8, 0.7853982  ;;  %vm1214_vm7 = vcmp.lt.s32.totalorder %v1213_v43, 2  ;;  %vm1215_vm10 = vcmp.eq.s32.totalorder %v1213_v43, 0  ;;  %v489_v12 = vsel %vm487_vm8, %v4886_v17, %v488_v59  ;;  %v4892_v29 = vpop.eup %4891 }
 0x340   :  { %v1415_v47 = vsel %vm7843_vm2, %v8843_v13, %v8848_v36  ;;  %vm1218_vm3 = vcmp.eq.s32.totalorder %v1213_v43, 2  ;;  %v1219_v42 = vxor.u32 2147483648, %v4890_v45  ;;  %v1317_v31 = vand.u32 3, %v1316_v50 }
 0x341   :  { %v493_v8 = vsel %vm486_vm13, %v489_v12, %v492_v6  ;;  %v1117_v36 = vsel %vm1110_vm12, %v1113_v27, %v1116_v10  ;;  %vm1315_vm5 = vweird.f32 %v8837_v58  ;;  %vm8849_vm6 = vcmp.lt.s32.totalorder %v8843_v13, 0  ;;  %v8854_v27 = vld [vmem:[#allocation34_spill] sm:$0xff]  ;;  %v8855_v6 = vld [vmem:[#allocation47_spill] sm:$0xff] }
 0x342   :  { %v1414_v56 = vsel %vm8849_vm6, %v1413_v18, %v8847_v0  ;;  %4897 = vcosq.f32 %v1415_v47  ;;  %v494_v21 = vsel %vm483_vm15, nan, %v493_v8  ;;  %v1216_v17 = vxor.u32 2147483648, %v4892_v29 }
 0x343   :  { %v1220_v37 = vsel %vm1218_vm3, %v1219_v42, %v4892_v29  ;;  %v1416_v50 = vsel %vm7843_vm2, 0, %v1414_v56  ;;  %v4894_v38 = vpop.eup %4893  ;;  %v3615_v16 = vpack.c.bf16 %v494_v21, %v7810_v25  ;;  %4899 = vsinq.f32 %v1415_v47 }
 0x344   :  { %v1420_v55 = vadd.s32 3, %v1416_v50  ;;  %v8851_v10 = vand.u32 2147483647, %v8850_v40  ;;  %v1217_v18 = vsel %vm1215_vm10, %v4890_v45, %v1216_v17  ;;  %v1323_v51 = vxor.u32 2147483648, %v4894_v38  ;;  %v4896_v12 = vpop.eup %4895 }
 0x345   :  { %v1517_v0 = vsub.s32 4, %v8854_v27  ;;  %4621 = vmatprep.mubr.bf16.mxu0 %v3615_v16  ;;  %v1014_v25 = vsel %vm1003_vm14, nan, %v1013_v61  ;;  %v1221_v47 = vsel %vm1214_vm7, %v1217_v18, %v1220_v37  ;;  %vm1322_vm13 = vcmp.eq.s32.totalorder %v1317_v31, 2  ;;  %v8862_v37 = vld [vmem:[#allocation39_spill] sm:$0xff] }
 0x346   :  { %vm7873_vm8 = vcmp.le.f32.partialorder %v8851_v10, 0.7853982  ;;  %4622 = vmatmul.mubr.bf16.vlgmr.msra.gmra.mrb[0].mxu0 %v3616_v33  ;;  %v1320_v45 = vxor.u32 2147483648, %v4896_v12  ;;  %v1324_v42 = vsel %vm1322_vm13, %v1323_v51, %v4896_v12  ;;  %v1421_v29 = vand.u32 3, %v1420_v55  ;;  %v8865_v12 = vld [vmem:[#allocation40_spill] sm:$0xff] }
 0x347   :  { %v1519_v11 = vsel %vm7873_vm8, %v8850_v40, %v8855_v6  ;;  %vm8856_vm15 = vcmp.lt.s32.totalorder %v8850_v40, 0  ;;  %4625 = vmatprep.mubr.bf16.mxu0 %v3617_v9  ;;  %v1118_v62 = vsel %vm1107_vm1, nan, %v1117_v36  ;;  %vm1318_vm11 = vcmp.lt.s32.totalorder %v1317_v31, 2 }
 0x348   :  { %4901 = vcosq.f32 %v1519_v11  ;;  %v1518_v8 = vsel %vm8856_vm15, %v1517_v0, %v8854_v27  ;;  %vm1319_vm12 = vcmp.eq.s32.totalorder %v1317_v31, 0  ;;  %v1222_v3 = vsel %vm1211_vm0, nan, %v1221_v47  ;;  %v8879_v47 = vld [vmem:[#allocation49_spill] sm:$0xff] }
 0x349   :  { %v1520_v22 = vsel %vm7873_vm8, 0, %v1518_v8  ;;  %v1321_v33 = vsel %vm1319_vm12, %v4894_v38, %v1320_v45  ;;  %4903 = vsinq.f32 %v1519_v11  ;;  %v8857_v43 = vand.u32 2147483647, %v5926_v7  ;;  %v8869_v45 = vld [vmem:[#allocation48_spill] sm:$0xff] }
 0x34a   :  { %v1325_v2 = vsel %vm1318_vm11, %v1321_v33, %v1324_v42  ;;  %v1524_v60 = vadd.s32 3, %v1520_v22  ;;  %v1621_v9 = vsub.s32 4, %v8860_v1  ;;  %v3618_v36 = vpack.c.bf16 %v1118_v62, %v1014_v25 }
 0x34b   :  { %vm7903_vm14 = vcmp.le.f32.partialorder %v8857_v43, 0.7853982  ;;  %v1326_v41 = vsel %vm1315_vm5, nan, %v1325_v2  ;;  %vm1422_vm9 = vcmp.lt.s32.totalorder %v1421_v29, 2  ;;  %vm8861_vm4 = vcmp.lt.s32.totalorder %v5926_v7, 0  ;;  %v8871_v43 = vld [vmem:[#allocation58_spill] sm:$0xff] }
 0x34c   :  { %v1623_v31 = vsel %vm7903_vm14, %v5926_v7, %v6543_v54  ;;  %v4898_v56 = vpop.eup %4897  ;;  %v3619_v21 = vpack.c.bf16 %v1326_v41, %v1222_v3  ;;  %v1622_v17 = vsel %vm8861_vm4, %v1621_v9, %v8860_v1  ;;  %v1725_v50 = vsub.s32 4, %v8862_v37 }
 0x34d   :  { %4905 = vcosq.f32 %v1623_v31  ;;  %vm1423_vm2 = vcmp.eq.s32.totalorder %v1421_v29, 0  ;;  %vm1426_vm1 = vcmp.eq.s32.totalorder %v1421_v29, 2  ;;  %v1427_v38 = vxor.u32 2147483648, %v4898_v56  ;;  %v4900_v16 = vpop.eup %4899 }
 0x34e   :  { %4907 = vsinq.f32 %v1623_v31  ;;  %v8863_v54 = vand.u32 2147483647, %v8730_v34  ;;  %v1525_v58 = vand.u32 3, %v1524_v60  ;;  %v1624_v55 = vsel %vm7903_vm14, 0, %v1622_v17  ;;  %4626 = vmatmul.mubr.bf16.gmra.mrb[4].mxu0 %v3618_v36 }
 0x34f   :  { %vm8864_vm7 = vcmp.lt.s32.totalorder %v8730_v34, 0  ;;  %v1424_v18 = vxor.u32 2147483648, %v4900_v16  ;;  %v1428_v51 = vsel %vm1426_vm1, %v1427_v38, %v4900_v16  ;;  %v1628_v27 = vadd.s32 3, %v1624_v55  ;;  %4629 = vmatprep.mubr.bf16.mxu0 %v3619_v21  ;;  %v8877_v16 = vld [vmem:[#allocation33_spill] sm:$0xff] }
 0x350   :  { %vm1640_vm0 = vcmp.le.f32.partialorder %v8863_v54, 0.7853982  ;;  %v1726_v10 = vsel %vm8864_vm7, %v1725_v50, %v8862_v37  ;;  %v8866_v25 = vand.u32 2147483647, %v8865_v12  ;;  %v1829_v42 = vsub.s32 4, %v8869_v45  ;;  %v8876_v37 = vld [vmem:[#allocation46_spill] sm:$0xff] }
 0x351   :  { %v1727_v59 = vsel %vm1640_vm0, %v8730_v34, %v6516_v15  ;;  %v1728_v0 = vsel %vm1640_vm0, 0, %v1726_v10  ;;  %v1425_v8 = vsel %vm1423_vm2, %v4898_v56, %v1424_v18  ;;  %v1629_v62 = vand.u32 3, %v1628_v27  ;;  %v8872_v56 = vld [vmem:[#allocation37_spill] sm:$0xff] }
 0x352   :  { %v4902_v6 = vpop.eup %4901  ;;  %4909 = vcosq.f32 %v1727_v59  ;;  %v1732_v11 = vadd.s32 3, %v1728_v0  ;;  %vm7929_vm10 = vcmp.le.f32.partialorder %v8866_v25, 0.7853982  ;;  %v7939_v22 = vmul.f32 %v3489_v52, %v3487_v4 }
 0x353   :  { %v1531_v15 = vxor.u32 2147483648, %v4902_v6  ;;  %4911 = vsinq.f32 %v1727_v59  ;;  %v1429_v3 = vsel %vm1422_vm9, %v1425_v8, %v1428_v51  ;;  %vm8870_vm3 = vcmp.lt.s32.totalorder %v8865_v12, 0  ;;  %v4904_v2 = vpop.eup %4903 }
 0x354   :  { %v1830_v33 = vsel %vm8870_vm3, %v1829_v42, %v8869_v45  ;;  %v1831_v61 = vsel %vm7929_vm10, %v8865_v12, %v8871_v43  ;;  %vm1419_vm5 = vweird.f32 %v8843_v13  ;;  %vm1523_vm6 = vweird.f32 %v8850_v40 }
 0x355   :  { %vm1526_vm8 = vcmp.lt.s32.totalorder %v1525_v58, 2  ;;  %vm1530_vm13 = vcmp.eq.s32.totalorder %v1525_v58, 2  ;;  %vm1527_vm15 = vcmp.eq.s32.totalorder %v1525_v58, 0  ;;  %v1528_v23 = vxor.u32 2147483648, %v4904_v2 }
 0x356   :  { %v1532_v53 = vsel %vm1530_vm13, %v1531_v15, %v4904_v2  ;;  %v1733_v52 = vand.u32 3, %v1732_v11  ;;  %v1430_v29 = vsel %vm1419_vm5, nan, %v1429_v3  ;;  %vm1627_vm11 = vweird.f32 %v5926_v7  ;;  %v8883_v15 = vld [vmem:[#allocation54_spill] sm:$0xff] }
 0x357   :  { %v4906_v4 = vpop.eup %4905  ;;  %vm1634_vm12 = vcmp.eq.s32.totalorder %v1629_v62, 2  ;;  %v1832_v60 = vsel %vm7929_vm10, 0, %v1830_v33  ;;  %4913 = vcosq.f32 %v1831_v61  ;;  %v1529_v9 = vsel %vm1527_vm15, %v4902_v6, %v1528_v23  ;;  %v8884_v3 = vld [vmem:[#allocation66_spill] sm:$0xff] }
 0x358   :  { %v4908_v1 = vpop.eup %4907  ;;  %v1635_v13 = vxor.u32 2147483648, %v4906_v4  ;;  %4915 = vsinq.f32 %v1831_v61  ;;  %v1836_v31 = vadd.s32 3, %v1832_v60  ;;  %v1533_v36 = vsel %vm1526_vm8, %v1529_v9, %v1532_v53 }
 0x359   :  { %v1632_v41 = vxor.u32 2147483648, %v4908_v1  ;;  %v8873_v21 = vand.u32 2147483647, %v8872_v56  ;;  %v1933_v50 = vsub.s32 4, %v8876_v37  ;;  %v1534_v38 = vsel %vm1523_vm6, nan, %v1533_v36  ;;  %v8887_v36 = vld [vmem:[#allocation43_spill] sm:$0xff] }
 0x35a   :  { %vm1631_vm9 = vcmp.eq.s32.totalorder %v1629_v62, 0  ;;  %v1636_v54 = vsel %vm1634_vm12, %v1635_v13, %v4908_v1  ;;  %v3620_v55 = vpack.c.bf16 %v1534_v38, %v1430_v29  ;;  %vm8878_vm4 = vcmp.lt.s32.totalorder %v8872_v56, 0 }
 0x35b   :  { %vm7957_vm14 = vcmp.le.f32.partialorder %v8873_v21, 0.7853982  ;;  %v1633_v10 = vsel %vm1631_vm9, %v4906_v4, %v1632_v41  ;;  %v1934_v59 = vsel %vm8878_vm4, %v1933_v50, %v8876_v37  ;;  %vm1630_vm2 = vcmp.lt.s32.totalorder %v1629_v62, 2  ;;  %v8886_v4 = vld [vmem:[#allocation52_spill] sm:$0xff]  ;;  %v8892_v50 = vld [vmem:[#allocation61_spill] sm:$0xff]  ;;  %v8905_v21 = vld [vmem:[#allocation67_spill] sm:$0xff] }
 0x35c   :  { %v1935_v58 = vsel %vm7957_vm14, %v8872_v56, %v8877_v16  ;;  %v4910_v18 = vpop.eup %4909  ;;  %vm1731_vm1 = vweird.f32 %v8730_v34  ;;  %vm1734_vm0 = vcmp.lt.s32.totalorder %v1733_v52, 2  ;;  %v1837_v40 = vand.u32 3, %v1836_v31  ;;  %4630 = vmatmul.mubr.bf16.gmra.mrb[8].mxu0 %v3620_v55 }
 0x35d   :  { %4917 = vcosq.f32 %v1935_v58  ;;  %v4912_v51 = vpop.eup %4911  ;;  %v1637_v27 = vsel %vm1630_vm2, %v1633_v10, %v1636_v54  ;;  %v1739_v0 = vxor.u32 2147483648, %v4910_v18  ;;  %v1936_v6 = vsel %vm7957_vm14, 0, %v1934_v59 }
 0x35e   :  { %4919 = vsinq.f32 %v1935_v58  ;;  %v1736_v11 = vxor.u32 2147483648, %v4912_v51  ;;  %vm1738_vm7 = vcmp.eq.s32.totalorder %v1733_v52, 2  ;;  %v1940_v25 = vadd.s32 3, %v1936_v6 }
 0x35f   :  { %v8880_v45 = vand.u32 2147483647, %v8879_v47  ;;  %vm1735_vm3 = vcmp.eq.s32.totalorder %v1733_v52, 0  ;;  %v1740_v8 = vsel %vm1738_vm7, %v1739_v0, %v4912_v51  ;;  %v2037_v62 = vsub.s32 4, %v8883_v15 }
 0x360   :  { %v1638_v43 = vsel %vm1627_vm11, nan, %v1637_v27  ;;  %v1737_v61 = vsel %vm1735_vm3, %v4910_v18, %v1736_v11  ;;  %vm1839_vm5 = vcmp.eq.s32.totalorder %v1837_v40, 0  ;;  %vm8885_vm6 = vcmp.lt.s32.totalorder %v8879_v47, 0  ;;  %v8893_v27 = vld [vmem:[#allocation57_spill] sm:$0xff] }
 0x361   :  { %vm7976_vm10 = vcmp.le.f32.partialorder %v8880_v45, 0.7853982  ;;  %v4914_v2 = vpop.eup %4913  ;;  %v1741_v23 = vsel %vm1734_vm0, %v1737_v61, %v1740_v8  ;;  %v2038_v53 = vsel %vm8885_vm6, %v2037_v62, %v8883_v15  ;;  %v2141_v29 = vsub.s32 4, %v8886_v4  ;;  %v8899_v8 = vld [vmem:[#allocation68_spill] sm:$0xff] }
 0x362   :  { %v2039_v33 = vsel %vm7976_vm10, %v8879_v47, %v8884_v3  ;;  %v4916_v60 = vpop.eup %4915  ;;  %v1742_v1 = vsel %vm1731_vm1, nan, %v1741_v23  ;;  %vm1842_vm8 = vcmp.eq.s32.totalorder %v1837_v40, 2  ;;  %v1843_v7 = vxor.u32 2147483648, %v4914_v2 }
 0x363   :  { %4921 = vcosq.f32 %v2039_v33  ;;  %v1941_v9 = vand.u32 3, %v1940_v25  ;;  %v3621_v13 = vpack.c.bf16 %v1742_v1, %v1638_v43  ;;  %v1840_v31 = vxor.u32 2147483648, %v4916_v60  ;;  %v8894_v25 = vld [vmem:[#allocation53_spill] sm:$0xff] }
 0x364   :  { %4923 = vsinq.f32 %v2039_v33  ;;  %v2040_v52 = vsel %vm7976_vm10, 0, %v2038_v53  ;;  %v8888_v41 = vand.u32 2147483647, %v8887_v36  ;;  %v1844_v17 = vsel %vm1842_vm8, %v1843_v7, %v4916_v60  ;;  %v8900_v7 = vld [vmem:[#allocation50_spill] sm:$0xff] }
 0x365   :  { %v2044_v37 = vadd.s32 3, %v2040_v52  ;;  %vm8891_vm15 = vcmp.lt.s32.totalorder %v8887_v36, 0  ;;  %4633 = vmatprep.mubr.bf16.mxu0 %v3621_v13  ;;  %vm1835_vm11 = vweird.f32 %v8865_v12  ;;  %v1841_v16 = vsel %vm1839_vm5, %v4914_v2, %v1840_v31  ;;  %v8904_v52 = vld [vmem:[#allocation56_spill] sm:$0xff] }
 0x366   :  { %vm7998_vm13 = vcmp.le.f32.partialorder %v8888_v41, 0.7853982  ;;  %v2142_v34 = vsel %vm8891_vm15, %v2141_v29, %v8886_v4  ;;  %vm1838_vm12 = vcmp.lt.s32.totalorder %v1837_v40, 2  ;;  %vm1946_vm14 = vcmp.eq.s32.totalorder %v1941_v9, 2 }
 0x367   :  { %v2143_v38 = vsel %vm7998_vm13, %v8887_v36, %v8892_v50  ;;  %v4918_v54 = vpop.eup %4917  ;;  %v2144_v58 = vsel %vm7998_vm13, 0, %v2142_v34  ;;  %v1845_v59 = vsel %vm1838_vm12, %v1841_v16, %v1844_v17  ;;  %v2045_v18 = vand.u32 3, %v2044_v37 }
 0x368   :  { %4925 = vcosq.f32 %v2143_v38  ;;  %v1947_v55 = vxor.u32 2147483648, %v4918_v54  ;;  %v4920_v10 = vpop.eup %4919  ;;  %v2148_v51 = vadd.s32 3, %v2144_v58  ;;  %v2245_v0 = vsub.s32 4, %v8893_v27 }
 0x369   :  { %4927 = vsinq.f32 %v2143_v38  ;;  %vm1939_vm9 = vweird.f32 %v8872_v56  ;;  %v1944_v6 = vxor.u32 2147483648, %v4920_v10  ;;  %v8895_v45 = vand.u32 2147483647, %v8894_v25 }
 0x36a   :  { %v1948_v11 = vsel %vm1946_vm14, %v1947_v55, %v4920_v10  ;;  %vm1942_vm2 = vcmp.lt.s32.totalorder %v1941_v9, 2  ;;  %vm1943_vm1 = vcmp.eq.s32.totalorder %v1941_v9, 0  ;;  %vm8898_vm0 = vcmp.lt.s32.totalorder %v8894_v25, 0 }
 0x36b   :  { %vm8017_vm4 = vcmp.le.f32.partialorder %v8895_v45, 0.7853982  ;;  %v2246_v40 = vsel %vm8898_vm0, %v2245_v0, %v8893_v27  ;;  %v1846_v3 = vsel %vm1835_vm11, nan, %v1845_v59  ;;  %v1945_v33 = vsel %vm1943_vm1, %v4918_v54, %v1944_v6 }
 0x36c   :  { %v2247_v15 = vsel %vm8017_vm4, %v8894_v25, %v8899_v8  ;;  %vm2043_vm7 = vweird.f32 %v8879_v47  ;;  %v2248_v43 = vsel %vm8017_vm4, 0, %v2246_v40  ;;  %v1949_v2 = vsel %vm1942_vm2, %v1945_v33, %v1948_v11  ;;  %v8912_v47 = vld [vmem:[#allocation55_spill] sm:$0xff] }
 0x36d   :  { %v4922_v62 = vpop.eup %4921  ;;  %4929 = vcosq.f32 %v2247_v15  ;;  %vm2047_vm10 = vcmp.eq.s32.totalorder %v2045_v18, 0  ;;  %v2149_v53 = vand.u32 3, %v2148_v51  ;;  %v1950_v4 = vsel %vm1939_vm9, nan, %v1949_v2  ;;  %v8916_v2 = vld [vmem:[#allocation60_spill] sm:$0xff] }
 0x36e   :  { %v4924_v61 = vpop.eup %4923  ;;  %v2051_v23 = vxor.u32 2147483648, %v4922_v62  ;;  %vm2050_vm3 = vcmp.eq.s32.totalorder %v2045_v18, 2  ;;  %4931 = vsinq.f32 %v2247_v15  ;;  %v3622_v12 = vpack.c.bf16 %v1950_v4, %v1846_v3 }
 0x36f   :  { %v2048_v29 = vxor.u32 2147483648, %v4924_v61  ;;  %v2252_v1 = vadd.s32 3, %v2248_v43  ;;  %v8901_v9 = vand.u32 2147483647, %v8900_v7  ;;  %vm2046_vm6 = vcmp.lt.s32.totalorder %v2045_v18, 2  ;;  %v8910_v18 = vld [vmem:[#allocation63_spill] sm:$0xff] }
 0x370   :  { %v2052_v60 = vsel %vm2050_vm3, %v2051_v23, %v4924_v61  ;;  %v2349_v41 = vsub.s32 4, %v8904_v52  ;;  %4634 = vmatmul.mubr.bf16.gmra.mrb[12].mxu0 %v3622_v12  ;;  %vm2147_vm8 = vweird.f32 %v8887_v36  ;;  %vm2150_vm13 = vcmp.lt.s32.totalorder %v2149_v53, 2 }
 0x371   :  { %vm8037_vm5 = vcmp.le.f32.partialorder %v8901_v9, 0.7853982  ;;  %v2049_v31 = vsel %vm2047_vm10, %v4922_v62, %v2048_v29  ;;  %v2253_v38 = vand.u32 3, %v2252_v1  ;;  %vm8906_vm15 = vcmp.lt.s32.totalorder %v8900_v7, 0 }
 0x372   :  { %v2351_v56 = vsel %vm8037_vm5, %v8900_v7, %v8905_v21  ;;  %v4926_v17 = vpop.eup %4925  ;;  %v2053_v37 = vsel %vm2046_vm6, %v2049_v31, %v2052_v60  ;;  %v2350_v54 = vsel %vm8906_vm15, %v2349_v41, %v8904_v52  ;;  %vm2151_vm11 = vcmp.eq.s32.totalorder %v2149_v53, 0 }
 0x373   :  { %4933 = vcosq.f32 %v2351_v56  ;;  %v4928_v34 = vpop.eup %4927  ;;  %v2155_v50 = vxor.u32 2147483648, %v4926_v17  ;;  %vm2154_vm12 = vcmp.eq.s32.totalorder %v2149_v53, 2  ;;  %v8907_v58 = vand.u32 2147483647, %v6525_v49  ;;  %v8917_v53 = vld [vmem:[#allocation71_spill] sm:$0xff] }
 0x374   :  { %4935 = vsinq.f32 %v2351_v56  ;;  %v2152_v16 = vxor.u32 2147483648, %v4928_v34  ;;  %v2352_v59 = vsel %vm8037_vm5, 0, %v2350_v54  ;;  %v2453_v51 = vsub.s32 4, %v8910_v18  ;;  %v8922_v54 = vld [vmem:[#allocation65_spill] sm:$0xff] }
 0x375   :  { %vm8052_vm14 = vcmp.le.f32.partialorder %v8907_v58, 0.7853982  ;;  %v2156_v10 = vsel %vm2154_vm12, %v2155_v50, %v4928_v34  ;;  %v2054_v0 = vsel %vm2043_vm7, nan, %v2053_v37  ;;  %v2356_v11 = vadd.s32 3, %v2352_v59 }
 0x376   :  { %v2455_v27 = vsel %vm8052_vm14, %v6525_v49, %v7122_v57  ;;  %v2153_v6 = vsel %vm2151_vm11, %v4926_v17, %v2152_v16  ;;  %vm2258_vm9 = vcmp.eq.s32.totalorder %v2253_v38, 2  ;;  %vm8911_vm4 = vcmp.lt.s32.totalorder %v6525_v49, 0 }
 0x377   :  { %4937 = vcosq.f32 %v2455_v27  ;;  %v4930_v45 = vpop.eup %4929  ;;  %v2157_v42 = vsel %vm2150_vm13, %v2153_v6, %v2156_v10  ;;  %v2454_v40 = vsel %vm8911_vm4, %v2453_v51, %v8910_v18  ;;  %v8913_v62 = vand.u32 2147483647, %v8912_v47 }
 0x378   :  { %4939 = vsinq.f32 %v2455_v27  ;;  %v2158_v8 = vsel %vm2147_vm8, nan, %v2157_v42  ;;  %v2259_v15 = vxor.u32 2147483648, %v4930_v45  ;;  %v2456_v57 = vsel %vm8052_vm14, 0, %v2454_v40  ;;  %v4932_v33 = vpop.eup %4931  ;;  %v8924_v40 = vld [vmem:[#allocation76_spill] sm:$0xff] }
 0x379   :  { %vm8075_vm2 = vcmp.le.f32.partialorder %v8913_v62, 0.7853982  ;;  %v3623_v43 = vpack.c.bf16 %v2158_v8, %v2054_v0  ;;  %v2357_v61 = vand.u32 3, %v2356_v11  ;;  %v2557_v23 = vsub.s32 4, %v8916_v2  ;;  %v8929_v62 = vld [vmem:[#allocation64_spill] sm:$0xff] }
 0x37a   :  { %v2559_v36 = vsel %vm8075_vm2, %v8912_v47, %v8917_v53  ;;  %v3491_v4 = vxor.u32 2147483648, %v7939_v22  ;;  %v2256_v29 = vxor.u32 2147483648, %v4932_v33  ;;  %v2260_v12 = vsel %vm2258_vm9, %v2259_v15, %v4932_v33 }
 0x37b   :  { %v2460_v60 = vadd.s32 3, %v2456_v57  ;;  %4637 = vmatprep.mubr.bf16.mxu0 %v3623_v43  ;;  %vm2251_vm1 = vweird.f32 %v8894_v25  ;;  %vm2255_vm0 = vcmp.eq.s32.totalorder %v2253_v38, 0  ;;  %vm8918_vm7 = vcmp.lt.s32.totalorder %v8912_v47, 0  ;;  %v8930_v43 = vld [vmem:[#allocation73_spill] sm:$0xff] }
 0x37c   :  { %v2558_v1 = vsel %vm8918_vm7, %v2557_v23, %v8916_v2  ;;  %4941 = vcosq.f32 %v2559_v36  ;;  %vm2254_vm10 = vcmp.lt.s32.totalorder %v2253_v38, 2  ;;  %v2257_v13 = vsel %vm2255_vm0, %v4930_v45, %v2256_v29 }
 0x37d   :  { %v4934_v9 = vpop.eup %4933  ;;  %v2560_v31 = vsel %vm8075_vm2, 0, %v2558_v1  ;;  %4943 = vsinq.f32 %v2559_v36  ;;  %v2261_v41 = vsel %vm2254_vm10, %v2257_v13, %v2260_v12  ;;  %vm2355_vm3 = vweird.f32 %v8900_v7  ;;  %v8925_v7 = vld [vmem:[#allocation59_spill] sm:$0xff] }
 0x37e   :  { %v4936_v52 = vpop.eup %4935  ;;  %vm2358_vm5 = vcmp.lt.s32.totalorder %v2357_v61, 2  ;;  %v2363_v21 = vxor.u32 2147483648, %v4934_v9  ;;  %vm2362_vm6 = vcmp.eq.s32.totalorder %v2357_v61, 2  ;;  %v2461_v17 = vand.u32 3, %v2460_v60  ;;  %v8932_v60 = vld [vmem:[#allocation70_spill] sm:$0xff] }
 0x37f   :  { %v2360_v56 = vxor.u32 2147483648, %v4936_v52  ;;  %v2564_v37 = vadd.s32 3, %v2560_v31  ;;  %vm2359_vm8 = vcmp.eq.s32.totalorder %v2357_v61, 0  ;;  %v8919_v50 = vand.u32 2147483647, %v6658_v48 }
 0x380   :  { %v2364_v34 = vsel %vm2362_vm6, %v2363_v21, %v4936_v52  ;;  %v2661_v16 = vsub.s32 4, %v8922_v54  ;;  %v2262_v55 = vsel %vm2251_vm1, nan, %v2261_v41  ;;  %vm8923_vm15 = vcmp.lt.s32.totalorder %v6658_v48, 0 }
 0x381   :  { %vm8094_vm13 = vcmp.le.f32.partialorder %v8919_v50, 0.7853982  ;;  %v4938_v58 = vpop.eup %4937  ;;  %v2361_v10 = vsel %vm2359_vm8, %v4934_v9, %v2360_v56  ;;  %v2565_v59 = vand.u32 3, %v2564_v37  ;;  %vm2459_vm11 = vweird.f32 %v6525_v49 }
 0x382   :  { %v2663_v18 = vsel %vm8094_vm13, %v6658_v48, %v7222_v28  ;;  %v4940_v51 = vpop.eup %4939  ;;  %v2365_v27 = vsel %vm2358_vm5, %v2361_v10, %v2364_v34  ;;  %v2467_v0 = vxor.u32 2147483648, %v4938_v58  ;;  %v2662_v6 = vsel %vm8923_vm15, %v2661_v16, %v8922_v54 }
 0x383   :  { %4945 = vcosq.f32 %v2663_v18  ;;  %v2366_v25 = vsel %vm2355_vm3, nan, %v2365_v27  ;;  %v2464_v11 = vxor.u32 2147483648, %v4940_v51  ;;  %vm2466_vm12 = vcmp.eq.s32.totalorder %v2461_v17, 2 }
 0x384   :  { %vm3201_vm14 = vcmp.lt.s32.totalorder %v7132_v30, 0  ;;  %v3624_v45 = vpack.c.bf16 %v2366_v25, %v2262_v55  ;;  %vm2463_vm9 = vcmp.eq.s32.totalorder %v2461_v17, 0  ;;  %v2468_v28 = vsel %vm2466_vm12, %v2467_v0, %v4940_v51 }
 0x385   :  { %v2664_v42 = vsel %vm8094_vm13, 0, %v2662_v6  ;;  %vm3513_vm4 = vcmp.lt.s32.totalorder %v7211_v5, 0  ;;  %vm3409_vm2 = vcmp.lt.s32.totalorder %v8924_v40, 0  ;;  %v2465_v8 = vsel %vm2463_vm9, %v4938_v58, %v2464_v11  ;;  %v8942_v6 = vld [vmem:[#allocation78_spill] sm:$0xff] }
 0x386   :  { %4947 = vsinq.f32 %v2663_v18  ;;  %v8926_v15 = vand.u32 2147483647, %v8925_v7  ;;  %v2765_v3 = vsub.s32 4, %v8929_v62  ;;  %v4942_v33 = vpop.eup %4941  ;;  %4638 = vmatmul.mubr.bf16.gmra.mrb[16].mxu0 %v3624_v45  ;;  %vm2462_vm0 = vcmp.lt.s32.totalorder %v2461_v17, 2 }
 0x387   :  { %vm2563_vm7 = vweird.f32 %v8912_v47  ;;  %vm2566_vm10 = vcmp.lt.s32.totalorder %v2565_v59, 2  ;;  %v4944_v2 = vpop.eup %4943  ;;  %v2469_v23 = vsel %vm2462_vm0, %v2465_v8, %v2468_v28  ;;  %v2571_v53 = vxor.u32 2147483648, %v4942_v33 }
 0x388   :  { %vm8119_vm1 = vcmp.le.f32.partialorder %v8926_v15, 0.7853982  ;;  %v2668_v36 = vadd.s32 3, %v2664_v42  ;;  %vm8931_vm3 = vcmp.lt.s32.totalorder %v8925_v7, 0  ;;  %v2568_v12 = vxor.u32 2147483648, %v4944_v2  ;;  %v8947_v15 = vld [vmem:[#allocation74_spill] sm:$0xff] }
 0x389   :  { %v2767_v61 = vsel %vm8119_vm1, %v8925_v7, %v8930_v43  ;;  %v2766_v29 = vsel %vm8931_vm3, %v2765_v3, %v8929_v62  ;;  %vm2570_vm5 = vcmp.eq.s32.totalorder %v2565_v59, 2  ;;  %v2869_v1 = vsub.s32 4, %v8932_v60 }
 0x38a   :  { %4949 = vcosq.f32 %v2767_v61  ;;  %vm2567_vm6 = vcmp.eq.s32.totalorder %v2565_v59, 0  ;;  %v2572_v9 = vsel %vm2570_vm5, %v2571_v53, %v4944_v2  ;;  %v2768_v13 = vsel %vm8119_vm1, 0, %v2766_v29 }
 0x38b   :  { %v8933_v31 = vand.u32 2147483647, %v6837_v63  ;;  %v2470_v52 = vsel %vm2459_vm11, nan, %v2469_v23  ;;  %v2569_v41 = vsel %vm2567_vm6, %v4942_v33, %v2568_v12  ;;  %4951 = vsinq.f32 %v2767_v61 }
 0x38c   :  { %vm8934_vm13 = vcmp.lt.s32.totalorder %v6837_v63, 0  ;;  %v2573_v56 = vsel %vm2566_vm10, %v2569_v41, %v2572_v9  ;;  %v2669_v17 = vand.u32 3, %v2668_v36  ;;  %v2772_v54 = vadd.s32 3, %v2768_v13 }
 0x38d   :  { %vm2784_vm8 = vcmp.le.f32.partialorder %v8933_v31, 0.7853982  ;;  %v2870_v21 = vsel %vm8934_vm13, %v2869_v1, %v8932_v60  ;;  %v4946_v50 = vpop.eup %4945  ;;  %v2574_v38 = vsel %vm2563_vm7, nan, %v2573_v56  ;;  %v8935_v16 = vxor.u32 2147483648, %v7545_v32 }
 0x38e   :  { %v2871_v37 = vsel %vm2784_vm8, %v6837_v63, %v7488_v35  ;;  %v2872_v34 = vsel %vm2784_vm8, 0, %v2870_v21  ;;  %v3625_v55 = vpack.c.bf16 %v2574_v38, %v2470_v52  ;;  %v2675_v10 = vxor.u32 2147483648, %v4946_v50 }
 0x38f   :  { %4953 = vcosq.f32 %v2871_v37  ;;  %v2876_v49 = vadd.s32 3, %v2872_v34  ;;  %v8152_v58 = vsel %vm3201_vm14, %v8935_v16, %v7545_v32  ;;  %v8936_v35 = vxor.u32 2147483648, %v7623_v44  ;;  %v8937_v32 = vld [vmem:[#allocation62_spill] sm:$0xff] }
 0x390   :  { %4955 = vsinq.f32 %v2871_v37  ;;  %v8166_v59 = vsel %vm3409_vm2, %v3491_v4, %v7939_v22  ;;  %vm2667_vm15 = vweird.f32 %v6658_v48  ;;  %v8938_v18 = vand.u32 2147483647, %v8937_v32  ;;  %v4948_v27 = vpop.eup %4947  ;;  %4641 = vmatprep.mubr.bf16.mxu0 %v3625_v55 }
 0x391   :  { %v8159_v47 = vsel %vm3513_vm4, %v8936_v35, %v7623_v44  ;;  %vm2671_vm12 = vcmp.eq.s32.totalorder %v2669_v17, 0  ;;  %vm2674_vm9 = vcmp.eq.s32.totalorder %v2669_v17, 2  ;;  %v8941_v44 = vld [vmem:[#allocation69_spill] sm:$0xff]  ;;  %v2672_v4 = vxor.u32 2147483648, %v4948_v27 }
 0x392   :  { %vm8171_vm11 = vcmp.le.f32.partialorder %v8938_v18, 0.7853982  ;;  %v2973_v0 = vsub.s32 4, %v8941_v44  ;;  %vm2771_vm1 = vweird.f32 %v8925_v7  ;;  %v2773_v25 = vand.u32 3, %v2772_v54 }
 0x393   :  { %v2975_v22 = vsel %vm8171_vm11, %v8937_v32, %v8942_v6  ;;  %v2877_v11 = vand.u32 3, %v2876_v49  ;;  %v8943_v45 = vand.u32 2147483647, %v6990_v26  ;;  %v2676_v42 = vsel %vm2674_vm9, %v2675_v10, %v4948_v27  ;;  %v8957_v6 = vld [vmem:[#allocation77_spill] sm:$0xff] }
 0x394   :  { %vm8946_vm7 = vcmp.lt.s32.totalorder %v8937_v32, 0  ;;  %4957 = vcosq.f32 %v2975_v22  ;;  %v3077_v57 = vsub.s32 4, %v8947_v15  ;;  %v4950_v62 = vpop.eup %4949  ;;  %v2673_v3 = vsel %vm2671_vm12, %v4946_v50, %v2672_v4 }
 0x395   :  { %vm8183_vm0 = vcmp.le.f32.partialorder %v8943_v45, 0.7853982  ;;  %v2974_v8 = vsel %vm8946_vm7, %v2973_v0, %v8941_v44  ;;  %4959 = vsinq.f32 %v2975_v22  ;;  %vm2670_vm10 = vcmp.lt.s32.totalorder %v2669_v17, 2  ;;  %v4952_v53 = vpop.eup %4951 }
 0x396   :  { %v2976_v33 = vsel %vm8171_vm11, 0, %v2974_v8  ;;  %v3079_v43 = vsel %vm8183_vm0, %v6990_v26, %v7580_v14  ;;  %v2779_v61 = vxor.u32 2147483648, %v4950_v62  ;;  %vm8948_vm3 = vcmp.lt.s32.totalorder %v6990_v26, 0  ;;  %v8949_v14 = vld [vmem:[#allocation72_spill] sm:$0xff] }
 0x397   :  { %v2980_v2 = vadd.s32 3, %v2976_v33  ;;  %v3078_v23 = vsel %vm8948_vm3, %v3077_v57, %v8947_v15  ;;  %v2677_v36 = vsel %vm2670_vm10, %v2673_v3, %v2676_v42  ;;  %vm2774_vm5 = vcmp.lt.s32.totalorder %v2773_v25, 2 }
 0x398   :  { %vm2778_vm6 = vcmp.eq.s32.totalorder %v2773_v25, 2  ;;  %4961 = vcosq.f32 %v3079_v43  ;;  %v2776_v29 = vxor.u32 2147483648, %v4952_v53  ;;  %v3080_v60 = vsel %vm8183_vm0, 0, %v3078_v23 }
 0x399   :  { %v2780_v12 = vsel %vm2778_vm6, %v2779_v61, %v4952_v53  ;;  %4963 = vsinq.f32 %v3079_v43  ;;  %v4954_v1 = vpop.eup %4953  ;;  %vm2775_vm8 = vcmp.eq.s32.totalorder %v2773_v25, 0  ;;  %vm2879_vm13 = vcmp.eq.s32.totalorder %v2877_v11, 0  ;;  %v8961_v53 = vld [vmem:[#allocation75_spill] sm:$0xff] }
 0x39a   :  { %vm2882_vm11 = vcmp.eq.s32.totalorder %v2877_v11, 2  ;;  %v3181_v9 = vsub.s32 4, %v8949_v14  ;;  %v4956_v13 = vpop.eup %4955  ;;  %v2678_v31 = vsel %vm2667_vm15, nan, %v2677_v36  ;;  %v2777_v52 = vsel %vm2775_vm8, %v4950_v62, %v2776_v29 }
 0x39b   :  { %v2883_v41 = vxor.u32 2147483648, %v4954_v1  ;;  %v2981_v21 = vand.u32 3, %v2980_v2  ;;  %v2781_v56 = vsel %vm2774_vm5, %v2777_v52, %v2780_v12  ;;  %v2880_v17 = vxor.u32 2147483648, %v4956_v13 }
 0x39c   :  { %v3084_v37 = vadd.s32 3, %v3080_v60  ;;  %v8950_v34 = vand.u32 2147483647, %v6849_v19  ;;  %v2782_v38 = vsel %vm2771_vm1, nan, %v2781_v56  ;;  %vm8953_vm15 = vcmp.lt.s32.totalorder %v6849_v19, 0 }
 0x39d   :  { %v2884_v54 = vsel %vm2882_vm11, %v2883_v41, %v4956_v13  ;;  %v3182_v48 = vsel %vm8953_vm15, %v3181_v9, %v8949_v14  ;;  %v3626_v16 = vpack.c.bf16 %v2782_v38, %v2678_v31  ;;  %vm2875_vm9 = vweird.f32 %v6837_v63 }
 0x39e   :  { %vm8208_vm12 = vcmp.le.f32.partialorder %v8950_v34, 0.7853982  ;;  %vm2878_vm0 = vcmp.lt.s32.totalorder %v2877_v11, 2  ;;  %v2881_v55 = vsel %vm2879_vm13, %v4954_v1, %v2880_v17  ;;  %v4958_v10 = vpop.eup %4957  ;;  %vm2982_vm7 = vcmp.lt.s32.totalorder %v2981_v21, 2 }
 0x39f   :  { %v3183_v49 = vsel %vm8208_vm12, %v6849_v19, %v7495_v46  ;;  %v2885_v35 = vsel %vm2878_vm0, %v2881_v55, %v2884_v54  ;;  %v3184_v7 = vsel %vm8208_vm12, 0, %v3182_v48  ;;  %v4960_v18 = vpop.eup %4959  ;;  %4642 = vmatmul.mubr.bf16.gmra.mrb[20].mxu0 %v3626_v16  ;;  %vm2983_vm1 = vcmp.eq.s32.totalorder %v2981_v21, 0 }
 0x3a0   :  { %4965 = vcosq.f32 %v3183_v49  ;;  %vm2986_vm10 = vcmp.eq.s32.totalorder %v2981_v21, 2  ;;  %v2987_v51 = vxor.u32 2147483648, %v4958_v10  ;;  %v2984_v46 = vxor.u32 2147483648, %v4960_v18 }
 0x3a1   :  { %4967 = vsinq.f32 %v3183_v49  ;;  %v3085_v27 = vand.u32 3, %v3084_v37  ;;  %v8954_v44 = vand.u32 2147483647, %v7132_v30  ;;  %v3285_v22 = vsub.s32 4, %v8957_v6 }
 0x3a2   :  { %v4962_v4 = vpop.eup %4961  ;;  %v2886_v25 = vsel %vm2875_vm9, nan, %v2885_v35  ;;  %v2988_v11 = vsel %vm2986_vm10, %v2987_v51, %v4960_v18  ;;  %v3188_v45 = vadd.s32 3, %v3184_v7  ;;  %v2985_v8 = vsel %vm2983_vm1, %v4958_v10, %v2984_v46  ;;  %v8969_v10 = vld [vmem:[#allocation9_spill] sm:$0xff] }
 0x3a3   :  { %vm8227_vm3 = vcmp.le.f32.partialorder %v8954_v44, 0.7853982  ;;  %v4964_v42 = vpop.eup %4963  ;;  %v3091_v15 = vxor.u32 2147483648, %v4962_v4  ;;  %v3286_v57 = vsel %vm3201_vm14, %v3285_v22, %v8957_v6  ;;  %vm2979_vm5 = vweird.f32 %v8937_v32 }
 0x3a4   :  { %v3287_v28 = vsel %vm8227_vm3, %v7132_v30, %v8152_v58  ;;  %v2989_v63 = vsel %vm2982_vm7, %v2985_v8, %v2988_v11  ;;  %vm3083_vm6 = vweird.f32 %v6990_v26  ;;  %v3088_v62 = vxor.u32 2147483648, %v4964_v42 }
 0x3a5   :  { %4969 = vcosq.f32 %v3287_v28  ;;  %v2990_v3 = vsel %vm2979_vm5, nan, %v2989_v63  ;;  %vm3087_vm8 = vcmp.eq.s32.totalorder %v3085_v27, 0  ;;  %vm3090_vm13 = vcmp.eq.s32.totalorder %v3085_v27, 2 }
 0x3a6   :  { %v3288_v58 = vsel %vm8227_vm3, 0, %v3286_v57  ;;  %v3627_v33 = vpack.c.bf16 %v2990_v3, %v2886_v25  ;;  %vm3187_vm11 = vweird.f32 %v6849_v19  ;;  %v3189_v43 = vand.u32 3, %v3188_v45 }
 0x3a7   :  { %4971 = vsinq.f32 %v3287_v28  ;;  %v8958_v61 = vand.u32 2147483647, %v7063_v20  ;;  %v3089_v2 = vsel %vm3087_vm8, %v4962_v4, %v3088_v62  ;;  %v3092_v23 = vsel %vm3090_vm13, %v3091_v15, %v4964_v42 }
 0x3a8   :  { %v3389_v36 = vsub.s32 4, %v8961_v53  ;;  %4645 = vmatprep.mubr.bf16.mxu0 %v3627_v33  ;;  %vm3086_vm12 = vcmp.lt.s32.totalorder %v3085_v27, 2  ;;  %v3292_v12 = vadd.s32 3, %v3288_v58  ;;  %v8962_v60 = vand.u32 2147483647, %v8924_v40 }
 0x3a9   :  { %vm8249_vm14 = vcmp.le.f32.partialorder %v8958_v61, 0.7853982  ;;  %vm8965_vm9 = vcmp.lt.s32.totalorder %v7063_v20, 0  ;;  %v3493_v13 = vsub.s32 4, %v7459_v24  ;;  %v3093_v52 = vsel %vm3086_vm12, %v3089_v2, %v3092_v23 }
 0x3aa   :  { %v3391_v29 = vsel %vm8249_vm14, %v7063_v20, %v7591_v39  ;;  %vm8260_vm15 = vcmp.le.f32.partialorder %v8962_v60, 0.7853982  ;;  %v4966_v14 = vpop.eup %4965  ;;  %v3390_v9 = vsel %vm8965_vm9, %v3389_v36, %v8961_v53  ;;  %vm3191_vm0 = vcmp.eq.s32.totalorder %v3189_v43, 0 }
 0x3ab   :  { %4973 = vcosq.f32 %v3391_v29  ;;  %v3495_v39 = vsel %vm8260_vm15, %v8924_v40, %v8166_v59  ;;  %v4968_v31 = vpop.eup %4967  ;;  %vm3194_vm7 = vcmp.eq.s32.totalorder %v3189_v43, 2  ;;  %v3195_v41 = vxor.u32 2147483648, %v4966_v14 }
 0x3ac   :  { %4975 = vsinq.f32 %v3391_v29  ;;  %v3192_v21 = vxor.u32 2147483648, %v4968_v31  ;;  %v3392_v56 = vsel %vm8249_vm14, 0, %v3390_v9  ;;  %v3494_v17 = vsel %vm3409_vm2, %v3493_v13, %v7459_v24 }
 0x3ad   :  { %4977 = vcosq.f32 %v3495_v39  ;;  %v3196_v37 = vsel %vm3194_vm7, %v3195_v41, %v4968_v31  ;;  %v3293_v34 = vand.u32 3, %v3292_v12  ;;  %v3396_v50 = vadd.s32 3, %v3392_v56  ;;  %v4851_v31 = vld [vmem:[%s8488_s3 + $0x10] sm:$0xff]   ;;  %v4854_v41 = vld [vmem:[%s8488_s3 + $0x28] sm:$0xff]   ;;  %v4856_v56 = vld [vmem:[%s8488_s3 + $0x38] sm:$0xff]  }
 0x3ae   :  { %4979 = vsinq.f32 %v3495_v39  ;;  %v3094_v59 = vsel %vm3083_vm6, nan, %v3093_v52  ;;  %vm3190_vm1 = vcmp.lt.s32.totalorder %v3189_v43, 2  ;;  %v3193_v54 = vsel %vm3191_vm0, %v4966_v14, %v3192_v21  ;;  %v4849_v39 = vld [vmem:[%s8488_s3] sm:$0xff]   ;;  %v4855_v21 = vld [vmem:[%s8488_s3 + $0x30] sm:$0xff]  }
 0x3af   :  { %v4970_v38 = vpop.eup %4969  ;;  %v3496_v48 = vsel %vm8260_vm15, 0, %v3494_v17  ;;  %v3197_v49 = vsel %vm3190_vm1, %v3193_v54, %v3196_v37  ;;  %v8966_v55 = vand.u32 2147483647, %v7211_v5  ;;  %v3597_v35 = vsub.s32 4, %v8969_v10  ;;  %4653 = vmatprep.subr.bf16.mxu1 %v4849_v39  ;;  %v4853_v52 = vld [vmem:[%s8488_s3 + $0x20] sm:$0xff]  }
 0x3b0   :  { %v3299_v16 = vxor.u32 2147483648, %v4970_v38  ;;  %v3198_v7 = vsel %vm3187_vm11, nan, %v3197_v49  ;;  %vm3298_vm2 = vcmp.eq.s32.totalorder %v3293_v34, 2  ;;  %v3397_v46 = vand.u32 3, %v3396_v50  ;;  %4654 = vmatpush3.bf16.msra.mxu1 %v4849_v39  ;;  %v8330_v17 = vld [vmem:[%s8486_s1 + $0x2] ss:$0 sm:$0xff] }
 0x3b1   :  { %vm8283_vm10 = vcmp.le.f32.partialorder %v8966_v55, 0.7853982  ;;  %v4972_v18 = vpop.eup %4971  ;;  %v3628_v51 = vpack.c.bf16 %v3198_v7, %v3094_v59  ;;  %v3500_v0 = vadd.s32 3, %v3496_v48  ;;  %vm3294_vm3 = vcmp.lt.s32.totalorder %v3293_v34, 2 }
 0x3b2   :  { %v3599_v26 = vsel %vm8283_vm10, %v7211_v5, %v8159_v47  ;;  %v3296_v27 = vxor.u32 2147483648, %v4972_v18  ;;  %v3300_v44 = vsel %vm3298_vm2, %v3299_v16, %v4972_v18  ;;  %vm3295_vm5 = vcmp.eq.s32.totalorder %v3293_v34, 0 }
 0x3b3   :  { %4646 = vmatmul.mubr.bf16.gmra.mrb[24].mxu0 %v3628_v51  ;;  %v3598_v19 = vsel %vm3513_vm4, %v3597_v35, %v8969_v10  ;;  %4981 = vcosq.f32 %v3599_v26  ;;  %vm3291_vm6 = vweird.f32 %v7132_v30  ;;  %vm3402_vm8 = vcmp.eq.s32.totalorder %v3397_v46, 2 }
 0x3b4   :  { %v3297_v4 = vsel %vm3295_vm5, %v4970_v38, %v3296_v27  ;;  %v3600_v47 = vsel %vm8283_vm10, 0, %v3598_v19  ;;  %4983 = vsinq.f32 %v3599_v26  ;;  %vm3398_vm13 = vcmp.lt.s32.totalorder %v3397_v46, 2 }
 0x3b5   :  { %v4974_v6 = vpop.eup %4973  ;;  %v3301_v11 = vsel %vm3294_vm3, %v3297_v4, %v3300_v44  ;;  %vm3399_vm11 = vcmp.eq.s32.totalorder %v3397_v46, 0  ;;  %v3501_v8 = vand.u32 3, %v3500_v0  ;;  %v3604_v3 = vadd.s32 3, %v3600_v47 }
 0x3b6   :  { %v4976_v22 = vpop.eup %4975  ;;  %v3403_v25 = vxor.u32 2147483648, %v4974_v6  ;;  %v3302_v57 = vsel %vm3291_vm6, nan, %v3301_v11  ;;  %vm3395_vm4 = vweird.f32 %v7063_v20  ;;  %vm3499_vm0 = vweird.f32 %v8924_v40  ;;  %v4850_v40 = vld [vmem:[%s8488_s3 + $0x8] sm:$0xff]  }
 0x3b7   :  { %v3400_v45 = vxor.u32 2147483648, %v4976_v22  ;;  %v4978_v28 = vpop.eup %4977  ;;  %vm3503_vm14 = vcmp.eq.s32.totalorder %v3501_v8, 0  ;;  %vm3506_vm12 = vcmp.eq.s32.totalorder %v3501_v8, 2  ;;  %v3605_v2 = vand.u32 3, %v3604_v3  ;;  %4655 = vmatprep.subr.bf16.mxu1 %v4850_v40 }
 0x3b8   :  { %v3404_v42 = vsel %vm3402_vm8, %v3403_v25, %v4976_v22  ;;  %v4980_v15 = vpop.eup %4979  ;;  %v3507_v62 = vxor.u32 2147483648, %v4978_v28  ;;  %vm3502_vm15 = vcmp.lt.s32.totalorder %v3501_v8, 2  ;;  %vm3603_vm10 = vweird.f32 %v7211_v5  ;;  %4656 = vmatpush3.bf16.msra.mxu1 %v4850_v40  ;;  %v4852_v5 = vld [vmem:[%s8488_s3 + $0x18] sm:$0xff]  }
 0x3b9   :  { %v3401_v63 = vsel %vm3399_vm11, %v4974_v6, %v3400_v45  ;;  %v3504_v33 = vxor.u32 2147483648, %v4980_v15  ;;  %vm3610_vm9 = vcmp.eq.s32.totalorder %v3605_v2, 2  ;;  %vm3607_vm7 = vcmp.eq.s32.totalorder %v3605_v2, 0  ;;  %4657 = vmatprep.subr.bf16.mxu1 %v4851_v31 }
 0x3ba   :  { %v3405_v58 = vsel %vm3398_vm13, %v3401_v63, %v3404_v42  ;;  %v3508_v32 = vsel %vm3506_vm12, %v3507_v62, %v4980_v15  ;;  %vm3606_vm1 = vcmp.lt.s32.totalorder %v3605_v2, 2 }
 0x3bb   :  { %v3406_v43 = vsel %vm3395_vm4, nan, %v3405_v58  ;;  %v3505_v30 = vsel %vm3503_vm14, %v4978_v28, %v3504_v33 }
 0x3bc   :  { %v3629_v61 = vpack.c.bf16 %v3406_v43, %v3302_v57  ;;  %v3509_v36 = vsel %vm3502_vm15, %v3505_v30, %v3508_v32  ;;  %4658 = vmatpush3.bf16.msra.mxu1 %v4851_v31 }
 0x3bd   :  { %v4982_v23 = vpop.eup %4981  ;;  %v3510_v60 = vsel %vm3499_vm0, nan, %v3509_v36  ;;  %4659 = vmatprep.subr.bf16.mxu1 %v4852_v5 }
 0x3be   :  { %4649 = vmatprep.mubr.bf16.mxu0 %v3629_v61  ;;  %v4984_v53 = vpop.eup %4983  ;;  %v3611_v29 = vxor.u32 2147483648, %v4982_v23 }
 0x3bf   :  { %v3608_v12 = vxor.u32 2147483648, %v4984_v53 }
 0x3c0   :  { %v3612_v20 = vsel %vm3610_vm9, %v3611_v29, %v4984_v53  ;;  %4660 = vmatpush3.bf16.msra.mxu1 %v4852_v5 }
 0x3c1   :  { %v3609_v1 = vsel %vm3607_vm7, %v4982_v23, %v3608_v12  ;;  %4661 = vmatprep.subr.bf16.mxu1 %v4853_v52 }
 0x3c2   :  { %v3613_v14 = vsel %vm3606_vm1, %v3609_v1, %v3612_v20 }
 0x3c3   :  { %v3614_v9 = vsel %vm3603_vm10, nan, %v3613_v14 }
 0x3c4   :  { %v3630_v13 = vpack.c.bf16 %v3614_v9, %v3510_v60  ;;  %4662 = vmatpush3.bf16.msra.mxu1 %v4853_v52 }
 0x3c5   :  { %4663 = vmatprep.subr.bf16.mxu1 %v4854_v41 }
 0x3c6   :  { %4650 = vmatmul.mubr.bf16.gmra.mrb[28].mxu0 %v3630_v13 }
 0x3c8   :  { %4664 = vmatpush3.bf16.msra.mxu1 %v4854_v41 }
 0x3c9   :  { %4665 = vmatprep.subr.bf16.mxu1 %v4855_v21 }
 0x3cc   :  { %4666 = vmatpush3.bf16.msra.mxu1 %v4855_v21 }
 0x3cd   :  { %4667 = vmatprep.subr.bf16.mxu1 %v4856_v56 }
 0x3d0   :  { %4668 = vmatpush3.bf16.msra.mxu1 %v4856_v56 }
 0x419   :  { %v4623_v37 = vpop.f32.mrb[0].mxu0 }
 0x41a   :  { %v8333_v34 = vadd.f32 %v4623_v37, %v8330_v17  ;;  %v3733_v50 = vpop.f32.mrb[1].mxu0 }
 0x41b   :  { %v8336_v38 = vadd.f32 %v8330_v17, %v3733_v50  ;;  %v4624_v59 = vpop.f32.mrb[2].mxu0 }
 0x41c   :  { %v4518_v54 = vmul.f32 -1.442695, %v8333_v34  ;;  %v8340_v48 = vadd.f32 %v4624_v59, %v8330_v17  ;;  %v3736_v49 = vpop.f32.mrb[3].mxu0 }
 0x41d   :  { %v4516_v16 = vmul.f32 -1.442695, %v8336_v38  ;;  %v8344_v55 = vadd.f32 %v8330_v17, %v3736_v49 }
 0x41e   :  { %4985 = vpow2.f32 %v4518_v54  ;;  %v4519_v24 = vmul.f32 -1.442695, %v8340_v48 }
 0x41f   :  { %4987 = vpow2.f32 %v4516_v16  ;;  %v4517_v10 = vmul.f32 -1.442695, %v8344_v55 }
 0x420   :  { %4989 = vpow2.f32 %v4519_v24 }
 0x421   :  { %4991 = vpow2.f32 %v4517_v10  ;;  %v4627_v35 = vpop.f32.mrb[4].mxu0 }
 0x422   :  { %v8349_v7 = vadd.f32 %v4627_v35, %v8330_v17  ;;  %v3749_v26 = vpop.f32.mrb[5].mxu0 }
 0x423   :  { %v8352_v18 = vadd.f32 %v8330_v17, %v3749_v26  ;;  %v4628_v51 = vpop.f32.mrb[6].mxu0 }
 0x424   :  { %v4522_v46 = vmul.f32 -1.442695, %v8349_v7  ;;  %v8356_v27 = vadd.f32 %v4628_v51, %v8330_v17  ;;  %v3752_v44 = vpop.f32.mrb[7].mxu0 }
 0x425   :  { %v4520_v0 = vmul.f32 -1.442695, %v8352_v18  ;;  %v8360_v6 = vadd.f32 %v8330_v17, %v3752_v44 }
 0x426   :  { %4993 = vpow2.f32 %v4522_v46  ;;  %v4523_v19 = vmul.f32 -1.442695, %v8356_v27 }
 0x427   :  { %4995 = vpow2.f32 %v4520_v0  ;;  %v4521_v22 = vmul.f32 -1.442695, %v8360_v6 }
 0x428   :  { %v4986_v4 = vpop.eup %4985  ;;  %4997 = vpow2.f32 %v4523_v19 }
 0x429   :  { %v4988_v25 = vpop.eup %4987  ;;  %v3958_v47 = vadd.f32 1.0, %v4986_v4  ;;  %4999 = vpow2.f32 %v4521_v22 }
 0x42a   :  { %v4990_v11 = vpop.eup %4989  ;;  %v3956_v45 = vadd.f32 1.0, %v4988_v25 }
 0x42b   :  { %v4992_v28 = vpop.eup %4991  ;;  %5001 = vrcp.f32 %v3958_v47  ;;  %v3959_v42 = vadd.f32 1.0, %v4990_v11 }
 0x42c   :  { %5003 = vrcp.f32 %v3956_v45  ;;  %v3957_v8 = vadd.f32 1.0, %v4992_v28 }
 0x42d   :  { %5005 = vrcp.f32 %v3959_v42 }
 0x42e   :  { %5007 = vrcp.f32 %v3957_v8 }
 0x42f   :  { %v4631_v15 = vpop.f32.mrb[8].mxu0 }
 0x430   :  { %v8365_v57 = vadd.f32 %v4631_v15, %v8330_v17  ;;  %v3765_v63 = vpop.f32.mrb[9].mxu0  ;;  %v4994_v58 = vpop.eup %4993 }
 0x431   :  { %v8368_v62 = vadd.f32 %v8330_v17, %v3765_v63  ;;  %v4632_v3 = vpop.f32.mrb[10].mxu0  ;;  %v4996_v30 = vpop.eup %4995  ;;  %v3962_v32 = vadd.f32 1.0, %v4994_v58 }
 0x432   :  { %v4526_v33 = vmul.f32 -1.442695, %v8365_v57  ;;  %v8372_v43 = vadd.f32 %v4632_v3, %v8330_v17  ;;  %v3768_v61 = vpop.f32.mrb[11].mxu0  ;;  %v4998_v23 = vpop.eup %4997  ;;  %v3960_v53 = vadd.f32 1.0, %v4996_v30 }
 0x433   :  { %v8375_v2 = vadd.f32 %v8330_v17, %v3768_v61  ;;  %v5000_v36 = vpop.eup %4999  ;;  %v3963_v29 = vadd.f32 1.0, %v4998_v23  ;;  %v4524_v12 = vmul.f32 -1.442695, %v8368_v62 }
 0x434   :  { %5009 = vpow2.f32 %v4526_v33  ;;  %v3961_v20 = vadd.f32 1.0, %v5000_v36  ;;  %v4527_v60 = vmul.f32 -1.442695, %v8372_v43 }
 0x435   :  { %5011 = vrcp.f32 %v3962_v32  ;;  %v5002_v1 = vpop.eup %5001  ;;  %v4525_v14 = vmul.f32 -1.442695, %v8375_v2 }
 0x436   :  { %5013 = vrcp.f32 %v3960_v53  ;;  %v5004_v9 = vpop.eup %5003  ;;  %v4054_v40 = vmul.f32 %v5002_v1, %v8333_v34 }
 0x437   :  { %5015 = vrcp.f32 %v3963_v29  ;;  %v5006_v13 = vpop.eup %5005  ;;  %v4052_v5 = vmul.f32 %v5004_v9, %v8336_v38 }
 0x438   :  { %5017 = vrcp.f32 %v3961_v20  ;;  %v5008_v39 = vpop.eup %5007  ;;  %v4055_v31 = vmul.f32 %v5006_v13, %v8340_v48 }
 0x439   :  { %5019 = vpow2.f32 %v4524_v12  ;;  %v4053_v52 = vmul.f32 %v5008_v39, %v8344_v55 }
 0x43a   :  { %5021 = vpow2.f32 %v4527_v60  ;;  %v4085_v41 = vpack.c.bf16 %v4055_v31, %v4054_v40 }
 0x43b   :  { %5023 = vpow2.f32 %v4525_v14  ;;  %v4084_v21 = vpack.c.bf16 %v4053_v52, %v4052_v5 }
 0x43d   :  { %4669 = vmatprep.mubr.bf16.mxu1 %v4084_v21 }
 0x43e   :  { %v5010_v56 = vpop.eup %5009  ;;  %4670 = vmatmul.mubr.bf16.vlgmr.msra.gmra.mrb[0].mxu1 %v4085_v41 }
 0x43f   :  { %v5012_v37 = vpop.eup %5011  ;;  %v3966_v59 = vadd.f32 1.0, %v5010_v56 }
 0x440   :  { %v5014_v50 = vpop.eup %5013  ;;  %v4058_v34 = vmul.f32 %v5012_v37, %v8349_v7 }
 0x441   :  { %v5016_v54 = vpop.eup %5015  ;;  %v4056_v10 = vmul.f32 %v5014_v50, %v8352_v18  ;;  %5025 = vrcp.f32 %v3966_v59 }
 0x442   :  { %v5018_v16 = vpop.eup %5017  ;;  %v4059_v48 = vmul.f32 %v5016_v54, %v8356_v27 }
 0x443   :  { %v4635_v49 = vpop.f32.mrb[12].mxu0  ;;  %v5020_v55 = vpop.eup %5019  ;;  %v4057_v35 = vmul.f32 %v5018_v16, %v8360_v6 }
 0x444   :  { %v8387_v24 = vadd.f32 %v4635_v49, %v8330_v17  ;;  %v3781_v38 = vpop.f32.mrb[13].mxu0  ;;  %v5022_v46 = vpop.eup %5021  ;;  %v3964_v44 = vadd.f32 1.0, %v5020_v55  ;;  %v4087_v0 = vpack.c.bf16 %v4059_v48, %v4058_v34 }
 0x445   :  { %v8392_v26 = vadd.f32 %v8330_v17, %v3781_v38  ;;  %v4636_v51 = vpop.f32.mrb[14].mxu0  ;;  %v5024_v19 = vpop.eup %5023  ;;  %v3967_v22 = vadd.f32 1.0, %v5022_v46  ;;  %v4086_v6 = vpack.c.bf16 %v4057_v35, %v4056_v10 }
 0x446   :  { %v8395_v7 = vadd.f32 %v4636_v51, %v8330_v17  ;;  %v3784_v27 = vpop.f32.mrb[15].mxu0  ;;  %v4530_v4 = vmul.f32 -1.442695, %v8387_v24  ;;  %5027 = vrcp.f32 %v3964_v44  ;;  %v3965_v25 = vadd.f32 1.0, %v5024_v19 }
 0x447   :  { %v8399_v18 = vadd.f32 %v8330_v17, %v3784_v27  ;;  %v4528_v47 = vmul.f32 -1.442695, %v8392_v26  ;;  %5029 = vrcp.f32 %v3967_v22  ;;  %4673 = vmatprep.mubr.bf16.mxu1 %v4086_v6 }
 0x448   :  { %v4531_v11 = vmul.f32 -1.442695, %v8395_v7  ;;  %5031 = vrcp.f32 %v3965_v25  ;;  %4674 = vmatmul.mubr.bf16.gmra.mrb[4].mxu1 %v4087_v0 }
 0x449   :  { %v4529_v45 = vmul.f32 -1.442695, %v8399_v18  ;;  %5033 = vpow2.f32 %v4530_v4 }
 0x44a   :  { %5035 = vpow2.f32 %v4528_v47 }
 0x44b   :  { %5037 = vpow2.f32 %v4531_v11  ;;  %v5026_v28 = vpop.eup %5025 }
 0x44c   :  { %5039 = vpow2.f32 %v4529_v45  ;;  %v4062_v63 = vmul.f32 %v5026_v28, %v8365_v57 }
 0x450   :  { %v5028_v42 = vpop.eup %5027 }
 0x451   :  { %v5030_v8 = vpop.eup %5029  ;;  %v4060_v33 = vmul.f32 %v5028_v42, %v8368_v62 }
 0x452   :  { %v5032_v15 = vpop.eup %5031  ;;  %v4063_v3 = vmul.f32 %v5030_v8, %v8372_v43 }
 0x453   :  { %v5034_v58 = vpop.eup %5033  ;;  %v4061_v61 = vmul.f32 %v5032_v15, %v8375_v2 }
 0x454   :  { %v5036_v30 = vpop.eup %5035  ;;  %v3970_v32 = vadd.f32 1.0, %v5034_v58  ;;  %v4089_v53 = vpack.c.bf16 %v4063_v3, %v4062_v63 }
 0x455   :  { %v5038_v36 = vpop.eup %5037  ;;  %v3968_v29 = vadd.f32 1.0, %v5036_v30  ;;  %v4088_v60 = vpack.c.bf16 %v4061_v61, %v4060_v33 }
 0x456   :  { %v5040_v1 = vpop.eup %5039  ;;  %5041 = vrcp.f32 %v3970_v32  ;;  %v3971_v57 = vadd.f32 1.0, %v5038_v36 }
 0x457   :  { %5043 = vrcp.f32 %v3968_v29  ;;  %v3969_v2 = vadd.f32 1.0, %v5040_v1  ;;  %4677 = vmatprep.mubr.bf16.mxu1 %v4088_v60 }
 0x458   :  { %5045 = vrcp.f32 %v3971_v57  ;;  %4678 = vmatmul.mubr.bf16.gmra.mrb[8].mxu1 %v4089_v53 }
 0x459   :  { %v4639_v23 = vpop.f32.mrb[16].mxu0  ;;  %5047 = vrcp.f32 %v3969_v2 }
 0x45a   :  { %v8409_v12 = vadd.f32 %v4639_v23, %v8330_v17  ;;  %v3797_v20 = vpop.f32.mrb[17].mxu0 }
 0x45b   :  { %v8412_v43 = vadd.f32 %v8330_v17, %v3797_v20  ;;  %v4640_v62 = vpop.f32.mrb[18].mxu0 }
 0x45c   :  { %v4534_v14 = vmul.f32 -1.442695, %v8409_v12  ;;  %v3809_v9 = vadd.f32 %v4640_v62, %v8330_v17  ;;  %v3800_v13 = vpop.f32.mrb[19].mxu0 }
 0x45d   :  { %v4532_v39 = vmul.f32 -1.442695, %v8412_v43  ;;  %v3801_v40 = vadd.f32 %v8330_v17, %v3800_v13 }
 0x45e   :  { %v4535_v31 = vmul.f32 -1.442695, %v3809_v9  ;;  %5049 = vpow2.f32 %v4534_v14 }
 0x45f   :  { %v4533_v5 = vmul.f32 -1.442695, %v3801_v40  ;;  %5051 = vpow2.f32 %v4532_v39 }
 0x460   :  { %5053 = vpow2.f32 %v4535_v31  ;;  %v5042_v52 = vpop.eup %5041 }
 0x461   :  { %5055 = vpow2.f32 %v4533_v5  ;;  %v5044_v41 = vpop.eup %5043  ;;  %v4066_v37 = vmul.f32 %v5042_v52, %v8387_v24 }
 0x462   :  { %v5046_v21 = vpop.eup %5045  ;;  %v4064_v54 = vmul.f32 %v5044_v41, %v8392_v26 }
 0x463   :  { %v5048_v56 = vpop.eup %5047  ;;  %v4067_v50 = vmul.f32 %v5046_v21, %v8395_v7 }
 0x464   :  { %v4065_v49 = vmul.f32 %v5048_v56, %v8399_v18 }
 0x465   :  { %v4091_v48 = vpack.c.bf16 %v4067_v50, %v4066_v37 }
 0x466   :  { %v4090_v10 = vpack.c.bf16 %v4065_v49, %v4064_v54 }
 0x468   :  { %v5050_v59 = vpop.eup %5049  ;;  %4681 = vmatprep.mubr.bf16.mxu1 %v4090_v10 }
 0x469   :  { %v5052_v16 = vpop.eup %5051  ;;  %v3974_v34 = vadd.f32 1.0, %v5050_v59  ;;  %4682 = vmatmul.mubr.bf16.gmra.mrb[12].mxu1 %v4091_v48 }
 0x46a   :  { %v5054_v38 = vpop.eup %5053  ;;  %v3972_v55 = vadd.f32 1.0, %v5052_v16 }
 0x46b   :  { %v5056_v35 = vpop.eup %5055  ;;  %5057 = vrcp.f32 %v3974_v34  ;;  %v3975_v51 = vadd.f32 1.0, %v5054_v38 }
 0x46c   :  { %5059 = vrcp.f32 %v3972_v55  ;;  %v3973_v46 = vadd.f32 1.0, %v5056_v35 }
 0x46d   :  { %5061 = vrcp.f32 %v3975_v51 }
 0x46e   :  { %5063 = vrcp.f32 %v3973_v46 }
 0x472   :  { %v4643_v24 = vpop.f32.mrb[20].mxu0 }
 0x473   :  { %v3822_v26 = vadd.f32 %v4643_v24, %v8330_v17  ;;  %v3813_v44 = vpop.f32.mrb[21].mxu0 }
 0x474   :  { %v3814_v7 = vadd.f32 %v8330_v17, %v3813_v44  ;;  %v4644_v27 = vpop.f32.mrb[22].mxu0 }
 0x475   :  { %v4538_v0 = vmul.f32 -1.442695, %v3822_v26  ;;  %v3825_v19 = vadd.f32 %v4644_v27, %v8330_v17  ;;  %v3816_v22 = vpop.f32.mrb[23].mxu0  ;;  %v5058_v47 = vpop.eup %5057 }
 0x476   :  { %v4536_v4 = vmul.f32 -1.442695, %v3814_v7  ;;  %v3817_v18 = vadd.f32 %v8330_v17, %v3816_v22  ;;  %v5060_v11 = vpop.eup %5059  ;;  %v4070_v42 = vmul.f32 %v5058_v47, %v8409_v12 }
 0x477   :  { %5065 = vpow2.f32 %v4538_v0  ;;  %v4539_v6 = vmul.f32 -1.442695, %v3825_v19  ;;  %v5062_v45 = vpop.eup %5061  ;;  %v4068_v15 = vmul.f32 %v5060_v11, %v8412_v43 }
 0x478   :  { %5067 = vpow2.f32 %v4536_v4  ;;  %v4537_v25 = vmul.f32 -1.442695, %v3817_v18  ;;  %v5064_v28 = vpop.eup %5063  ;;  %v4071_v8 = vmul.f32 %v5062_v45, %v3809_v9 }
 0x479   :  { %5069 = vpow2.f32 %v4539_v6  ;;  %v4069_v63 = vmul.f32 %v5064_v28, %v3801_v40 }
 0x47a   :  { %5071 = vpow2.f32 %v4537_v25  ;;  %v4093_v3 = vpack.c.bf16 %v4071_v8, %v4070_v42 }
 0x47b   :  { %v4092_v58 = vpack.c.bf16 %v4069_v63, %v4068_v15 }
 0x47d   :  { %4685 = vmatprep.mubr.bf16.mxu1 %v4092_v58 }
 0x47e   :  { %4686 = vmatmul.mubr.bf16.gmra.mrb[16].mxu1 %v4093_v3 }
 0x481   :  { %v5066_v33 = vpop.eup %5065 }
 0x482   :  { %v5068_v61 = vpop.eup %5067  ;;  %v3978_v30 = vadd.f32 1.0, %v5066_v33 }
 0x483   :  { %v5070_v32 = vpop.eup %5069  ;;  %v3976_v23 = vadd.f32 1.0, %v5068_v61 }
 0x484   :  { %v5072_v53 = vpop.eup %5071  ;;  %5073 = vrcp.f32 %v3978_v30  ;;  %v3979_v36 = vadd.f32 1.0, %v5070_v32 }
 0x485   :  { %5075 = vrcp.f32 %v3976_v23  ;;  %v3977_v20 = vadd.f32 1.0, %v5072_v53 }
 0x486   :  { %v4647_v29 = vpop.f32.mrb[24].mxu0  ;;  %5077 = vrcp.f32 %v3979_v36 }
 0x487   :  { %v3838_v12 = vadd.f32 %v4647_v29, %v8330_v17  ;;  %v3829_v60 = vpop.f32.mrb[25].mxu0  ;;  %5079 = vrcp.f32 %v3977_v20 }
 0x488   :  { %v3830_v1 = vadd.f32 %v8330_v17, %v3829_v60  ;;  %v4648_v57 = vpop.f32.mrb[26].mxu0 }
 0x489   :  { %v4542_v43 = vmul.f32 -1.442695, %v3838_v12  ;;  %v3841_v62 = vadd.f32 %v4648_v57, %v8330_v17  ;;  %v3832_v2 = vpop.f32.mrb[27].mxu0 }
 0x48a   :  { %v4540_v14 = vmul.f32 -1.442695, %v3830_v1  ;;  %v3833_v9 = vadd.f32 %v8330_v17, %v3832_v2 }
 0x48b   :  { %5081 = vpow2.f32 %v4542_v43  ;;  %v4543_v13 = vmul.f32 -1.442695, %v3841_v62 }
 0x48c   :  { %5083 = vpow2.f32 %v4540_v14  ;;  %v4541_v39 = vmul.f32 -1.442695, %v3833_v9 }
 0x48d   :  { %5085 = vpow2.f32 %v4543_v13 }
 0x48e   :  { %5087 = vpow2.f32 %v4541_v39  ;;  %v5074_v40 = vpop.eup %5073 }
 0x48f   :  { %v5076_v31 = vpop.eup %5075  ;;  %v4074_v41 = vmul.f32 %v5074_v40, %v3822_v26 }
 0x490   :  { %v5078_v5 = vpop.eup %5077  ;;  %v4072_v56 = vmul.f32 %v5076_v31, %v3814_v7 }
 0x491   :  { %v5080_v52 = vpop.eup %5079  ;;  %v4075_v21 = vmul.f32 %v5078_v5, %v3825_v19 }
 0x492   :  { %v4073_v37 = vmul.f32 %v5080_v52, %v3817_v18 }
 0x493   :  { %v4095_v59 = vpack.c.bf16 %v4075_v21, %v4074_v41 }
 0x494   :  { %v4094_v16 = vpack.c.bf16 %v4073_v37, %v4072_v56 }
 0x495   :  { %v5082_v50 = vpop.eup %5081 }
 0x496   :  { %v5084_v54 = vpop.eup %5083  ;;  %v3982_v49 = vadd.f32 1.0, %v5082_v50  ;;  %4689 = vmatprep.mubr.bf16.mxu1 %v4094_v16 }
 0x497   :  { %v5086_v34 = vpop.eup %5085  ;;  %v3980_v48 = vadd.f32 1.0, %v5084_v54  ;;  %4690 = vmatmul.mubr.bf16.gmra.mrb[20].mxu1 %v4095_v59 }
 0x498   :  { %v5088_v38 = vpop.eup %5087  ;;  %5089 = vrcp.f32 %v3982_v49  ;;  %v3983_v55 = vadd.f32 1.0, %v5086_v34 }
 0x499   :  { %5091 = vrcp.f32 %v3980_v48  ;;  %v3981_v10 = vadd.f32 1.0, %v5088_v38  ;;  %v4651_v35 = vpop.f32.mrb[28].mxu0 }
 0x49a   :  { %5093 = vrcp.f32 %v3983_v55  ;;  %v3854_v51 = vadd.f32 %v4651_v35, %v8330_v17  ;;  %v3845_v46 = vpop.f32.mrb[29].mxu0 }
 0x49b   :  { %5095 = vrcp.f32 %v3981_v10  ;;  %v3846_v24 = vadd.f32 %v8330_v17, %v3845_v46  ;;  %v4652_v26 = vpop.f32.mrb[30].mxu0 }
 0x49c   :  { %v4546_v44 = vmul.f32 -1.442695, %v3854_v51  ;;  %v3857_v7 = vadd.f32 %v4652_v26, %v8330_v17  ;;  %v3848_v27 = vpop.f32.mrb[31].mxu0 }
 0x49d   :  { %v4544_v0 = vmul.f32 -1.442695, %v3846_v24  ;;  %v3849_v19 = vadd.f32 %v8330_v17, %v3848_v27 }
 0x49e   :  { %5097 = vpow2.f32 %v4546_v44  ;;  %v4547_v22 = vmul.f32 -1.442695, %v3857_v7 }
 0x49f   :  { %5099 = vpow2.f32 %v4544_v0  ;;  %v4545_v4 = vmul.f32 -1.442695, %v3849_v19 }
 0x4a0   :  { %5101 = vpow2.f32 %v4547_v22 }
 0x4a1   :  { %5103 = vpow2.f32 %v4545_v4 }
 0x4a2   :  { %v5090_v18 = vpop.eup %5089 }
 0x4a3   :  { %v5092_v6 = vpop.eup %5091  ;;  %v4078_v11 = vmul.f32 %v5090_v18, %v3838_v12 }
 0x4a4   :  { %v5094_v25 = vpop.eup %5093  ;;  %v4076_v28 = vmul.f32 %v5092_v6, %v3830_v1 }
 0x4a5   :  { %v5096_v47 = vpop.eup %5095  ;;  %v4079_v45 = vmul.f32 %v5094_v25, %v3841_v62  ;;  %v8439_v62 = vld [vmem:[%s8486_s1 + $0x3] ss:$0 sm:$0xff]  ;;  %s5150_s1 = smov [#allocation2]  }
 0x4a6   :  { %v4077_v42 = vmul.f32 %v5096_v47, %v3833_v9  ;;  %s4366_s23 = sshll.u32 %s5150_s1, 4  ;;  %s4367_s23 = int_to_ptr.vmem [resolvable:$true] %s4366_s23 }
 0x4a7   :  { %v4097_v8 = vpack.c.bf16 %v4079_v45, %v4078_v11  ;;  %s5119_s24 = scalar_lea.vmem %s4367_s23, 4096  ;;  %p5124_p1 = scmp.lt.s32.totalorder %s4367_s23, %s4367_s23 }
 0x4a8   :  { %v5098_v15 = vpop.eup %5097  ;;  %v4096_v63 = vpack.c.bf16 %v4077_v42, %v4076_v28  ;;  %p5120_p0 = scmp.ne.s32.totalorder %s4367_s23, %s5119_s24  ;;  %p5125_p2 = scmp.lt.s32.totalorder %s5119_s24, %s5119_s24 }
 0x4a9   :  { %v5100_v3 = vpop.eup %5099  ;;  %v3986_v58 = vadd.f32 1.0, %v5098_v15 }
 0x4aa   :  { %v5102_v17 = vpop.eup %5101  ;;  %v3984_v33 = vadd.f32 1.0, %v5100_v3  ;;  %4693 = vmatprep.mubr.bf16.mxu1 %v4096_v63  ;;  %p5126_p3 = por %p5125_p2, %p5124_p1 }
 0x4ab   :  { %v5104_v61 = vpop.eup %5103  ;;  %5105 = vrcp.f32 %v3986_v58  ;;  %v3987_v30 = vadd.f32 1.0, %v5102_v17  ;;  %4694 = vmatmul.mubr.bf16.gmra.mrb[24].mxu1 %v4097_v8 }
 0x4ac   :  { %5107 = vrcp.f32 %v3984_v33  ;;  %v3985_v32 = vadd.f32 1.0, %v5104_v61  ;;  %p5127_p4 = pnand %p5126_p3, %p5120_p0 }
 0x4ad   :  { %5109 = vrcp.f32 %v3987_v30 }
 0x4ae   :  { %5111 = vrcp.f32 %v3985_v32 }
 0x4b5   :  { %v5106_v23 = vpop.eup %5105 }
 0x4b6   :  { %v5108_v53 = vpop.eup %5107  ;;  %v4082_v20 = vmul.f32 %v5106_v23, %v3854_v51 }
 0x4b7   :  { %v5110_v36 = vpop.eup %5109  ;;  %v4080_v60 = vmul.f32 %v5108_v53, %v3846_v24 }
 0x4b8   :  { %v5112_v29 = vpop.eup %5111  ;;  %v4083_v12 = vmul.f32 %v5110_v36, %v3857_v7 }
 0x4b9   :  { %v4081_v1 = vmul.f32 %v5112_v29, %v3849_v19 }
 0x4ba   :  { %v4099_v57 = vpack.c.bf16 %v4083_v12, %v4082_v20 }
 0x4bb   :  { %v4098_v43 = vpack.c.bf16 %v4081_v1, %v4080_v60 }
 0x4bd   :  { %4697 = vmatprep.mubr.bf16.mxu1 %v4098_v43 }
 0x4be   :  { %4698 = vmatmul.mubr.bf16.gmra.mrb[28].mxu1 %v4099_v57 }
 0x511   :  { %v4671_v2 = vpop.f32.mrb[0].mxu1 }
 0x512   :  { %v4211_v14 = vadd.f32 %v4671_v2, %v8439_v62  ;;  %v4202_v9 = vpop.f32.mrb[1].mxu1 }
 0x513   :  { %v4203_v13 = vadd.f32 %v8439_v62, %v4202_v9  ;;  %v4672_v39 = vpop.f32.mrb[2].mxu1 }
 0x514   :  { %4331 = vst [vmem:[#allocation2 + $0x10] sm:$0xff] %v4211_v14  ;;  %v4214_v40 = vadd.f32 %v4672_v39, %v8439_v62  ;;  %v4205_v31 = vpop.f32.mrb[3].mxu1 }
 0x515   :  { %4329 = vst [vmem:[#allocation2] sm:$0xff] %v4203_v13  ;;  %v4206_v5 = vadd.f32 %v8439_v62, %v4205_v31 }
 0x516   :  { %4332 = vst [vmem:[#allocation2 + $0x18] sm:$0xff] %v4214_v40 }
 0x517   :  { %4330 = vst [vmem:[#allocation2 + $0x8] sm:$0xff] %v4206_v5 }
 0x51b   :  { %v4675_v52 = vpop.f32.mrb[4].mxu1 }
 0x51c   :  { %v4227_v41 = vadd.f32 %v4675_v52, %v8439_v62  ;;  %v4218_v21 = vpop.f32.mrb[5].mxu1 }
 0x51d   :  { %v4219_v56 = vadd.f32 %v8439_v62, %v4218_v21  ;;  %v4676_v37 = vpop.f32.mrb[6].mxu1 }
 0x51e   :  { %4335 = vst [vmem:[#allocation2 + $0x30] sm:$0xff] %v4227_v41  ;;  %v4230_v50 = vadd.f32 %v4676_v37, %v8439_v62  ;;  %v4221_v59 = vpop.f32.mrb[7].mxu1 }
 0x51f   :  { %4333 = vst [vmem:[#allocation2 + $0x20] sm:$0xff] %v4219_v56  ;;  %v4222_v54 = vadd.f32 %v8439_v62, %v4221_v59 }
 0x520   :  { %4336 = vst [vmem:[#allocation2 + $0x38] sm:$0xff] %v4230_v50 }
 0x521   :  { %4334 = vst [vmem:[#allocation2 + $0x28] sm:$0xff] %v4222_v54 }
 0x52b   :  { %v4679_v49 = vpop.f32.mrb[8].mxu1 }
 0x52c   :  { %v4243_v16 = vadd.f32 %v4679_v49, %v8439_v62  ;;  %v4234_v34 = vpop.f32.mrb[9].mxu1 }
 0x52d   :  { %v4235_v48 = vadd.f32 %v8439_v62, %v4234_v34  ;;  %v4680_v38 = vpop.f32.mrb[10].mxu1 }
 0x52e   :  { %4339 = vst [vmem:[#allocation2 + $0x50] sm:$0xff] %v4243_v16  ;;  %v4246_v55 = vadd.f32 %v4680_v38, %v8439_v62  ;;  %v4237_v10 = vpop.f32.mrb[11].mxu1 }
 0x52f   :  { %4337 = vst [vmem:[#allocation2 + $0x40] sm:$0xff] %v4235_v48  ;;  %v4238_v35 = vadd.f32 %v8439_v62, %v4237_v10 }
 0x530   :  { %4340 = vst [vmem:[#allocation2 + $0x58] sm:$0xff] %v4246_v55 }
 0x531   :  { %4338 = vst [vmem:[#allocation2 + $0x48] sm:$0xff] %v4238_v35 }
 0x53c   :  { %v4683_v51 = vpop.f32.mrb[12].mxu1 }
 0x53d   :  { %v4259_v46 = vadd.f32 %v4683_v51, %v8439_v62  ;;  %v4250_v24 = vpop.f32.mrb[13].mxu1 }
 0x53e   :  { %v4251_v26 = vadd.f32 %v8439_v62, %v4250_v24  ;;  %v4684_v44 = vpop.f32.mrb[14].mxu1 }
 0x53f   :  { %4343 = vst [vmem:[#allocation2 + $0x70] sm:$0xff] %v4259_v46  ;;  %v4262_v7 = vadd.f32 %v4684_v44, %v8439_v62  ;;  %v4253_v27 = vpop.f32.mrb[15].mxu1 }
 0x540   :  { %4341 = vst [vmem:[#allocation2 + $0x60] sm:$0xff] %v4251_v26  ;;  %v4254_v0 = vadd.f32 %v8439_v62, %v4253_v27 }
 0x541   :  { %4344 = vst [vmem:[#allocation2 + $0x78] sm:$0xff] %v4262_v7 }
 0x542   :  { %4342 = vst [vmem:[#allocation2 + $0x68] sm:$0xff] %v4254_v0 }
 0x551   :  { %v4687_v19 = vpop.f32.mrb[16].mxu1 }
 0x552   :  { %v4275_v22 = vadd.f32 %v4687_v19, %v8439_v62  ;;  %v4266_v4 = vpop.f32.mrb[17].mxu1 }
 0x553   :  { %v4267_v18 = vadd.f32 %v8439_v62, %v4266_v4  ;;  %v4688_v6 = vpop.f32.mrb[18].mxu1 }
 0x554   :  { %4347 = vst [vmem:[#allocation2 + $0x90] sm:$0xff] %v4275_v22  ;;  %v4278_v25 = vadd.f32 %v4688_v6, %v8439_v62  ;;  %v4269_v47 = vpop.f32.mrb[19].mxu1 }
 0x555   :  { %4345 = vst [vmem:[#allocation2 + $0x80] sm:$0xff] %v4267_v18  ;;  %v4270_v11 = vadd.f32 %v8439_v62, %v4269_v47 }
 0x556   :  { %4348 = vst [vmem:[#allocation2 + $0x98] sm:$0xff] %v4278_v25 }
 0x557   :  { %4346 = vst [vmem:[#allocation2 + $0x88] sm:$0xff] %v4270_v11 }
 0x56a   :  { %v4691_v45 = vpop.f32.mrb[20].mxu1 }
 0x56b   :  { %v4291_v28 = vadd.f32 %v4691_v45, %v8439_v62  ;;  %v4282_v42 = vpop.f32.mrb[21].mxu1 }
 0x56c   :  { %v4283_v8 = vadd.f32 %v8439_v62, %v4282_v42  ;;  %v4692_v15 = vpop.f32.mrb[22].mxu1 }
 0x56d   :  { %4351 = vst [vmem:[#allocation2 + $0xb0] sm:$0xff] %v4291_v28  ;;  %v4294_v63 = vadd.f32 %v4692_v15, %v8439_v62  ;;  %v4285_v3 = vpop.f32.mrb[23].mxu1 }
 0x56e   :  { %4349 = vst [vmem:[#allocation2 + $0xa0] sm:$0xff] %v4283_v8  ;;  %v4286_v58 = vadd.f32 %v8439_v62, %v4285_v3 }
 0x56f   :  { %4352 = vst [vmem:[#allocation2 + $0xb8] sm:$0xff] %v4294_v63 }
 0x570   :  { %4350 = vst [vmem:[#allocation2 + $0xa8] sm:$0xff] %v4286_v58 }
 0x57e   :  { %v4695_v17 = vpop.f32.mrb[24].mxu1 }
 0x57f   :  { %v4307_v33 = vadd.f32 %v4695_v17, %v8439_v62  ;;  %v4298_v61 = vpop.f32.mrb[25].mxu1 }
 0x580   :  { %v4299_v30 = vadd.f32 %v8439_v62, %v4298_v61  ;;  %v4696_v32 = vpop.f32.mrb[26].mxu1 }
 0x581   :  { %4355 = vst [vmem:[#allocation2 + $0xd0] sm:$0xff] %v4307_v33  ;;  %v4310_v23 = vadd.f32 %v4696_v32, %v8439_v62  ;;  %v4301_v53 = vpop.f32.mrb[27].mxu1 }
 0x582   :  { %4353 = vst [vmem:[#allocation2 + $0xc0] sm:$0xff] %v4299_v30  ;;  %v4302_v36 = vadd.f32 %v8439_v62, %v4301_v53 }
 0x583   :  { %4356 = vst [vmem:[#allocation2 + $0xd8] sm:$0xff] %v4310_v23 }
 0x584   :  { %4354 = vst [vmem:[#allocation2 + $0xc8] sm:$0xff] %v4302_v36 }
 0x591   :  { %v4699_v29 = vpop.f32.mrb[28].mxu1 }
 0x592   :  { %v4323_v20 = vadd.f32 %v4699_v29, %v8439_v62  ;;  %v4314_v12 = vpop.f32.mrb[29].mxu1 }
 0x593   :  { %v4315_v60 = vadd.f32 %v8439_v62, %v4314_v12  ;;  %v4700_v1 = vpop.f32.mrb[30].mxu1 }
 0x594   :  { %4359 = vst [vmem:[#allocation2 + $0xf0] sm:$0xff] %v4323_v20  ;;  %v4326_v57 = vadd.f32 %v4700_v1, %v8439_v62  ;;  %v4317_v43 = vpop.f32.mrb[31].mxu1 }
 0x595   :  { %4357 = vst [vmem:[#allocation2 + $0xe0] sm:$0xff] %v4315_v60  ;;  %v4318_v2 = vadd.f32 %v8439_v62, %v4317_v43 }
 0x596   :  { %4360 = vst [vmem:[#allocation2 + $0xf8] sm:$0xff] %v4326_v57 }
 0x597   :  { %4358 = vst [vmem:[#allocation2 + $0xe8] sm:$0xff] %v4318_v2 }
 0x598   :  { %5130 = shalt.err (!%p5127_p4)
}
 0x599   :  { %s5131_s27 = scalar_lea.hbm %s8489_s4, 4096 }
 0x59a   :  { %p5132_p5 = scmp.ne.s32.totalorder %s8489_s4, %s5131_s27  ;;  %p5135_p6 = scmp.lt.u32.totalorder %s5131_s27, %s8489_s4 }
 0x59c   :  { %p5137_p7 = pnand %p5135_p6, %p5132_p5 }
 0x59e   :  { %5140 = shalt.err (!%p5137_p7)
}
 0x59f   :  { %s5151_s2 = smov 128   ;;  %s5152_s5 = smov 8  }
 0x5a0   :  { %4372 = dma.vmem_to_hbm [thread:$0]  %s4367_s23, 4096, %s8489_s4, [#allocation3], %s5151_s2, %s5151_s2, %s5152_s5  }
 0x5a1   :  { %5141 = dma.done.wait [#allocation3], 4096  }
 0x5a2   :  { %5142 = vsyncadd [#allocation3], 4294963200 }
 0x5a3   :  { %4376 = vsyncpa [#allocation3], 1 }

</bundles_post_ra>
